<compile_context>
chip_gen: v7x
topology: tpu7x:2x2x1
jax: 0.10.0
libtpu: 0.0.40
codegen_flags: <defaults>
</compile_context>

<pallas_src>
import jax
import jax.numpy as jnp
from jax.experimental import pallas as pl
from jax.experimental.pallas import tpu as pltpu

_EPS = 1e-5
_VMEM_LIMIT = 32 * 1024 * 1024  # well below v7x's 64 MiB physical VMEM


# ----------------------------------------------------------------------------
# Pallas kernels
# ----------------------------------------------------------------------------
def _conv_pool_kernel(p_ref, w_ref, b_ref, o_ref):
    """Fused conv(3x3) + BN(folded) + ReLU + maxpool(2,2) for Nb images.

    p_ref: (1, 4*Rb, K)  im2col patches; rows [m*Rb,(m+1)*Rb) = pool member m
    w_ref: (K, 128)      BN-scaled weight, output channels zero-padded to 128
    b_ref: (1, 128)      BN-folded bias (f32)
    o_ref: (1, Rb, 128)  pooled activations (bf16, channels-last, lane-dense)
    """
    rb = o_ref.shape[1]
    # One MXU call covering all 4 pool members (one push/drain instead of 4).
    acc = jnp.dot(p_ref[0], w_ref[...], preferred_element_type=jnp.float32)
    # Max over pool members on raw accumulators (sublane-aligned slices),
    # then a single bias add + ReLU (both commute with max).
    m = jnp.maximum(jnp.maximum(acc[0 * rb:1 * rb], acc[1 * rb:2 * rb]),
                    jnp.maximum(acc[2 * rb:3 * rb], acc[3 * rb:4 * rb]))
    o_ref[0] = jnp.maximum(m + b_ref[...], 0.0).astype(o_ref.dtype)


def _fc_stack_kernel(x_ref, w1_ref, b1_ref, w2_ref, b2_ref, w3_ref, b3_ref,
                     w4_ref, b4_ref, o_ref, acc2_ref):
    """Whole FC stack in one kernel.

    Grid axis j streams fc1's output-column tiles and fc2's matching K row
    tiles; fc2 is accumulated in VMEM scratch; fc3/fc4 run at the last step.
    """
    j = pl.program_id(0)

    @pl.when(j == 0)
    def _():
        acc2_ref[...] = jnp.zeros_like(acc2_ref)

    h1 = jnp.dot(x_ref[...], w1_ref[...], preferred_element_type=jnp.float32)
    h1 = jnp.maximum(h1 + b1_ref[...], 0.0)
    acc2_ref[...] += jnp.dot(h1.astype(jnp.bfloat16), w2_ref[...],
                             preferred_element_type=jnp.float32)

    @pl.when(j == pl.num_programs(0) - 1)
    def _():
        h2 = jnp.maximum(acc2_ref[...] + b2_ref[...], 0.0)
        h3 = jnp.dot(h2.astype(jnp.bfloat16), w3_ref[...],
                     preferred_element_type=jnp.float32)
        h3 = jnp.maximum(h3 + b3_ref[...], 0.0)
        h4 = jnp.dot(h3.astype(jnp.bfloat16), w4_ref[...],
                     preferred_element_type=jnp.float32)
        o_ref[...] = (h4 + b4_ref[...]).astype(o_ref.dtype)


# ----------------------------------------------------------------------------
# pallas_call wrappers
# ----------------------------------------------------------------------------
def conv_bn_relu_pool(patches, w_pad, b_pad, rb):
    """patches: (G, 4*Rb, K) bf16 -> (G, Rb, 128) bf16 (pooled, channels-last)."""
    G, four_rb, K = patches.shape
    assert four_rb == 4 * rb
    Cp = w_pad.shape[1]
    return pl.pallas_call(
        _conv_pool_kernel,
        out_shape=jax.ShapeDtypeStruct((G, rb, Cp), jnp.bfloat16),
        grid=(G,),
        in_specs=[
            pl.BlockSpec((1, four_rb, K), lambda g: (g, 0, 0)),
            pl.BlockSpec((K, Cp), lambda g: (0, 0)),
            pl.BlockSpec((1, Cp), lambda g: (0, 0)),
        ],
        out_specs=pl.BlockSpec((1, rb, Cp), lambda g: (g, 0, 0)),
        compiler_params=pltpu.CompilerParams(
            dimension_semantics=("parallel",),
            vmem_limit_bytes=_VMEM_LIMIT),
    )(patches, w_pad, b_pad)


def fc_stack(x, w1, b1, w2, b2, w3, b3, w4, b4, *, tn=512):
    """x:(M,1250) bf16 -> logits_padded:(M,128) f32; all four FCs in one call."""
    M, K1 = x.shape
    N1 = w1.shape[1]          # 2048
    N2 = w2.shape[1]          # 1024
    N3 = w3.shape[1]          # 128
    N4 = w4.shape[1]          # 128 (padded from 10)
    assert N1 % tn == 0 and w2.shape[0] == N1
    steps = N1 // tn
    return pl.pallas_call(
        _fc_stack_kernel,
        out_shape=jax.ShapeDtypeStruct((M, N4), jnp.float32),
        grid=(steps,),
        in_specs=[
            pl.BlockSpec((M, K1), lambda j: (0, 0)),     # x (resident)
            pl.BlockSpec((K1, tn), lambda j: (0, j)),    # fc1 weight, streamed
            pl.BlockSpec((1, tn), lambda j: (0, j)),     # fc1 bias, streamed
            pl.BlockSpec((tn, N2), lambda j: (j, 0)),    # fc2 weight, K-streamed
            pl.BlockSpec((1, N2), lambda j: (0, 0)),     # fc2 bias
            pl.BlockSpec((N2, N3), lambda j: (0, 0)),    # fc3 weight (resident)
            pl.BlockSpec((1, N3), lambda j: (0, 0)),     # fc3 bias
            pl.BlockSpec((N3, N4), lambda j: (0, 0)),    # fc4 weight (resident)
            pl.BlockSpec((1, N4), lambda j: (0, 0)),     # fc4 bias
        ],
        out_specs=pl.BlockSpec((M, N4), lambda j: (0, 0)),
        scratch_shapes=[pltpu.VMEM((M, N2), jnp.float32)],
        compiler_params=pltpu.CompilerParams(
            dimension_semantics=("arbitrary",),
            vmem_limit_bytes=_VMEM_LIMIT),
    )(x, w1, b1, w2, b2, w3, b3, w4, b4)


# ----------------------------------------------------------------------------
# Glue: pooled im2col (channels-last), Nb selection, params
# ----------------------------------------------------------------------------
def _pool_dims(H, W):
    Hp, Wp = (H - 2) // 2, (W - 2) // 2
    Mp = Hp * Wp
    Mp_pad = ((Mp + 7) // 8) * 8          # sublane-aligned per-image row count
    return Hp, Wp, Mp, Mp_pad


def _pick_nb(N, mp_pad, target_rows=512):
    """Largest divisor of N with Nb*Mp_pad <= target_rows, keeping grid >= 2."""
    best = 1
    for nb in range(1, N + 1):
        if N % nb:
            continue
        if nb * mp_pad > target_rows:
            continue
        if N >= 2 and N // nb < 2:
            continue                       # keep both v7x TCs busy
        best = nb
    return best


def pooled_im2col(x, cin, nb):
    """x:(N,H,W,C) -> (G, 4*nb*Mp_pad, 9*cin) patches grouped by pool member.

    Only positions surviving the floor-mode MaxPool2d(2,2) after a valid 3x3
    conv are gathered. Rows are laid out member-major so the kernel can take
    the pool max with three sublane-aligned slices of one matmul result.
    """
    N, H, W, _ = x.shape
    Hp, Wp, Mp, Mp_pad = _pool_dims(H, W)
    K = 9 * cin
    members = []
    for dy in range(2):
        for dx in range(2):
            taps = []
            for kh in range(3):
                for kw in range(3):
                    r0, c0 = dy + kh, dx + kw
                    taps.append(x[:, r0:r0 + 2 * Hp - 1:2,
                                  c0:c0 + 2 * Wp - 1:2, :cin])
            tap = jnp.stack(taps, axis=3)                 # (N, Hp, Wp, 9, cin)
            tap = tap.reshape(N, Mp, K)
            tap = jnp.pad(tap, ((0, 0), (0, Mp_pad - Mp), (0, 0)))
            members.append(tap)
    p = jnp.stack(members, axis=0)                        # (4, N, Mp_pad, K)
    G = N // nb
    p = p.reshape(4, G, nb, Mp_pad, K).transpose(1, 0, 2, 3, 4)
    p = p.reshape(G, 4 * nb * Mp_pad, K)
    return p, (Hp, Wp, Mp, Mp_pad)


def init_params(key):
    """PyTorch-convention random init (Conv2d/Linear default uniform bounds)."""
    ks = jax.random.split(key, 12)

    def unif(k, shape, fan_in):
        bound = 1.0 / (fan_in ** 0.5)
        return jax.random.uniform(k, shape, jnp.float32, -bound, bound)

    p = {}
    p["conv1_w"] = unif(ks[0], (25, 1, 3, 3), 9)
    p["conv1_b"] = unif(ks[1], (25,), 9)
    p["bn1_gamma"] = jnp.ones((25,), jnp.float32)
    p["bn1_beta"] = jnp.zeros((25,), jnp.float32)
    p["bn1_mean"] = jnp.zeros((25,), jnp.float32)
    p["bn1_var"] = jnp.ones((25,), jnp.float32)
    p["conv2_w"] = unif(ks[2], (50, 25, 3, 3), 225)
    p["conv2_b"] = unif(ks[3], (50,), 225)
    p["bn2_gamma"] = jnp.ones((50,), jnp.float32)
    p["bn2_beta"] = jnp.zeros((50,), jnp.float32)
    p["bn2_mean"] = jnp.zeros((50,), jnp.float32)
    p["bn2_var"] = jnp.ones((50,), jnp.float32)
    dims = [(2048, 1250), (1024, 2048), (128, 1024), (10, 128)]   # (out, in)
    for i, (dout, din) in enumerate(dims, start=1):
        p[f"fc{i}_w"] = unif(ks[2 + 2 * i], (dout, din), din)
        p[f"fc{i}_b"] = unif(ks[3 + 2 * i], (dout,), din)
    return p


def prepare_params(p):
    """One-time prep: fold BN, reorder to channels-last, pad to 128 lanes, bf16."""
    def fold_conv(w, b, gamma, beta, mean, var, cpad):
        cout, cin, kh, kw = w.shape
        s = gamma / jnp.sqrt(var + _EPS)
        wm = jnp.transpose(w, (2, 3, 1, 0)).reshape(kh * kw * cin, cout)
        wm = wm * s[None, :]                       # BN scale folded into weight
        bb = (b - mean) * s + beta                 # BN shift folded into bias
        wm = jnp.pad(wm, ((0, 0), (0, cpad - cout)))
        bb = jnp.pad(bb, (0, cpad - cout))
        return wm.astype(jnp.bfloat16), bb.reshape(1, cpad).astype(jnp.float32)

    q = {}
    q["c1_w"], q["c1_b"] = fold_conv(p["conv1_w"], p["conv1_b"], p["bn1_gamma"],
                                     p["bn1_beta"], p["bn1_mean"], p["bn1_var"], 128)
    q["c2_w"], q["c2_b"] = fold_conv(p["conv2_w"], p["conv2_b"], p["bn2_gamma"],
                                     p["bn2_beta"], p["bn2_mean"], p["bn2_var"], 128)

    # fc1: PyTorch flattens (C,H,W); our activations flatten (H,W,C) -> permute rows.
    w1 = p["fc1_w"].reshape(2048, 50, 5, 5).transpose(0, 2, 3, 1).reshape(2048, 1250)
    q["fc1_w"] = w1.T.astype(jnp.bfloat16)                         # (1250, 2048)
    q["fc1_b"] = p["fc1_b"].reshape(1, -1).astype(jnp.float32)
    q["fc2_w"] = p["fc2_w"].T.astype(jnp.bfloat16)                 # (2048, 1024)
    q["fc2_b"] = p["fc2_b"].reshape(1, -1).astype(jnp.float32)
    q["fc3_w"] = p["fc3_w"].T.astype(jnp.bfloat16)                 # (1024, 128)
    q["fc3_b"] = p["fc3_b"].reshape(1, -1).astype(jnp.float32)
    q["fc4_w"] = jnp.pad(p["fc4_w"].T, ((0, 0), (0, 118))).astype(jnp.bfloat16)
    q["fc4_b"] = jnp.pad(p["fc4_b"], (0, 118)).reshape(1, -1).astype(jnp.float32)
    return q


def lenet_forward(prep, x):
    """x: (N, 1, 28, 28) f32 NCHW -> logits (N, 10) f32."""
    N = x.shape[0]
    # Cin=1: NCHW and NHWC share the same memory layout -> pure reshape.
    xh = x.reshape(N, 28, 28, 1).astype(jnp.bfloat16)

    # layer1 + layer2: conv(1->25,3x3) + BN + ReLU + maxpool2x2, fused
    _, _, _, mp1_pad = _pool_dims(28, 28)
    nb1 = _pick_nb(N, mp1_pad)                               # images per step
    p1, (h1, w1, mp1, mp1_pad) = pooled_im2col(xh, 1, nb1)   # (G, 4*Rb, 9)
    y1 = conv_bn_relu_pool(p1, prep["c1_w"], prep["c1_b"], nb1 * mp1_pad)
    y1 = y1.reshape(N, mp1_pad, 128)[:, :mp1, :].reshape(N, h1, w1, 128)

    # layer3 + layer4: conv(25->50,3x3) + BN + ReLU + maxpool2x2, fused
    _, _, _, mp2_pad = _pool_dims(h1, w1)
    nb2 = _pick_nb(N, mp2_pad)
    p2, (h2, w2, mp2, mp2_pad) = pooled_im2col(y1, 25, nb2)  # (G, 4*Rb, 225)
    y2 = conv_bn_relu_pool(p2, prep["c2_w"], prep["c2_b"], nb2 * mp2_pad)
    y2 = y2.reshape(N, mp2_pad, 128)[:, :mp2, :50].reshape(N, h2, w2, 50)

    # flatten (H,W,C) + whole FC stack in one kernel
    xf = y2.reshape(N, 1250)                                 # bf16
    logits = fc_stack(xf, prep["fc1_w"], prep["fc1_b"],
                      prep["fc2_w"], prep["fc2_b"],
                      prep["fc3_w"], prep["fc3_b"],
                      prep["fc4_w"], prep["fc4_b"])          # (N, 128) f32
    return logits[:, :10]


if __name__ == "__main__":
    key = jax.random.PRNGKey(0)
    k_param, k_x = jax.random.split(key)
    params = init_params(k_param)
    prep = prepare_params(params)                 # one-time weight preparation
    # Input 28x28 is implied by the module (50 * 5 * 5 = 1250 flatten size).
    x = jax.random.normal(k_x, (2, 1, 28, 28), dtype=jnp.float32)
    logits = jax.jit(lenet_forward)(prep, x)
    jax.block_until_ready(logits)
    assert logits.shape == (2, 10) and logits.dtype == jnp.float32
    assert bool(jnp.all(jnp.isfinite(logits)))
    print("KERNEL_OK")
</pallas_src>

<mosaic_0001>
module attributes {stable_mosaic.version = 11 : i64} {
  func.func @_conv_pool_kernel(%arg0: i32, %arg1: memref<1x704x9xbf16, #tpu.memory_space<vmem>>, %arg2: memref<9x128xbf16, #tpu.memory_space<vmem>>, %arg3: memref<1x128xf32, #tpu.memory_space<vmem>>, %arg4: memref<1x176x128xbf16, #tpu.memory_space<vmem>>) attributes {dimension_semantics = [#tpu.dimension_semantics<parallel>], iteration_bounds = array<i64: 2>, scalar_prefetch = 0 : i64, scratch_operands = 0 : i64, tpu.core_type = #tpu.core_type<tc>, window_params = [{transform_indices = @transform_0, window_bounds = array<i64: 1, 704, 9>}, {pipeline_mode = #tpu.pipeline_mode<synchronous>, transform_indices = @transform_1, window_bounds = array<i64: 9, 128>}, {pipeline_mode = #tpu.pipeline_mode<synchronous>, transform_indices = @transform_2, window_bounds = array<i64: 1, 128>}, {transform_indices = @transform_3, window_bounds = array<i64: 1, 176, 128>}]} {
    %c0 = arith.constant 0 : index
    %c0_0 = arith.constant 0 : index
    %c0_1 = arith.constant 0 : index
    %0 = vector.load %arg1[%c0, %c0_0, %c0_1] : memref<1x704x9xbf16, #tpu.memory_space<vmem>>, vector<1x704x9xbf16>
    %1 = vector.shape_cast %0 : vector<1x704x9xbf16> to vector<704x9xbf16>
    %c0_2 = arith.constant 0 : index
    %c0_3 = arith.constant 0 : index
    %2 = vector.load %arg2[%c0_2, %c0_3] : memref<9x128xbf16, #tpu.memory_space<vmem>>, vector<9x128xbf16>
    %cst = arith.constant dense<0.000000e+00> : vector<704x128xf32>
    %3 = tpu.matmul %1, %2, %cst {dimension_numbers = #tpu.dot_dimension_numbers<[1], [0], [0], [1], [0, 0, 1, 1], [], []>} : vector<704x9xbf16>, vector<9x128xbf16>, vector<704x128xf32> -> vector<704x128xf32>
    %4 = vector.extract_strided_slice %3 {offsets = [0, 0], sizes = [176, 128], strides = [1, 1]} : vector<704x128xf32> to vector<176x128xf32>
    %5 = vector.extract_strided_slice %3 {offsets = [176, 0], sizes = [176, 128], strides = [1, 1]} : vector<704x128xf32> to vector<176x128xf32>
    %6 = arith.maximumf %4, %5 : vector<176x128xf32>
    %7 = vector.extract_strided_slice %3 {offsets = [352, 0], sizes = [176, 128], strides = [1, 1]} : vector<704x128xf32> to vector<176x128xf32>
    %8 = vector.extract_strided_slice %3 {offsets = [528, 0], sizes = [176, 128], strides = [1, 1]} : vector<704x128xf32> to vector<176x128xf32>
    %9 = arith.maximumf %7, %8 : vector<176x128xf32>
    %10 = arith.maximumf %6, %9 : vector<176x128xf32>
    %c0_4 = arith.constant 0 : index
    %c0_5 = arith.constant 0 : index
    %11 = vector.load %arg3[%c0_4, %c0_5] : memref<1x128xf32, #tpu.memory_space<vmem>>, vector<1x128xf32>
    %12 = vector.broadcast %11 : vector<1x128xf32> to vector<176x128xf32>
    %13 = arith.addf %10, %12 : vector<176x128xf32>
    %cst_6 = arith.constant 0.000000e+00 : f32
    %14 = vector.broadcast %cst_6 : f32 to vector<176x128xf32>
    %15 = arith.maximumf %13, %14 : vector<176x128xf32>
    %16 = arith.truncf %15 : vector<176x128xf32> to vector<176x128xbf16>
    %c0_7 = arith.constant 0 : index
    %c0_8 = arith.constant 0 : index
    %c0_9 = arith.constant 0 : index
    %17 = vector.load %arg4[%c0_7, %c0_8, %c0_9] : memref<1x176x128xbf16, #tpu.memory_space<vmem>>, vector<1x176x128xbf16>
    %18 = vector.shape_cast %17 : vector<1x176x128xbf16> to vector<176x128xbf16>
    %19 = vector.shape_cast %16 : vector<176x128xbf16> to vector<1x176x128xbf16>
    tpu.vector_store %arg4[%c0_7, %c0_8, %c0_9], %19 {strides = array<i32>} : memref<1x176x128xbf16, #tpu.memory_space<vmem>>, vector<1x176x128xbf16>,
    return
  }
  func.func @transform_0(%arg0: i32) -> (i32, i32, i32) {
    %c0_i32 = arith.constant 0 : i32
    %c0_i32_0 = arith.constant 0 : i32
    %c0_i32_1 = arith.constant 0 : i32
    return %arg0, %c0_i32, %c0_i32_0 : i32, i32, i32
  }
  func.func @transform_1(%arg0: i32) -> (i32, i32) {
    %c0_i32 = arith.constant 0 : i32
    %c0_i32_0 = arith.constant 0 : i32
    %c0_i32_1 = arith.constant 0 : i32
    return %c0_i32, %c0_i32_0 : i32, i32
  }
  func.func @transform_2(%arg0: i32) -> (i32, i32) {
    %c0_i32 = arith.constant 0 : i32
    %c0_i32_0 = arith.constant 0 : i32
    %c0_i32_1 = arith.constant 0 : i32
    return %c0_i32, %c0_i32_0 : i32, i32
  }
  func.func @transform_3(%arg0: i32) -> (i32, i32, i32) {
    %c0_i32 = arith.constant 0 : i32
    %c0_i32_0 = arith.constant 0 : i32
    %c0_i32_1 = arith.constant 0 : i32
    return %arg0, %c0_i32, %c0_i32_0 : i32, i32, i32
  }
}

module attributes {stable_mosaic.version = 11 : i64} {
  func.func @_conv_pool_kernel(%arg0: i32, %arg1: memref<1x128x225xbf16, #tpu.memory_space<vmem>>, %arg2: memref<225x128xbf16, #tpu.memory_space<vmem>>, %arg3: memref<1x128xf32, #tpu.memory_space<vmem>>, %arg4: memref<1x32x128xbf16, #tpu.memory_space<vmem>>) attributes {dimension_semantics = [#tpu.dimension_semantics<parallel>], iteration_bounds = array<i64: 2>, scalar_prefetch = 0 : i64, scratch_operands = 0 : i64, tpu.core_type = #tpu.core_type<tc>, window_params = [{transform_indices = @transform_0, window_bounds = array<i64: 1, 128, 225>}, {pipeline_mode = #tpu.pipeline_mode<synchronous>, transform_indices = @transform_1, window_bounds = array<i64: 225, 128>}, {pipeline_mode = #tpu.pipeline_mode<synchronous>, transform_indices = @transform_2, window_bounds = array<i64: 1, 128>}, {transform_indices = @transform_3, window_bounds = array<i64: 1, 32, 128>}]} {
    %c0 = arith.constant 0 : index
    %c0_0 = arith.constant 0 : index
    %c0_1 = arith.constant 0 : index
    %0 = vector.load %arg1[%c0, %c0_0, %c0_1] : memref<1x128x225xbf16, #tpu.memory_space<vmem>>, vector<1x128x225xbf16>
    %1 = vector.shape_cast %0 : vector<1x128x225xbf16> to vector<128x225xbf16>
    %c0_2 = arith.constant 0 : index
    %c0_3 = arith.constant 0 : index
    %2 = vector.load %arg2[%c0_2, %c0_3] : memref<225x128xbf16, #tpu.memory_space<vmem>>, vector<225x128xbf16>
    %cst = arith.constant dense<0.000000e+00> : vector<128x128xf32>
    %3 = tpu.matmul %1, %2, %cst {dimension_numbers = #tpu.dot_dimension_numbers<[1], [0], [0], [1], [0, 0, 1, 1], [], []>} : vector<128x225xbf16>, vector<225x128xbf16>, vector<128x128xf32> -> vector<128x128xf32>
    %4 = vector.extract_strided_slice %3 {offsets = [0, 0], sizes = [32, 128], strides = [1, 1]} : vector<128x128xf32> to vector<32x128xf32>
    %5 = vector.extract_strided_slice %3 {offsets = [32, 0], sizes = [32, 128], strides = [1, 1]} : vector<128x128xf32> to vector<32x128xf32>
    %6 = arith.maximumf %4, %5 : vector<32x128xf32>
    %7 = vector.extract_strided_slice %3 {offsets = [64, 0], sizes = [32, 128], strides = [1, 1]} : vector<128x128xf32> to vector<32x128xf32>
    %8 = vector.extract_strided_slice %3 {offsets = [96, 0], sizes = [32, 128], strides = [1, 1]} : vector<128x128xf32> to vector<32x128xf32>
    %9 = arith.maximumf %7, %8 : vector<32x128xf32>
    %10 = arith.maximumf %6, %9 : vector<32x128xf32>
    %c0_4 = arith.constant 0 : index
    %c0_5 = arith.constant 0 : index
    %11 = vector.load %arg3[%c0_4, %c0_5] : memref<1x128xf32, #tpu.memory_space<vmem>>, vector<1x128xf32>
    %12 = vector.broadcast %11 : vector<1x128xf32> to vector<32x128xf32>
    %13 = arith.addf %10, %12 : vector<32x128xf32>
    %cst_6 = arith.constant 0.000000e+00 : f32
    %14 = vector.broadcast %cst_6 : f32 to vector<32x128xf32>
    %15 = arith.maximumf %13, %14 : vector<32x128xf32>
    %16 = arith.truncf %15 : vector<32x128xf32> to vector<32x128xbf16>
    %c0_7 = arith.constant 0 : index
    %c0_8 = arith.constant 0 : index
    %c0_9 = arith.constant 0 : index
    %17 = vector.load %arg4[%c0_7, %c0_8, %c0_9] : memref<1x32x128xbf16, #tpu.memory_space<vmem>>, vector<1x32x128xbf16>
    %18 = vector.shape_cast %17 : vector<1x32x128xbf16> to vector<32x128xbf16>
    %19 = vector.shape_cast %16 : vector<32x128xbf16> to vector<1x32x128xbf16>
    tpu.vector_store %arg4[%c0_7, %c0_8, %c0_9], %19 {strides = array<i32>} : memref<1x32x128xbf16, #tpu.memory_space<vmem>>, vector<1x32x128xbf16>,
    return
  }
  func.func @transform_0(%arg0: i32) -> (i32, i32, i32) {
    %c0_i32 = arith.constant 0 : i32
    %c0_i32_0 = arith.constant 0 : i32
    %c0_i32_1 = arith.constant 0 : i32
    return %arg0, %c0_i32, %c0_i32_0 : i32, i32, i32
  }
  func.func @transform_1(%arg0: i32) -> (i32, i32) {
    %c0_i32 = arith.constant 0 : i32
    %c0_i32_0 = arith.constant 0 : i32
    %c0_i32_1 = arith.constant 0 : i32
    return %c0_i32, %c0_i32_0 : i32, i32
  }
  func.func @transform_2(%arg0: i32) -> (i32, i32) {
    %c0_i32 = arith.constant 0 : i32
    %c0_i32_0 = arith.constant 0 : i32
    %c0_i32_1 = arith.constant 0 : i32
    return %c0_i32, %c0_i32_0 : i32, i32
  }
  func.func @transform_3(%arg0: i32) -> (i32, i32, i32) {
    %c0_i32 = arith.constant 0 : i32
    %c0_i32_0 = arith.constant 0 : i32
    %c0_i32_1 = arith.constant 0 : i32
    return %arg0, %c0_i32, %c0_i32_0 : i32, i32, i32
  }
}

module attributes {stable_mosaic.version = 11 : i64} {
  func.func @_fc_stack_kernel(%arg0: i32, %arg1: memref<2x1250xbf16, #tpu.memory_space<vmem>>, %arg2: memref<1250x512xbf16, #tpu.memory_space<vmem>>, %arg3: memref<1x512xf32, #tpu.memory_space<vmem>>, %arg4: memref<512x1024xbf16, #tpu.memory_space<vmem>>, %arg5: memref<1x1024xf32, #tpu.memory_space<vmem>>, %arg6: memref<1024x128xbf16, #tpu.memory_space<vmem>>, %arg7: memref<1x128xf32, #tpu.memory_space<vmem>>, %arg8: memref<128x128xbf16, #tpu.memory_space<vmem>>, %arg9: memref<1x128xf32, #tpu.memory_space<vmem>>, %arg10: memref<2x128xf32, #tpu.memory_space<vmem>>, %arg11: memref<2x1024xf32, #tpu.memory_space<vmem>>) attributes {dimension_semantics = [#tpu.dimension_semantics<arbitrary>], iteration_bounds = array<i64: 4>, scalar_prefetch = 0 : i64, scratch_operands = 1 : i64, tpu.core_type = #tpu.core_type<tc>, window_params = [{pipeline_mode = #tpu.pipeline_mode<synchronous>, transform_indices = @transform_0, window_bounds = array<i64: 2, 1250>}, {transform_indices = @transform_1, window_bounds = array<i64: 1250, 512>}, {transform_indices = @transform_2, window_bounds = array<i64: 1, 512>}, {transform_indices = @transform_3, window_bounds = array<i64: 512, 1024>}, {pipeline_mode = #tpu.pipeline_mode<synchronous>, transform_indices = @transform_4, window_bounds = array<i64: 1, 1024>}, {pipeline_mode = #tpu.pipeline_mode<synchronous>, transform_indices = @transform_5, window_bounds = array<i64: 1024, 128>}, {pipeline_mode = #tpu.pipeline_mode<synchronous>, transform_indices = @transform_6, window_bounds = array<i64: 1, 128>}, {pipeline_mode = #tpu.pipeline_mode<synchronous>, transform_indices = @transform_7, window_bounds = array<i64: 128, 128>}, {pipeline_mode = #tpu.pipeline_mode<synchronous>, transform_indices = @transform_8, window_bounds = array<i64: 1, 128>}, {pipeline_mode = #tpu.pipeline_mode<synchronous>, transform_indices = @transform_9, window_bounds = array<i64: 2, 128>}]} {
    %c0_i32 = arith.constant 0 : i32
    %0 = arith.cmpi eq, %arg0, %c0_i32 : i32
    %1 = arith.extui %0 : i1 to i32
    %c0_i32_0 = arith.constant 0 : i32
    %2 = arith.cmpi ne, %1, %c0_i32_0 : i32
    scf.if %2 {
      %cst_15 = arith.constant 0.000000e+00 : f32
      %20 = vector.broadcast %cst_15 : f32 to vector<2x1024xf32>
      %c0_16 = arith.constant 0 : index
      %c0_17 = arith.constant 0 : index
      %21 = vector.load %arg11[%c0_16, %c0_17] : memref<2x1024xf32, #tpu.memory_space<vmem>>, vector<2x1024xf32>
      tpu.vector_store %arg11[%c0_16, %c0_17], %20 {strides = array<i32>} : memref<2x1024xf32, #tpu.memory_space<vmem>>, vector<2x1024xf32>,
    } else {
    }
    %c0 = arith.constant 0 : index
    %c0_1 = arith.constant 0 : index
    %3 = vector.load %arg1[%c0, %c0_1] : memref<2x1250xbf16, #tpu.memory_space<vmem>>, vector<2x1250xbf16>
    %c0_2 = arith.constant 0 : index
    %c0_3 = arith.constant 0 : index
    %4 = vector.load %arg2[%c0_2, %c0_3] : memref<1250x512xbf16, #tpu.memory_space<vmem>>, vector<1250x512xbf16>
    %cst = arith.constant dense<0.000000e+00> : vector<2x512xf32>
    %5 = tpu.matmul %3, %4, %cst {dimension_numbers = #tpu.dot_dimension_numbers<[1], [0], [0], [1], [0, 0, 1, 1], [], []>} : vector<2x1250xbf16>, vector<1250x512xbf16>, vector<2x512xf32> -> vector<2x512xf32>
    %c0_4 = arith.constant 0 : index
    %c0_5 = arith.constant 0 : index
    %6 = vector.load %arg3[%c0_4, %c0_5] : memref<1x512xf32, #tpu.memory_space<vmem>>, vector<1x512xf32>
    %7 = vector.broadcast %6 : vector<1x512xf32> to vector<2x512xf32>
    %8 = arith.addf %5, %7 : vector<2x512xf32>
    %cst_6 = arith.constant 0.000000e+00 : f32
    %9 = vector.broadcast %cst_6 : f32 to vector<2x512xf32>
    %10 = arith.maximumf %8, %9 : vector<2x512xf32>
    %c0_7 = arith.constant 0 : index
    %c0_8 = arith.constant 0 : index
    %11 = vector.load %arg11[%c0_7, %c0_8] : memref<2x1024xf32, #tpu.memory_space<vmem>>, vector<2x1024xf32>
    %12 = arith.truncf %10 : vector<2x512xf32> to vector<2x512xbf16>
    %c0_9 = arith.constant 0 : index
    %c0_10 = arith.constant 0 : index
    %13 = vector.load %arg4[%c0_9, %c0_10] : memref<512x1024xbf16, #tpu.memory_space<vmem>>, vector<512x1024xbf16>
    %cst_11 = arith.constant dense<0.000000e+00> : vector<2x1024xf32>
    %14 = tpu.matmul %12, %13, %cst_11 {dimension_numbers = #tpu.dot_dimension_numbers<[1], [0], [0], [1], [0, 0, 1, 1], [], []>} : vector<2x512xbf16>, vector<512x1024xbf16>, vector<2x1024xf32> -> vector<2x1024xf32>
    %15 = arith.addf %11, %14 : vector<2x1024xf32>
    %c0_12 = arith.constant 0 : index
    %c0_13 = arith.constant 0 : index
    %16 = vector.load %arg11[%c0_12, %c0_13] : memref<2x1024xf32, #tpu.memory_space<vmem>>, vector<2x1024xf32>
    tpu.vector_store %arg11[%c0_12, %c0_13], %15 {strides = array<i32>} : memref<2x1024xf32, #tpu.memory_space<vmem>>, vector<2x1024xf32>,
    %c3_i32 = arith.constant 3 : i32
    %17 = arith.cmpi eq, %arg0, %c3_i32 : i32
    %18 = arith.extui %17 : i1 to i32
    %c0_i32_14 = arith.constant 0 : i32
    %19 = arith.cmpi ne, %18, %c0_i32_14 : i32
    scf.if %19 {
      %c0_15 = arith.constant 0 : index
      %c0_16 = arith.constant 0 : index
      %20 = vector.load %arg11[%c0_15, %c0_16] : memref<2x1024xf32, #tpu.memory_space<vmem>>, vector<2x1024xf32>
      %c0_17 = arith.constant 0 : index
      %c0_18 = arith.constant 0 : index
      %21 = vector.load %arg5[%c0_17, %c0_18] : memref<1x1024xf32, #tpu.memory_space<vmem>>, vector<1x1024xf32>
      %22 = vector.broadcast %21 : vector<1x1024xf32> to vector<2x1024xf32>
      %23 = arith.addf %20, %22 : vector<2x1024xf32>
      %cst_19 = arith.constant 0.000000e+00 : f32
      %24 = vector.broadcast %cst_19 : f32 to vector<2x1024xf32>
      %25 = arith.maximumf %23, %24 : vector<2x1024xf32>
      %26 = arith.truncf %25 : vector<2x1024xf32> to vector<2x1024xbf16>
      %c0_20 = arith.constant 0 : index
      %c0_21 = arith.constant 0 : index
      %27 = vector.load %arg6[%c0_20, %c0_21] : memref<1024x128xbf16, #tpu.memory_space<vmem>>, vector<1024x128xbf16>
      %cst_22 = arith.constant dense<0.000000e+00> : vector<2x128xf32>
      %28 = tpu.matmul %26, %27, %cst_22 {dimension_numbers = #tpu.dot_dimension_numbers<[1], [0], [0], [1], [0, 0, 1, 1], [], []>} : vector<2x1024xbf16>, vector<1024x128xbf16>, vector<2x128xf32> -> vector<2x128xf32>
      %c0_23 = arith.constant 0 : index
      %c0_24 = arith.constant 0 : index
      %29 = vector.load %arg7[%c0_23, %c0_24] : memref<1x128xf32, #tpu.memory_space<vmem>>, vector<1x128xf32>
      %30 = vector.broadcast %29 : vector<1x128xf32> to vector<2x128xf32>
      %31 = arith.addf %28, %30 : vector<2x128xf32>
      %cst_25 = arith.constant 0.000000e+00 : f32
      %32 = vector.broadcast %cst_25 : f32 to vector<2x128xf32>
      %33 = arith.maximumf %31, %32 : vector<2x128xf32>
      %34 = arith.truncf %33 : vector<2x128xf32> to vector<2x128xbf16>
      %c0_26 = arith.constant 0 : index
      %c0_27 = arith.constant 0 : index
      %35 = vector.load %arg8[%c0_26, %c0_27] : memref<128x128xbf16, #tpu.memory_space<vmem>>, vector<128x128xbf16>
      %cst_28 = arith.constant dense<0.000000e+00> : vector<2x128xf32>
      %36 = tpu.matmul %34, %35, %cst_28 {dimension_numbers = #tpu.dot_dimension_numbers<[1], [0], [0], [1], [0, 0, 1, 1], [], []>} : vector<2x128xbf16>, vector<128x128xbf16>, vector<2x128xf32> -> vector<2x128xf32>
      %c0_29 = arith.constant 0 : index
      %c0_30 = arith.constant 0 : index
      %37 = vector.load %arg9[%c0_29, %c0_30] : memref<1x128xf32, #tpu.memory_space<vmem>>, vector<1x128xf32>
      %38 = vector.broadcast %37 : vector<1x128xf32> to vector<2x128xf32>
      %39 = arith.addf %36, %38 : vector<2x128xf32>
      %c0_31 = arith.constant 0 : index
      %c0_32 = arith.constant 0 : index
      %40 = vector.load %arg10[%c0_31, %c0_32] : memref<2x128xf32, #tpu.memory_space<vmem>>, vector<2x128xf32>
      tpu.vector_store %arg10[%c0_31, %c0_32], %39 {strides = array<i32>} : memref<2x128xf32, #tpu.memory_space<vmem>>, vector<2x128xf32>,
    } else {
    }
    return
  }
  func.func @transform_0(%arg0: i32) -> (i32, i32) {
    %c0_i32 = arith.constant 0 : i32
    %c0_i32_0 = arith.constant 0 : i32
    %c0_i32_1 = arith.constant 0 : i32
    return %c0_i32, %c0_i32_0 : i32, i32
  }
  func.func @transform_1(%arg0: i32) -> (i32, i32) {
    %c0_i32 = arith.constant 0 : i32
    %c0_i32_0 = arith.constant 0 : i32
    return %c0_i32, %arg0 : i32, i32
  }
  func.func @transform_2(%arg0: i32) -> (i32, i32) {
    %c0_i32 = arith.constant 0 : i32
    %c0_i32_0 = arith.constant 0 : i32
    return %c0_i32, %arg0 : i32, i32
  }
  func.func @transform_3(%arg0: i32) -> (i32, i32) {
    %c0_i32 = arith.constant 0 : i32
    %c0_i32_0 = arith.constant 0 : i32
    return %arg0, %c0_i32 : i32, i32
  }
  func.func @transform_4(%arg0: i32) -> (i32, i32) {
    %c0_i32 = arith.constant 0 : i32
    %c0_i32_0 = arith.constant 0 : i32
    %c0_i32_1 = arith.constant 0 : i32
    return %c0_i32, %c0_i32_0 : i32, i32
  }
  func.func @transform_5(%arg0: i32) -> (i32, i32) {
    %c0_i32 = arith.constant 0 : i32
    %c0_i32_0 = arith.constant 0 : i32
    %c0_i32_1 = arith.constant 0 : i32
    return %c0_i32, %c0_i32_0 : i32, i32
  }
  func.func @transform_6(%arg0: i32) -> (i32, i32) {
    %c0_i32 = arith.constant 0 : i32
    %c0_i32_0 = arith.constant 0 : i32
    %c0_i32_1 = arith.constant 0 : i32
    return %c0_i32, %c0_i32_0 : i32, i32
  }
  func.func @transform_7(%arg0: i32) -> (i32, i32) {
    %c0_i32 = arith.constant 0 : i32
    %c0_i32_0 = arith.constant 0 : i32
    %c0_i32_1 = arith.constant 0 : i32
    return %c0_i32, %c0_i32_0 : i32, i32
  }
  func.func @transform_8(%arg0: i32) -> (i32, i32) {
    %c0_i32 = arith.constant 0 : i32
    %c0_i32_0 = arith.constant 0 : i32
    %c0_i32_1 = arith.constant 0 : i32
    return %c0_i32, %c0_i32_0 : i32, i32
  }
  func.func @transform_9(%arg0: i32) -> (i32, i32) {
    %c0_i32 = arith.constant 0 : i32
    %c0_i32_0 = arith.constant 0 : i32
    %c0_i32_1 = arith.constant 0 : i32
    return %c0_i32, %c0_i32_0 : i32, i32
  }
}

</mosaic_0001>

<bundles_post_ra>
// kernel: lenet_forward.3
= control target key start
LH: loop header
LB: loop body
LE: loop exit
PB: predicated region body
PF: predicated region fallthrough
CT: control target
= control target key end

     0   :  { %8 = vsyncpa [#allocation3], 0  ;;  %s2211_s0 = inlined_call_operand.vmem [shape: bf16[2,704,9], index: 0, kind: input, shape index: {}]   ;;  %s2212_s1 = inlined_call_operand.hbm [shape: bf16[9,128], index: 1, kind: input, shape index: {}]   ;;  %s2213_s2 = inlined_call_operand.hbm [shape: f32[1,128], index: 2, kind: input, shape index: {}]   ;;  %s2214_s3 = inlined_call_operand.vmem [shape: bf16[2,176,128], index: 3, kind: output, shape index: {}]  }
   0x1   :  { %9 = vsyncpa [#allocation5], 0  ;;  %s1869_s12 = smov 0  }
   0x2 LB: > { %s1875_s13 = sadd.s32 4294967295, %s1842_s12   ;;  %p1346_p0 = scmp.ge.s32.totalorder %s1842_s12, 1  ;;  %s1842_s12 = sphi %s1869_s12, %s15_s12  }
   0x3   : > { %p114_p1 = scmp.lt.s32.totalorder %s1842_s12, 3  ;;  %s1844_s14 = smov [#allocation2]  }
   0x4   : > { %s126_s15 = sshll.u32 %s1844_s14, 4  ;;  %p2215_p3 = scmp.eq.s32.totalorder %s1875_s13, 0  ;;  %s127_s15 = int_to_ptr.vmem [resolvable:$true] %s126_s15 }
   0x5   : > { %p1879_p2 = pnand %p1346_p0, %p114_p1  ;;  %s1845_s17 = smov [#allocation4]  }
   0x6   : > { %s140_s18 = sshll.u32 %s1845_s17, 4  ;;  %s1772_s22 = scalar_lea.hbm %s2212_s1, 128  ;;  %s1892_s18 = int_to_ptr.vmem [resolvable:$true] %s140_s18 }
   0x7   : > { %s2217_s16 = scalar_select %p1879_p2, 1, 0 }
   0x8   : > { %p1703_p4 = pneg %p1879_p2  ;;  %p1773_p6 = scmp.ne.s32.totalorder %s2212_s1, %s1772_s22 }
   0x9   : > { %p1779_p10 = scmp.lt.u32.totalorder %s1772_s22, %s2212_s1 }
   0xa   : > { %p1888_p5 = pnand %p2215_p3, %p1703_p4 }
   0xc   : > { %p1774_p7 = pneg %p1888_p5 }
   0xe   : > { %p1775_p8 = pnand %p1774_p7, %p1773_p6 }
  0x10   : > { %p1776_p9 = pneg %p1775_p8 }
  0x12   : > { %p1781_p11 = pnand %p1779_p10, %p1776_p9 }
  0x14   : > { %1784 = shalt.err (!%p1781_p11)
}
  0x15   : > { %s1785_s27 = scalar_lea.vmem %s127_s15, 128  ;;  %p1793_p1 = scmp.lt.s32.totalorder %s127_s15, %s127_s15 }
  0x16   : > { %p1786_p12 = scmp.ne.s32.totalorder %s127_s15, %s1785_s27  ;;  %p1794_p4 = scmp.lt.s32.totalorder %s1785_s27, %s1785_s27 }
  0x18   : > { %p1788_p13 = pnand %p1786_p12, %p1774_p7  ;;  %p1795_p3 = por %p1794_p4, %p1793_p1 }
  0x1a   : > { %p1789_p0 = pneg %p1788_p13 }
  0x1c   : > { %p1796_p2 = pnand %p1795_p3, %p1789_p0 }
  0x1e   : > { %1799 = shalt.err (!%p1796_p2)
}
  0x1f   : > { %s1846_s28 = smov 64   ;;  %s1847_s29 = smov 4  }
  0x20   : > { %1706 = dma.hbm_to_vmem [thread:$0]  (!%p1888_p5), %s2212_s1, 128, %s127_s15, [#allocation3], %s1846_s28, %s1846_s28, %s1847_s29  }
  0x21   : > { %s1800_s7 = scalar_lea.hbm %s2213_s2, 16 }
  0x22   : > { %p1801_p6 = scmp.ne.s32.totalorder %s2213_s2, %s1800_s7  ;;  %p1807_p8 = scmp.lt.u32.totalorder %s1800_s7, %s2213_s2 }
  0x24   : > { %p1803_p2 = pnand %p1801_p6, %p1774_p7 }
  0x26   : > { %p1804_p3 = pneg %p1803_p2 }
  0x28   : > { %p1809_p9 = pnand %p1807_p8, %p1804_p3 }
  0x2a   : > { %1812 = shalt.err (!%p1809_p9)
}
  0x2b   : > { %s1813_s14 = scalar_lea.vmem %s1892_s18, 16  ;;  %s1820_s15 = scalar_lea.vmem %s1892_s18, 32 }
  0x2c   : > { %p1814_p10 = scmp.ne.s32.totalorder %s1892_s18, %s1813_s14  ;;  %p1821_p13 = scmp.lt.s32.totalorder %s1892_s18, %s1892_s18 }
  0x2d   : > { %p1822_p0 = scmp.lt.s32.totalorder %s1820_s15, %s1813_s14 }
  0x2e   : > { %p1816_p11 = pnand %p1814_p10, %p1774_p7 }
  0x2f   : > { %p1823_p1 = por %p1822_p0, %p1821_p13 }
  0x30   : > { %p1817_p12 = pneg %p1816_p11 }
  0x32   : > { %p1824_p4 = pnand %p1823_p1, %p1817_p12 }
  0x34   : > { %1827 = shalt.err (!%p1824_p4)
}
  0x35   : > { %1709 = dma.hbm_to_vmem [thread:$0]  (!%p1888_p5), %s2213_s2, 16, %s1892_s18, [#allocation5]  }
  0x36   : > { %p2219_p6 = scmp.ne.s32.totalorder %s2217_s16, 0 }
  0x37   : > { %p2220_p7 = scmp.eq.s32.totalorder (!%p2219_p6), %s1875_s13, 0 }
  0x38   : > { %161 = sbr.rel (%p2219_p6) target bundleno = 383 (0x17f), region = 32 }
  0x3f   : > { %1833 = dma.done.wait (%p2220_p7), [#allocation3], 128   ;;  %p2221_p2 = pmov %p2220_p7 }
  0x41   : > { %1835 = vsyncadd (%p2221_p2), [#allocation3], 4294967168  ;;  %p2222_p3 = pmov %p2221_p2 }
  0x42   : > { %p2223_p8 = pmov %p2221_p2 }
  0x43   : > { %1837 = dma.done.wait (%p2222_p3), [#allocation5], 16  }
  0x44   : > { %1839 = vsyncadd (%p2223_p8), [#allocation5], 4294967280  ;;  %vm648_vm0 = vcmask 1043456   ;;  %p189_p9 = scmp.lt.s32.totalorder %s1875_s13, 1  ;;  %vm649_vm1 = vcmask 1044480   ;;  %v1848_v0 = vmov 65535  }
  0x45   : > { %v650_v1 = vsel %vm648_vm0, 4294967295, %v1848_v0  ;;  %vm515_vm2 = vcmask 72704   ;;  %v1727_v3 = vld [vmem:[#allocation2] sm:$0x1f]  }
  0x46   : > { %s2225_s13 = smov (!%p189_p9, %s1875_s13), 1  ;;  %v651_v2 = vsel %vm649_vm1, %v650_v1, 0 }
  0x47   : > { %s1693_s16 = smul.u32 352, %s2225_s13  ;;  %v653_v5 = vand.u32 %v1727_v3, %v651_v2 }
  0x48   : > { %s1694_s22 = smul.u32 88, %s2225_s13 }
  0x49   : > { %s1960_s21 = scalar_lea.vmem %s2211_s0, %s1693_s16  ;;  %1601 = vmatprep.subr.bf16.mxu0 %v653_v5  ;;  %1691 = vmatprep.subr.bf16.mxu1 %v653_v5 }
  0x4a   : > { %v1728_v4 = vld [vmem:[%s1960_s21] sm:$0xff]   ;;  %v1729_v6 = vld [vmem:[%s1960_s21 + $0xb0] sm:$0xff]   ;;  %v1730_v7 = vld [vmem:[%s1960_s21 + $0x8] sm:$0xff]   ;;  %1602 = vmatpush3.bf16.msra.mxu0 %v653_v5  ;;  %1692 = vmatpush3.bf16.msra.mxu1 %v653_v5  ;;  %s2137_s25 = scalar_lea.vmem %s2214_s3, %s1694_s22 }
  0x4b   : > { %1603 = vmatprep.mubr.msk.bf16.mxu0 %vm515_vm2, %v1728_v4  ;;  %v1731_v8 = vld [vmem:[%s1960_s21 + $0xb8] sm:$0xff]   ;;  %v1732_v9 = vld [vmem:[%s1960_s21 + $0x10] sm:$0xff]   ;;  %1647 = vmatprep.mubr.msk.bf16.mxu1 %vm515_vm2, %v1729_v6  ;;  %v1733_v10 = vld [vmem:[%s1960_s21 + $0xc0] sm:$0xff]  }
  0x4c   : > { %v1734_v11 = vld [vmem:[%s1960_s21 + $0x18] sm:$0xff]   ;;  %v1735_v12 = vld [vmem:[%s1960_s21 + $0xc8] sm:$0xff]   ;;  %v1736_v13 = vld [vmem:[%s1960_s21 + $0x20] sm:$0xff]  }
  0x4d   : > { %1604 = vmatmul.mubr.msk.bf16.vlgmr.msra.gmra.mrb[0].mxu0 %vm515_vm2, %v1730_v7  ;;  %1648 = vmatmul.mubr.msk.bf16.vlgmr.msra.gmra.mrb[0].mxu1 %vm515_vm2, %v1731_v8  ;;  %v1737_v14 = vld [vmem:[%s1960_s21 + $0xd0] sm:$0xff]   ;;  %v1738_v15 = vld [vmem:[%s1960_s21 + $0x28] sm:$0xff]   ;;  %v1739_v16 = vld [vmem:[%s1960_s21 + $0xd8] sm:$0xff]  }
  0x4e   : > { %1607 = vmatprep.mubr.msk.bf16.mxu0 %vm515_vm2, %v1732_v9  ;;  %1651 = vmatprep.mubr.msk.bf16.mxu1 %vm515_vm2, %v1733_v10  ;;  %v1740_v17 = vld [vmem:[%s1960_s21 + $0x30] sm:$0xff]   ;;  %v1741_v18 = vld [vmem:[%s1960_s21 + $0xe0] sm:$0xff]   ;;  %v1742_v19 = vld [vmem:[%s1960_s21 + $0x38] sm:$0xff]  }
  0x4f   : > { %v1743_v20 = vld [vmem:[%s1960_s21 + $0xe8] sm:$0xff]   ;;  %v1744_v21 = vld [vmem:[%s1960_s21 + $0x40] sm:$0xff]   ;;  %v1745_v22 = vld [vmem:[%s1960_s21 + $0xf0] sm:$0xff]  }
  0x50   : > { %v1746_v23 = vld [vmem:[%s1960_s21 + $0x48] sm:$0xff]   ;;  %v1747_v24 = vld [vmem:[%s1960_s21 + $0xf8] sm:$0xff]   ;;  %v1748_v25 = vld [vmem:[%s1960_s21 + $0x50] sm:$0xff]  }
  0x51   : > { %v1749_v26 = vld [vmem:[%s1960_s21 + $0x100] sm:$0xff]   ;;  %v1750_v27 = vld [vmem:[%s1960_s21 + $0x58] sm:$0xff]   ;;  %v1751_v28 = vld [vmem:[%s1960_s21 + $0x108] sm:$0xff]  }
  0x52   : > { %v1752_v29 = vld [vmem:[%s1960_s21 + $0x60] sm:$0xff]   ;;  %v1753_v30 = vld [vmem:[%s1960_s21 + $0x110] sm:$0xff]   ;;  %v1754_v31 = vld [vmem:[%s1960_s21 + $0x68] sm:$0xff]  }
  0x53   : > { %v1755_v32 = vld [vmem:[%s1960_s21 + $0x118] sm:$0xff]   ;;  %v1756_v33 = vld [vmem:[%s1960_s21 + $0x70] sm:$0xff]   ;;  %v1757_v34 = vld [vmem:[%s1960_s21 + $0x120] sm:$0xff]  }
  0x54   : > { %v1758_v35 = vld [vmem:[%s1960_s21 + $0x78] sm:$0xff]   ;;  %v1759_v36 = vld [vmem:[%s1960_s21 + $0x128] sm:$0xff]   ;;  %v1760_v37 = vld [vmem:[%s1960_s21 + $0x80] sm:$0xff]  }
  0x55   : > { %1608 = vmatmul.mubr.msk.bf16.gmra.mrb[4].mxu0 %vm515_vm2, %v1734_v11  ;;  %1652 = vmatmul.mubr.msk.bf16.gmra.mrb[4].mxu1 %vm515_vm2, %v1735_v12  ;;  %v1761_v38 = vld [vmem:[%s1960_s21 + $0x130] sm:$0xff]   ;;  %v1762_v39 = vld [vmem:[%s1960_s21 + $0x88] sm:$0xff]   ;;  %v1763_v40 = vld [vmem:[%s1960_s21 + $0x138] sm:$0xff]  }
  0x56   : > { %1611 = vmatprep.mubr.msk.bf16.mxu0 %vm515_vm2, %v1736_v13  ;;  %1655 = vmatprep.mubr.msk.bf16.mxu1 %vm515_vm2, %v1737_v14  ;;  %v1764_v41 = vld [vmem:[%s1960_s21 + $0x90] sm:$0xff]   ;;  %v1765_v42 = vld [vmem:[%s1960_s21 + $0x140] sm:$0xff]   ;;  %v1766_v43 = vld [vmem:[%s1960_s21 + $0x98] sm:$0xff]  }
  0x57   : > { %v1767_v44 = vld [vmem:[%s1960_s21 + $0x148] sm:$0xff]   ;;  %v1768_v45 = vld [vmem:[%s1960_s21 + $0xa0] sm:$0xff]   ;;  %v1769_v46 = vld [vmem:[%s1960_s21 + $0x150] sm:$0xff]  }
  0x58   : > { %v1770_v47 = vld [vmem:[%s1960_s21 + $0xa8] sm:$0xff]   ;;  %v1771_v48 = vld [vmem:[%s1960_s21 + $0x158] sm:$0xff]  }
  0x5d   : > { %1612 = vmatmul.mubr.msk.bf16.gmra.mrb[8].mxu0 %vm515_vm2, %v1738_v15  ;;  %1656 = vmatmul.mubr.msk.bf16.gmra.mrb[8].mxu1 %vm515_vm2, %v1739_v16 }
  0x5e   : > { %1615 = vmatprep.mubr.msk.bf16.mxu0 %vm515_vm2, %v1740_v17  ;;  %1659 = vmatprep.mubr.msk.bf16.mxu1 %vm515_vm2, %v1741_v18 }
  0x65   : > { %1616 = vmatmul.mubr.msk.bf16.gmra.mrb[12].mxu0 %vm515_vm2, %v1742_v19  ;;  %1660 = vmatmul.mubr.msk.bf16.gmra.mrb[12].mxu1 %vm515_vm2, %v1743_v20 }
  0x66   : > { %1619 = vmatprep.mubr.msk.bf16.mxu0 %vm515_vm2, %v1744_v21  ;;  %1663 = vmatprep.mubr.msk.bf16.mxu1 %vm515_vm2, %v1745_v22 }
  0x6d   : > { %1620 = vmatmul.mubr.msk.bf16.gmra.mrb[16].mxu0 %vm515_vm2, %v1746_v23  ;;  %1664 = vmatmul.mubr.msk.bf16.gmra.mrb[16].mxu1 %vm515_vm2, %v1747_v24 }
  0x6e   : > { %1623 = vmatprep.mubr.msk.bf16.mxu0 %vm515_vm2, %v1748_v25  ;;  %1667 = vmatprep.mubr.msk.bf16.mxu1 %vm515_vm2, %v1749_v26 }
  0x75   : > { %1624 = vmatmul.mubr.msk.bf16.gmra.mrb[20].mxu0 %vm515_vm2, %v1750_v27  ;;  %1668 = vmatmul.mubr.msk.bf16.gmra.mrb[20].mxu1 %vm515_vm2, %v1751_v28 }
  0x76   : > { %1627 = vmatprep.mubr.msk.bf16.mxu0 %vm515_vm2, %v1752_v29  ;;  %1671 = vmatprep.mubr.msk.bf16.mxu1 %vm515_vm2, %v1753_v30 }
  0x7d   : > { %1628 = vmatmul.mubr.msk.bf16.gmra.mrb[24].mxu0 %vm515_vm2, %v1754_v31  ;;  %1672 = vmatmul.mubr.msk.bf16.gmra.mrb[24].mxu1 %vm515_vm2, %v1755_v32  ;;  %v2124_v31 = vld [vmem:[#allocation4] ss:$0 sm:$0xff] }
  0x7e   : > { %1631 = vmatprep.mubr.msk.bf16.mxu0 %vm515_vm2, %v1756_v33  ;;  %1675 = vmatprep.mubr.msk.bf16.mxu1 %vm515_vm2, %v1757_v34 }
  0x85   : > { %1632 = vmatmul.mubr.msk.bf16.gmra.mrb[28].mxu0 %vm515_vm2, %v1758_v35  ;;  %1676 = vmatmul.mubr.msk.bf16.gmra.mrb[28].mxu1 %vm515_vm2, %v1759_v36 }
  0x86   : > { %1635 = vmatprep.mubr.msk.bf16.mxu0 %vm515_vm2, %v1760_v37  ;;  %1679 = vmatprep.mubr.msk.bf16.mxu1 %vm515_vm2, %v1761_v38 }
  0x8d   : > { %1636 = vmatmul.mubr.msk.bf16.gmra.mrb[32].mxu0 %vm515_vm2, %v1762_v39  ;;  %1680 = vmatmul.mubr.msk.bf16.gmra.mrb[32].mxu1 %vm515_vm2, %v1763_v40 }
  0x8e   : > { %1639 = vmatprep.mubr.msk.bf16.mxu0 %vm515_vm2, %v1764_v41  ;;  %1683 = vmatprep.mubr.msk.bf16.mxu1 %vm515_vm2, %v1765_v42 }
  0x95   : > { %1640 = vmatmul.mubr.msk.bf16.gmra.mrb[36].mxu0 %vm515_vm2, %v1766_v43  ;;  %1684 = vmatmul.mubr.msk.bf16.gmra.mrb[36].mxu1 %vm515_vm2, %v1767_v44 }
  0x96   : > { %1643 = vmatprep.mubr.msk.bf16.mxu0 %vm515_vm2, %v1768_v45  ;;  %1687 = vmatprep.mubr.msk.bf16.mxu1 %vm515_vm2, %v1769_v46 }
  0x9d   : > { %1644 = vmatmul.mubr.msk.bf16.gmra.mrb[40].mxu0 %vm515_vm2, %v1770_v47  ;;  %1688 = vmatmul.mubr.msk.bf16.gmra.mrb[40].mxu1 %vm515_vm2, %v1771_v48 }
 0x120   : > { %v2050_v49 = vpop.f32.mrb[0].mxu0  ;;  %v2052_v50 = vpop.f32.mrb[0].mxu1 }
 0x121   : > { %v689_v51 = vpop.f32.mrb[1].mxu0  ;;  %v865_v52 = vpop.f32.mrb[1].mxu1 }
 0x122   : > { %v2054_v53 = vpop.f32.mrb[2].mxu0  ;;  %v2056_v54 = vpop.f32.mrb[2].mxu1 }
 0x123   : > { %v692_v55 = vpop.f32.mrb[3].mxu0  ;;  %v868_v56 = vpop.f32.mrb[3].mxu1 }
 0x128   : > { %v2058_v57 = vpop.f32.mrb[4].mxu0  ;;  %v2060_v58 = vpop.f32.mrb[4].mxu1 }
 0x129   : > { %v2062_v59 = vpop.f32.mrb[5].mxu0  ;;  %v881_v60 = vpop.f32.mrb[5].mxu1 }
 0x12a   : > { %v2064_v61 = vpop.f32.mrb[6].mxu0  ;;  %v2066_v62 = vpop.f32.mrb[6].mxu1 }
 0x12b   : > { %v2068_v63 = vpop.f32.mrb[7].mxu0  ;;  %v2070_v0 = vpop.f32.mrb[7].mxu1 }
 0x130   : > { %v2072_v1 = vpop.f32.mrb[8].mxu0  ;;  %v2074_v2 = vpop.f32.mrb[8].mxu1 }
 0x131   : > { %v2076_v3 = vpop.f32.mrb[9].mxu0  ;;  %v2078_v4 = vpop.f32.mrb[9].mxu1 }
 0x132   : > { %v2080_v5 = vpop.f32.mrb[10].mxu0  ;;  %v2082_v6 = vpop.f32.mrb[10].mxu1 }
 0x133   : > { %v2084_v7 = vpop.f32.mrb[11].mxu0  ;;  %v2086_v8 = vpop.f32.mrb[11].mxu1 }
 0x138   : > { %v2088_v9 = vpop.f32.mrb[12].mxu0  ;;  %v2090_v10 = vpop.f32.mrb[12].mxu1 }
 0x139   : > { %v2092_v11 = vpop.f32.mrb[13].mxu0  ;;  %v2094_v12 = vpop.f32.mrb[13].mxu1 }
 0x13a   : > { %v2096_v13 = vpop.f32.mrb[14].mxu0  ;;  %v2098_v14 = vpop.f32.mrb[14].mxu1 }
 0x13b   : > { %v2100_v15 = vpop.f32.mrb[15].mxu0  ;;  %v2102_v16 = vpop.f32.mrb[15].mxu1 }
 0x140   : > { %v2104_v17 = vpop.f32.mrb[16].mxu0  ;;  %v2106_v18 = vpop.f32.mrb[16].mxu1 }
 0x141   : > { %v2108_v19 = vpop.f32.mrb[17].mxu0  ;;  %v2110_v20 = vpop.f32.mrb[17].mxu1 }
 0x142   : > { %v2112_v21 = vpop.f32.mrb[18].mxu0  ;;  %v2114_v22 = vpop.f32.mrb[18].mxu1 }
 0x143   : > { %v2116_v23 = vpop.f32.mrb[19].mxu0  ;;  %v2118_v24 = vpop.f32.mrb[19].mxu1 }
 0x148   : > { %v1625_v25 = vpop.f32.mrb[20].mxu0  ;;  %v1669_v26 = vpop.f32.mrb[20].mxu1 }
 0x149   : > { %v1040_v27 = vmax.f32 %v689_v51, %v1625_v25  ;;  %v1062_v28 = vmax.f32 %v865_v52, %v1669_v26  ;;  %v2120_v29 = vpop.f32.mrb[21].mxu0  ;;  %v2122_v30 = vpop.f32.mrb[21].mxu1 }
 0x14a   : > { %v1626_v32 = vpop.f32.mrb[22].mxu0  ;;  %v1670_v33 = vpop.f32.mrb[22].mxu1 }
 0x14b   : > { %v1084_v34 = vmax.f32 %v1040_v27, %v1062_v28  ;;  %v1041_v35 = vmax.f32 %v692_v55, %v1626_v32  ;;  %v1063_v36 = vmax.f32 %v868_v56, %v1670_v33  ;;  %v2126_v37 = vpop.f32.mrb[23].mxu0  ;;  %v2128_v38 = vpop.f32.mrb[23].mxu1 }
 0x14d   : > { %v1113_v39 = vadd.f32 %v2124_v31, %v1084_v34  ;;  %v1085_v40 = vmax.f32 %v1041_v35, %v1063_v36 }
 0x14f   : > { %v1114_v41 = vadd.f32 %v2124_v31, %v1085_v40  ;;  %v1135_v44 = vmax.f32 %v1113_v39, 0.0 }
 0x150   : > { %v1629_v42 = vpop.f32.mrb[24].mxu0  ;;  %v1673_v43 = vpop.f32.mrb[24].mxu1 }
 0x151   : > { %v1136_v45 = vmax.f32 %v1114_v41, 0.0  ;;  %v1044_v46 = vmax.f32 %v2062_v59, %v1629_v42  ;;  %v1066_v47 = vmax.f32 %v881_v60, %v1673_v43  ;;  %v785_v48 = vpop.f32.mrb[25].mxu0  ;;  %v961_v51 = vpop.f32.mrb[25].mxu1 }
 0x152   : > { %v1042_v52 = vmax.f32 %v2050_v49, %v785_v48  ;;  %v1064_v55 = vmax.f32 %v2052_v50, %v961_v51  ;;  %v1630_v56 = vpop.f32.mrb[26].mxu0  ;;  %v1674_v25 = vpop.f32.mrb[26].mxu1 }
 0x153   : > { %v1494_v26 = vpack.c.bf16 %v1136_v45, %v1135_v44  ;;  %v1088_v27 = vmax.f32 %v1044_v46, %v1066_v47  ;;  %v1045_v28 = vmax.f32 %v2068_v63, %v1630_v56  ;;  %v1067_v59 = vmax.f32 %v2070_v0, %v1674_v25  ;;  %v788_v60 = vpop.f32.mrb[27].mxu0  ;;  %v964_v32 = vpop.f32.mrb[27].mxu1 }
 0x154   : > { %v1086_v33 = vmax.f32 %v1042_v52, %v1064_v55  ;;  %v1043_v34 = vmax.f32 %v2054_v53, %v788_v60  ;;  %v1065_v35 = vmax.f32 %v2056_v54, %v964_v32 }
 0x155   : > { %1495 = vst [vmem:[%s2137_s25] sm:$0xff] %v1494_v26   ;;  %v1117_v49 = vadd.f32 %v2124_v31, %v1088_v27  ;;  %v1089_v36 = vmax.f32 %v1045_v28, %v1067_v59 }
 0x156   : > { %v1115_v50 = vadd.f32 %v2124_v31, %v1086_v33  ;;  %v1087_v39 = vmax.f32 %v1043_v34, %v1065_v35 }
 0x157   : > { %v1118_v40 = vadd.f32 %v2124_v31, %v1089_v36  ;;  %v1139_v42 = vmax.f32 %v1117_v49, 0.0 }
 0x158   : > { %v1116_v63 = vadd.f32 %v2124_v31, %v1087_v39  ;;  %v1633_v41 = vpop.f32.mrb[28].mxu0  ;;  %v1677_v0 = vpop.f32.mrb[28].mxu1  ;;  %v1137_v46 = vmax.f32 %v1115_v50, 0.0 }
 0x159   : > { %v1140_v43 = vmax.f32 %v1118_v40, 0.0  ;;  %v1048_v44 = vmax.f32 %v2076_v3, %v1633_v41  ;;  %v1070_v53 = vmax.f32 %v2078_v4, %v1677_v0  ;;  %v801_v54 = vpop.f32.mrb[29].mxu0  ;;  %v977_v45 = vpop.f32.mrb[29].mxu1 }
 0x15a   : > { %v1138_v47 = vmax.f32 %v1116_v63, 0.0  ;;  %v1046_v48 = vmax.f32 %v2058_v57, %v801_v54  ;;  %v1068_v51 = vmax.f32 %v2060_v58, %v977_v45  ;;  %v1634_v52 = vpop.f32.mrb[30].mxu0  ;;  %v1678_v55 = vpop.f32.mrb[30].mxu1 }
 0x15b   : > { %v1504_v56 = vpack.c.bf16 %v1140_v43, %v1139_v42  ;;  %v1092_v25 = vmax.f32 %v1048_v44, %v1070_v53  ;;  %v1049_v26 = vmax.f32 %v2084_v7, %v1634_v52  ;;  %v1071_v3 = vmax.f32 %v2086_v8, %v1678_v55  ;;  %v804_v27 = vpop.f32.mrb[31].mxu0  ;;  %v980_v4 = vpop.f32.mrb[31].mxu1 }
 0x15c   : > { %v1499_v28 = vpack.c.bf16 %v1138_v47, %v1137_v46  ;;  %v1090_v59 = vmax.f32 %v1046_v48, %v1068_v51  ;;  %v1047_v60 = vmax.f32 %v2064_v61, %v804_v27  ;;  %v1069_v32 = vmax.f32 %v2066_v62, %v980_v4 }
 0x15d   : > { %1547 = vst [vmem:[%s2137_s25 + $0x10] sm:$0xff] %v1504_v56   ;;  %v1121_v57 = vadd.f32 %v2124_v31, %v1092_v25  ;;  %v1093_v58 = vmax.f32 %v1049_v26, %v1071_v3 }
 0x15e   : > { %1546 = vst [vmem:[%s2137_s25 + $0x8] sm:$0xff] %v1499_v28   ;;  %v1119_v33 = vadd.f32 %v2124_v31, %v1090_v59  ;;  %v1091_v34 = vmax.f32 %v1047_v60, %v1069_v32 }
 0x15f   : > { %v1122_v7 = vadd.f32 %v2124_v31, %v1093_v58  ;;  %v1143_v36 = vmax.f32 %v1121_v57, 0.0 }
 0x160   : > { %v1120_v8 = vadd.f32 %v2124_v31, %v1091_v34  ;;  %v1637_v35 = vpop.f32.mrb[32].mxu0  ;;  %v1681_v49 = vpop.f32.mrb[32].mxu1  ;;  %v1141_v63 = vmax.f32 %v1119_v33, 0.0 }
 0x161   : > { %v1144_v50 = vmax.f32 %v1122_v7, 0.0  ;;  %v1052_v61 = vmax.f32 %v2092_v11, %v1637_v35  ;;  %v1074_v62 = vmax.f32 %v2094_v12, %v1681_v49  ;;  %v817_v39 = vpop.f32.mrb[33].mxu0  ;;  %v993_v40 = vpop.f32.mrb[33].mxu1 }
 0x162   : > { %v1142_v41 = vmax.f32 %v1120_v8, 0.0  ;;  %v1050_v0 = vmax.f32 %v2072_v1, %v817_v39  ;;  %v1072_v42 = vmax.f32 %v2074_v2, %v993_v40  ;;  %v1638_v43 = vpop.f32.mrb[34].mxu0  ;;  %v1682_v44 = vpop.f32.mrb[34].mxu1 }
 0x163   : > { %v1514_v53 = vpack.c.bf16 %v1144_v50, %v1143_v36  ;;  %v1096_v54 = vmax.f32 %v1052_v61, %v1074_v62  ;;  %v1053_v45 = vmax.f32 %v2100_v15, %v1638_v43  ;;  %v1075_v11 = vmax.f32 %v2102_v16, %v1682_v44  ;;  %v820_v46 = vpop.f32.mrb[35].mxu0  ;;  %v996_v12 = vpop.f32.mrb[35].mxu1 }
 0x164   : > { %v1509_v47 = vpack.c.bf16 %v1142_v41, %v1141_v63  ;;  %v1094_v48 = vmax.f32 %v1050_v0, %v1072_v42  ;;  %v1051_v51 = vmax.f32 %v2080_v5, %v820_v46  ;;  %v1073_v52 = vmax.f32 %v2082_v6, %v996_v12 }
 0x165   : > { %1549 = vst [vmem:[%s2137_s25 + $0x20] sm:$0xff] %v1514_v53   ;;  %v1125_v1 = vadd.f32 %v2124_v31, %v1096_v54  ;;  %v1097_v2 = vmax.f32 %v1053_v45, %v1075_v11 }
 0x166   : > { %1548 = vst [vmem:[%s2137_s25 + $0x18] sm:$0xff] %v1509_v47   ;;  %v1123_v55 = vadd.f32 %v2124_v31, %v1094_v48  ;;  %v1095_v56 = vmax.f32 %v1051_v51, %v1073_v52 }
 0x167   : > { %v1126_v15 = vadd.f32 %v2124_v31, %v1097_v2  ;;  %v1147_v3 = vmax.f32 %v1125_v1, 0.0 }
 0x168   : > { %v1124_v16 = vadd.f32 %v2124_v31, %v1095_v56  ;;  %v1641_v25 = vpop.f32.mrb[36].mxu0  ;;  %v1685_v26 = vpop.f32.mrb[36].mxu1  ;;  %v1145_v59 = vmax.f32 %v1123_v55, 0.0 }
 0x169   : > { %v1148_v27 = vmax.f32 %v1126_v15, 0.0  ;;  %v1056_v5 = vmax.f32 %v2108_v19, %v1641_v25  ;;  %v1078_v6 = vmax.f32 %v2110_v20, %v1685_v26  ;;  %v833_v4 = vpop.f32.mrb[37].mxu0  ;;  %v1009_v28 = vpop.f32.mrb[37].mxu1 }
 0x16a   : > { %v1146_v60 = vmax.f32 %v1124_v16, 0.0  ;;  %v1054_v32 = vmax.f32 %v2088_v9, %v833_v4  ;;  %v1076_v57 = vmax.f32 %v2090_v10, %v1009_v28  ;;  %v1642_v58 = vpop.f32.mrb[38].mxu0  ;;  %v1686_v33 = vpop.f32.mrb[38].mxu1 }
 0x16b   : > { %v1524_v34 = vpack.c.bf16 %v1148_v27, %v1147_v3  ;;  %v1100_v7 = vmax.f32 %v1056_v5, %v1078_v6  ;;  %v1057_v8 = vmax.f32 %v2116_v23, %v1642_v58  ;;  %v1079_v19 = vmax.f32 %v2118_v24, %v1686_v33  ;;  %v836_v35 = vpop.f32.mrb[39].mxu0  ;;  %v1012_v20 = vpop.f32.mrb[39].mxu1 }
 0x16c   : > { %v1519_v49 = vpack.c.bf16 %v1146_v60, %v1145_v59  ;;  %v1098_v36 = vmax.f32 %v1054_v32, %v1076_v57  ;;  %v1055_v50 = vmax.f32 %v2096_v13, %v836_v35  ;;  %v1077_v61 = vmax.f32 %v2098_v14, %v1012_v20 }
 0x16d   : > { %1551 = vst [vmem:[%s2137_s25 + $0x30] sm:$0xff] %v1524_v34   ;;  %v1129_v9 = vadd.f32 %v2124_v31, %v1100_v7  ;;  %v1101_v10 = vmax.f32 %v1057_v8, %v1079_v19 }
 0x16e   : > { %1550 = vst [vmem:[%s2137_s25 + $0x28] sm:$0xff] %v1519_v49   ;;  %v1127_v62 = vadd.f32 %v2124_v31, %v1098_v36  ;;  %v1099_v39 = vmax.f32 %v1055_v50, %v1077_v61 }
 0x16f   : > { %v1130_v23 = vadd.f32 %v2124_v31, %v1101_v10  ;;  %v1151_v41 = vmax.f32 %v1129_v9, 0.0 }
 0x170   : > { %v1128_v24 = vadd.f32 %v2124_v31, %v1099_v39  ;;  %v1645_v40 = vpop.f32.mrb[40].mxu0  ;;  %v1689_v63 = vpop.f32.mrb[40].mxu1  ;;  %v1149_v44 = vmax.f32 %v1127_v62, 0.0 }
 0x171   : > { %v1152_v0 = vmax.f32 %v1130_v23, 0.0  ;;  %v1060_v13 = vmax.f32 %v2120_v29, %v1645_v40  ;;  %v1082_v14 = vmax.f32 %v2122_v30, %v1689_v63  ;;  %v849_v42 = vpop.f32.mrb[41].mxu0  ;;  %v1025_v43 = vpop.f32.mrb[41].mxu1 }
 0x172   : > { %v1150_v53 = vmax.f32 %v1128_v24, 0.0  ;;  %v1058_v54 = vmax.f32 %v2104_v17, %v849_v42  ;;  %v1080_v45 = vmax.f32 %v2106_v18, %v1025_v43  ;;  %v1646_v11 = vpop.f32.mrb[42].mxu0  ;;  %v1690_v46 = vpop.f32.mrb[42].mxu1 }
 0x173   : > { %v1534_v12 = vpack.c.bf16 %v1152_v0, %v1151_v41  ;;  %v1104_v47 = vmax.f32 %v1060_v13, %v1082_v14  ;;  %v1061_v48 = vmax.f32 %v2126_v37, %v1646_v11  ;;  %v1083_v29 = vmax.f32 %v2128_v38, %v1690_v46  ;;  %v852_v51 = vpop.f32.mrb[43].mxu0  ;;  %v1028_v30 = vpop.f32.mrb[43].mxu1 }
 0x174   : > { %v1529_v52 = vpack.c.bf16 %v1150_v53, %v1149_v44  ;;  %v1102_v1 = vmax.f32 %v1058_v54, %v1080_v45  ;;  %v1059_v2 = vmax.f32 %v2112_v21, %v852_v51  ;;  %v1081_v17 = vmax.f32 %v2114_v22, %v1028_v30 }
 0x175   : > { %1553 = vst [vmem:[%s2137_s25 + $0x40] sm:$0xff] %v1534_v12   ;;  %v1133_v18 = vadd.f32 %v2124_v31, %v1104_v47  ;;  %v1105_v55 = vmax.f32 %v1061_v48, %v1083_v29 }
 0x176   : > { %1552 = vst [vmem:[%s2137_s25 + $0x38] sm:$0xff] %v1529_v52   ;;  %v1131_v56 = vadd.f32 %v2124_v31, %v1102_v1  ;;  %v1103_v37 = vmax.f32 %v1059_v2, %v1081_v17 }
 0x177   : > { %v1134_v38 = vadd.f32 %v2124_v31, %v1105_v55  ;;  %v1155_v16 = vmax.f32 %v1133_v18, 0.0 }
 0x178   : > { %v1132_v15 = vadd.f32 %v2124_v31, %v1103_v37  ;;  %v1153_v26 = vmax.f32 %v1131_v56, 0.0 }
 0x179   : > { %v1156_v25 = vmax.f32 %v1134_v38, 0.0 }
 0x17a   : > { %v1154_v21 = vmax.f32 %v1132_v15, 0.0 }
 0x17b   : > { %v1544_v3 = vpack.c.bf16 %v1156_v25, %v1155_v16 }
 0x17c   : > { %v1539_v27 = vpack.c.bf16 %v1154_v21, %v1153_v26 }
 0x17d   : > { %1555 = vst [vmem:[%s2137_s25 + $0x50] sm:$0xff] %v1544_v3  }
 0x17e   : > { %1554 = vst [vmem:[%s2137_s25 + $0x48] sm:$0xff] %v1539_v27  }
 0x17f PF: > { %s15_s12 = sadd.s32 1, %s1842_s12  }
 0x180   : > { %p12_p5 = scmp.ge.s32.totalorder %s15_s12, 4  }
 0x182   :  { %14 = sbr.rel (!%p12_p5) target bundleno = 2 (0x2), region = 71 }
 0x189   :  { %1288 = vsyncpa [#allocation3], 1 }
 0x18a   :  { %1290 = vsyncpa [#allocation3 + $0x1], 1 }
 0x18b   :  { %1291 = vsyncpa [#allocation5], 1 }

// kernel: lenet_forward.4
= control target key start
LH: loop header
LB: loop body
LE: loop exit
PB: predicated region body
PF: predicated region fallthrough
CT: control target
= control target key end

     0   :  { %s785_s12 = smov 0   ;;  %s911_s0 = inlined_call_operand.vmem [shape: bf16[2,128,225], index: 0, kind: input, shape index: {}]   ;;  %s912_s1 = inlined_call_operand.vmem [shape: bf16[225,128], index: 1, kind: input, shape index: {}]   ;;  %s913_s2 = inlined_call_operand.vmem [shape: f32[1,128], index: 2, kind: input, shape index: {}]   ;;  %s914_s3 = inlined_call_operand.vmem [shape: bf16[2,32,128], index: 3, kind: output, shape index: {}]  }
   0x1 LB: > { %s606_s13 = sadd.s32 4294967295, %s762_s12   ;;  %p610_p0 = scmp.ge.s32.totalorder %s762_s12, 1  ;;  %s762_s12 = sphi %s785_s12, %s13_s12  }
   0x2   : > { %p137_p1 = scmp.lt.s32.totalorder %s762_s12, 3 }
   0x4   : > { %p138_p2 = pnand %p610_p0, %p137_p1 }
   0x5   : > { %v717_v0 = vld [vmem:[%s912_s1] sm:$0xff] (!%p138_p2)   ;;  %v764_v1 = vmov (!%p138_p2), 0   ;;  %v718_v2 = vld [vmem:[%s912_s1 + $0x8] sm:$0xff] (!%p138_p2)   ;;  %p161_p3 = scmp.lt.s32.totalorder (!%p138_p2), %s606_s13, 1  ;;  %v719_v3 = vld [vmem:[%s912_s1 + $0x10] sm:$0xff] (!%p138_p2)   ;;  %vm376_vm0 = vcmask (!%p138_p2), 793600  }
   0x6   : > { %141 = sbr.rel (%p138_p2) target bundleno = 315 (0x13b), region = 32  ;;  %407 = vmatprep.subr.bf16.mxu0 (!%p138_p2), %v764_v1  ;;  %678 = vmatprep.subr.bf16.mxu1 (!%p138_p2), %v764_v1  ;;  %v720_v4 = vld [vmem:[%s912_s1 + $0x18] sm:$0xff] (!%p138_p2)   ;;  %v721_v5 = vld [vmem:[%s912_s1 + $0x20] sm:$0xff] (!%p138_p2)   ;;  %v722_v8 = vld [vmem:[%s912_s1 + $0x28] sm:$0xff] (!%p138_p2)   ;;  %vm401_vm1 = vcmask (!%p138_p2), 1040384  }
   0x7   : > { %408 = vmatpush1.bf16.msra.mxu0 (!%p138_p2), %v717_v0  ;;  %693 = vmatpush1.bf16.msra.mxu1 (!%p138_p2), %v717_v0  ;;  %v723_v9 = vld [vmem:[%s912_s1 + $0x30] sm:$0xff] (!%p138_p2)   ;;  %v724_v10 = vld [vmem:[%s912_s1 + $0x38] sm:$0xff] (!%p138_p2)   ;;  %v725_v11 = vld [vmem:[%s912_s1 + $0x40] sm:$0xff] (!%p138_p2)   ;;  %v403_v18 = vsel (!%p138_p2), %vm401_vm1, 65535, %v764_v1 }
   0x8   : > { %409 = vmatprep.subr.bf16.mxu0 (!%p138_p2), %v764_v1  ;;  %679 = vmatprep.subr.bf16.mxu1 (!%p138_p2), %v764_v1  ;;  %v726_v12 = vld [vmem:[%s912_s1 + $0x48] sm:$0xff] (!%p138_p2)   ;;  %v727_v13 = vld [vmem:[%s912_s1 + $0x50] sm:$0xff] (!%p138_p2)   ;;  %v728_v14 = vld [vmem:[%s912_s1 + $0x58] sm:$0xff] (!%p138_p2)  }
   0x9   : > { %v729_v15 = vld [vmem:[%s912_s1 + $0x60] sm:$0xff] (!%p138_p2)   ;;  %v730_v16 = vld [vmem:[%s912_s1 + $0x68] sm:$0xff] (!%p138_p2)   ;;  %v731_v17 = vld [vmem:[%s912_s1 + $0x70] ss:$0 sps:$4 sm:$0x11] (!%p138_p2)  }
   0xa   : > { %v405_v19 = vand.u32 (!%p138_p2), %v731_v17, %v403_v18  ;;  %v654_v56 = vld [vmem:[%s913_s2] ss:$0 sm:$0xff] (!%p138_p2) }
   0xb   : > { %410 = vmatpush1.bf16.msra.mxu0 (!%p138_p2), %v718_v2  ;;  %694 = vmatpush1.bf16.msra.mxu1 (!%p138_p2), %v718_v2 }
   0xc   : > { %411 = vmatprep.subr.bf16.mxu0 (!%p138_p2), %v764_v1  ;;  %680 = vmatprep.subr.bf16.mxu1 (!%p138_p2), %v764_v1 }
   0xd   : > { %s916_s13 = smov (!%p161_p3, %s606_s13), 1 }
   0xe   : > { %s661_s20 = sshll.u32 %s916_s13, 7 }
   0xf   : > { %412 = vmatpush1.bf16.msra.mxu0 %v719_v3  ;;  %695 = vmatpush1.bf16.msra.mxu1 %v719_v3  ;;  %s819_s25 = scalar_lea.vmem %s911_s0, %s661_s20 }
  0x10   : > { %413 = vmatprep.subr.bf16.mxu0 %v764_v1  ;;  %681 = vmatprep.subr.bf16.mxu1 %v764_v1  ;;  %v734_v6 = vld [vmem:[%s819_s25 + $0x4] ss:$8 sps:$4 sm:$0xff]   ;;  %v732_v20 = vld [vmem:[%s819_s25] ss:$8 sps:$4 sm:$0xff]   ;;  %v738_v22 = vld [vmem:[%s819_s25 + $0x14] ss:$8 sps:$4 sm:$0xff]  }
  0x11   : > { %646 = vmatprep.mubr.msk.bf16.mxu0 %vm376_vm0, %v734_v6  ;;  %v737_v7 = vld [vmem:[%s819_s25 + $0x44] ss:$8 sps:$4 sm:$0xff]   ;;  %v735_v21 = vld [vmem:[%s819_s25 + $0x40] ss:$8 sps:$4 sm:$0xff]   ;;  %v740_v23 = vld [vmem:[%s819_s25 + $0x54] ss:$8 sps:$4 sm:$0xff]  }
  0x12   : > { %650 = vmatprep.mubr.msk.bf16.mxu1 %vm376_vm0, %v737_v7  ;;  %v742_v24 = vld [vmem:[%s819_s25 + $0x10] ss:$8 sps:$4 sm:$0xff]   ;;  %v744_v26 = vld [vmem:[%s819_s25 + $0x24] ss:$8 sps:$4 sm:$0xff]   ;;  %v748_v28 = vld [vmem:[%s819_s25 + $0x20] ss:$8 sps:$4 sm:$0xff]  }
  0x13   : > { %414 = vmatpush1.bf16.msra.mxu0 %v720_v4  ;;  %696 = vmatpush1.bf16.msra.mxu1 %v720_v4  ;;  %v743_v25 = vld [vmem:[%s819_s25 + $0x50] ss:$8 sps:$4 sm:$0xff]   ;;  %v746_v27 = vld [vmem:[%s819_s25 + $0x64] ss:$8 sps:$4 sm:$0xff]   ;;  %v749_v29 = vld [vmem:[%s819_s25 + $0x60] ss:$8 sps:$4 sm:$0xff]  }
  0x14   : > { %415 = vmatprep.subr.bf16.mxu0 %v764_v1  ;;  %682 = vmatprep.subr.bf16.mxu1 %v764_v1  ;;  %v750_v30 = vld [vmem:[%s819_s25 + $0x34] ss:$8 sps:$4 sm:$0xff]   ;;  %v754_v32 = vld [vmem:[%s819_s25 + $0x30] ss:$8 sps:$4 sm:$0xff]  }
  0x15   : > { %v752_v31 = vld [vmem:[%s819_s25 + $0x74] ss:$8 sps:$4 sm:$0xff]   ;;  %v755_v33 = vld [vmem:[%s819_s25 + $0x70] ss:$8 sps:$4 sm:$0xff]   ;;  %s662_s25 = sshll.u32 %s916_s13, 4 }
  0x16   : > { %s170_s28 = scalar_lea.vmem %s914_s3, %s662_s25 }
  0x17   : > { %416 = vmatpush1.bf16.msra.mxu0 %v721_v5  ;;  %697 = vmatpush1.bf16.msra.mxu1 %v721_v5 }
  0x18   : > { %417 = vmatprep.subr.bf16.mxu0 %v764_v1  ;;  %683 = vmatprep.subr.bf16.mxu1 %v764_v1 }
  0x1b   : > { %418 = vmatpush1.bf16.msra.mxu0 %v722_v8  ;;  %698 = vmatpush1.bf16.msra.mxu1 %v722_v8 }
  0x1c   : > { %419 = vmatprep.subr.bf16.mxu0 %v764_v1  ;;  %684 = vmatprep.subr.bf16.mxu1 %v764_v1 }
  0x1f   : > { %420 = vmatpush1.bf16.msra.mxu0 %v723_v9  ;;  %699 = vmatpush1.bf16.msra.mxu1 %v723_v9 }
  0x20   : > { %421 = vmatprep.subr.bf16.mxu0 %v764_v1  ;;  %685 = vmatprep.subr.bf16.mxu1 %v764_v1 }
  0x23   : > { %422 = vmatpush1.bf16.msra.mxu0 %v724_v10  ;;  %700 = vmatpush1.bf16.msra.mxu1 %v724_v10 }
  0x24   : > { %423 = vmatprep.subr.bf16.mxu0 %v764_v1  ;;  %686 = vmatprep.subr.bf16.mxu1 %v764_v1 }
  0x27   : > { %424 = vmatpush1.bf16.msra.mxu0 %v725_v11  ;;  %701 = vmatpush1.bf16.msra.mxu1 %v725_v11 }
  0x28   : > { %425 = vmatprep.subr.bf16.mxu0 %v764_v1  ;;  %687 = vmatprep.subr.bf16.mxu1 %v764_v1 }
  0x2b   : > { %426 = vmatpush1.bf16.msra.mxu0 %v726_v12  ;;  %702 = vmatpush1.bf16.msra.mxu1 %v726_v12 }
  0x2c   : > { %427 = vmatprep.subr.bf16.mxu0 %v764_v1  ;;  %688 = vmatprep.subr.bf16.mxu1 %v764_v1 }
  0x2f   : > { %428 = vmatpush1.bf16.msra.mxu0 %v727_v13  ;;  %703 = vmatpush1.bf16.msra.mxu1 %v727_v13 }
  0x30   : > { %429 = vmatprep.subr.bf16.mxu0 %v764_v1  ;;  %689 = vmatprep.subr.bf16.mxu1 %v764_v1 }
  0x33   : > { %430 = vmatpush1.bf16.msra.mxu0 %v728_v14  ;;  %704 = vmatpush1.bf16.msra.mxu1 %v728_v14 }
  0x34   : > { %431 = vmatprep.subr.bf16.mxu0 %v764_v1  ;;  %690 = vmatprep.subr.bf16.mxu1 %v764_v1 }
  0x37   : > { %432 = vmatpush1.bf16.msra.mxu0 %v729_v15  ;;  %705 = vmatpush1.bf16.msra.mxu1 %v729_v15 }
  0x38   : > { %433 = vmatprep.subr.bf16.mxu0 %v764_v1  ;;  %691 = vmatprep.subr.bf16.mxu1 %v764_v1 }
  0x3b   : > { %434 = vmatpush1.bf16.msra.mxu0 %v730_v16  ;;  %706 = vmatpush1.bf16.msra.mxu1 %v730_v16 }
  0x3c   : > { %435 = vmatprep.subr.bf16.mxu0 %v764_v1  ;;  %692 = vmatprep.subr.bf16.mxu1 %v764_v1 }
  0x3f   : > { %436 = vmatpush1.bf16.msra.mxu0 %v405_v19  ;;  %707 = vmatpush1.bf16.msra.mxu1 %v405_v19 }
  0x42   : > { %440 = vmatmul.mubr.bf16.vlgmr.msra.gmra.mrb[0].mxu0 %v732_v20  ;;  %472 = vmatmul.mubr.bf16.vlgmr.msra.gmra.mrb[0].mxu1 %v735_v21 }
  0x43   : > { %647 = vmatprep.mubr.msk.bf16.mxu0 %vm376_vm0, %v738_v22  ;;  %651 = vmatprep.mubr.msk.bf16.mxu1 %vm376_vm0, %v740_v23 }
  0x4a   : > { %448 = vmatmul.mubr.bf16.gmra.mrb[4].mxu0 %v742_v24  ;;  %480 = vmatmul.mubr.bf16.gmra.mrb[4].mxu1 %v743_v25 }
  0x4b   : > { %648 = vmatprep.mubr.msk.bf16.mxu0 %vm376_vm0, %v744_v26  ;;  %652 = vmatprep.mubr.msk.bf16.mxu1 %vm376_vm0, %v746_v27 }
  0x52   : > { %456 = vmatmul.mubr.bf16.gmra.mrb[8].mxu0 %v748_v28  ;;  %488 = vmatmul.mubr.bf16.gmra.mrb[8].mxu1 %v749_v29 }
  0x53   : > { %649 = vmatprep.mubr.msk.bf16.mxu0 %vm376_vm0, %v750_v30  ;;  %653 = vmatprep.mubr.msk.bf16.mxu1 %vm376_vm0, %v752_v31 }
  0x5a   : > { %464 = vmatmul.mubr.bf16.gmra.mrb[12].mxu0 %v754_v32  ;;  %496 = vmatmul.mubr.bf16.gmra.mrb[12].mxu1 %v755_v33 }
 0x115   : > { %v441_v34 = vpop.f32.mrb[0].mxu0  ;;  %v473_v35 = vpop.f32.mrb[0].mxu1 }
 0x116   : > { %v443_v36 = vpop.f32.mrb[1].mxu0  ;;  %v475_v37 = vpop.f32.mrb[1].mxu1 }
 0x117   : > { %v444_v38 = vpop.f32.mrb[2].mxu0  ;;  %v476_v39 = vpop.f32.mrb[2].mxu1 }
 0x118   : > { %v446_v40 = vpop.f32.mrb[3].mxu0  ;;  %v478_v41 = vpop.f32.mrb[3].mxu1 }
 0x11d   : > { %v449_v42 = vpop.f32.mrb[4].mxu0  ;;  %v481_v43 = vpop.f32.mrb[4].mxu1 }
 0x11e   : > { %v451_v44 = vpop.f32.mrb[5].mxu0  ;;  %v483_v45 = vpop.f32.mrb[5].mxu1 }
 0x11f   : > { %v452_v46 = vpop.f32.mrb[6].mxu0  ;;  %v484_v47 = vpop.f32.mrb[6].mxu1 }
 0x120   : > { %v454_v48 = vpop.f32.mrb[7].mxu0  ;;  %v486_v49 = vpop.f32.mrb[7].mxu1 }
 0x125   : > { %v457_v50 = vpop.f32.mrb[8].mxu0  ;;  %v489_v51 = vpop.f32.mrb[8].mxu1 }
 0x126   : > { %v504_v52 = vmax.f32 %v441_v34, %v457_v50  ;;  %v508_v53 = vmax.f32 %v473_v35, %v489_v51  ;;  %v459_v54 = vpop.f32.mrb[9].mxu0  ;;  %v491_v55 = vpop.f32.mrb[9].mxu1 }
 0x127   : > { %v460_v57 = vpop.f32.mrb[10].mxu0  ;;  %v492_v58 = vpop.f32.mrb[10].mxu1 }
 0x128   : > { %v512_v59 = vmax.f32 %v504_v52, %v508_v53  ;;  %v505_v60 = vmax.f32 %v444_v38, %v460_v57  ;;  %v509_v61 = vmax.f32 %v476_v39, %v492_v58  ;;  %v462_v62 = vpop.f32.mrb[11].mxu0  ;;  %v494_v63 = vpop.f32.mrb[11].mxu1 }
 0x12a   : > { %v523_v0 = vadd.f32 %v654_v56, %v512_v59  ;;  %v513_v1 = vmax.f32 %v505_v60, %v509_v61 }
 0x12c   : > { %v524_v2 = vadd.f32 %v654_v56, %v513_v1  ;;  %v527_v5 = vmax.f32 %v523_v0, 0.0 }
 0x12d   : > { %v465_v3 = vpop.f32.mrb[12].mxu0  ;;  %v497_v4 = vpop.f32.mrb[12].mxu1 }
 0x12e   : > { %v528_v6 = vmax.f32 %v524_v2, 0.0  ;;  %v506_v7 = vmax.f32 %v449_v42, %v465_v3  ;;  %v510_v8 = vmax.f32 %v481_v43, %v497_v4  ;;  %v467_v9 = vpop.f32.mrb[13].mxu0  ;;  %v499_v10 = vpop.f32.mrb[13].mxu1 }
 0x12f   : > { %v468_v11 = vpop.f32.mrb[14].mxu0  ;;  %v500_v12 = vpop.f32.mrb[14].mxu1 }
 0x130   : > { %v670_v13 = vpack.c.bf16 %v528_v6, %v527_v5  ;;  %v514_v14 = vmax.f32 %v506_v7, %v510_v8  ;;  %v507_v15 = vmax.f32 %v452_v46, %v468_v11  ;;  %v511_v16 = vmax.f32 %v484_v47, %v500_v12  ;;  %v470_v17 = vpop.f32.mrb[15].mxu0  ;;  %v502_v18 = vpop.f32.mrb[15].mxu1 }
 0x132   : > { %671 = vst [vmem:[%s170_s28] sm:$0xff] %v670_v13   ;;  %v525_v19 = vadd.f32 %v654_v56, %v514_v14  ;;  %v515_v20 = vmax.f32 %v507_v15, %v511_v16 }
 0x134   : > { %v526_v21 = vadd.f32 %v654_v56, %v515_v20  ;;  %v529_v22 = vmax.f32 %v525_v19, 0.0 }
 0x136   : > { %v530_v23 = vmax.f32 %v526_v21, 0.0 }
 0x138   : > { %v675_v24 = vpack.c.bf16 %v530_v23, %v529_v22 }
 0x13a   : > { %677 = vst [vmem:[%s170_s28 + $0x8] sm:$0xff] %v675_v24  }
 0x13b PF: > { %s13_s12 = sadd.s32 1, %s762_s12  }
 0x13c   : > { %p10_p4 = scmp.ge.s32.totalorder %s13_s12, 4  }
 0x13e   :  { %12 = sbr.rel (!%p10_p4) target bundleno = 1 (0x1), region = 62 }

// kernel: lenet_forward.5
= control target key start
LH: loop header
LB: loop body
LE: loop exit
PB: predicated region body
PF: predicated region fallthrough
CT: control target
= control target key end

     0   :  { %14 = vsyncpa [#allocation5], 0  ;;  %s9667_s0 = inlined_call_operand.vmem [shape: bf16[2,1250], index: 0, kind: input, shape index: {}]   ;;  %s9668_s1 = inlined_call_operand.vmem [shape: bf16[1250,2048], index: 1, kind: input, shape index: {}]   ;;  %s9669_s2 = inlined_call_operand.vmem [shape: f32[1,2048], index: 2, kind: input, shape index: {}]   ;;  %s9670_s3 = inlined_call_operand.hbm [shape: bf16[2048,1024], index: 3, kind: input, shape index: {}]   ;;  %s9671_s4 = inlined_call_operand.vmem [shape: f32[1,1024], index: 4, kind: input, shape index: {}]   ;;  %s9672_s5 = inlined_call_operand.vmem [shape: bf16[1024,128], index: 5, kind: input, shape index: {}]   ;;  %s9673_s6 = inlined_call_operand.vmem [shape: f32[1,128], index: 6, kind: input, shape index: {}]   ;;  %s9674_s7 = inlined_call_operand.vmem [shape: bf16[128,128], index: 7, kind: input, shape index: {}]   ;;  %s9675_s8 = inlined_call_operand.vmem [shape: f32[1,128], index: 8, kind: input, shape index: {}]   ;;  %s9676_s9 = inlined_call_operand.hbm [shape: f32[2,128], index: 9, kind: output, shape index: {}]  }
   0x1   :  { %16 = vsyncpa [#allocation5 + $0x1], 0 }
   0x2   :  { %17 = vsyncpa [#allocation6], 0  ;;  %s7971_s30 = smov 0   ;;  %s7973_s10 = smov 0  }
   0x3   :  { %s7975_s11 = smov 0   ;;  %s7977_s12 = smov 0  }
   0x4 LB: > { %s7990_s13 = sadd.s32 4294967295, %s7910_s12   ;;  %s7993_s14 = sadd.s32 1, %s7910_s12   ;;  %s7910_s12 = sphi %s7977_s12, %s9682_s12   ;;  %s7906_s11 = sphi %s7975_s11, %s9681_s11   ;;  %s7902_s10 = sphi %s7973_s10, %s9680_s10   ;;  %s7898_s30 = sphi %s7971_s30, %s9679_s30  }
   0x5   : > { %s48_s15 = ssub.s32 %s7910_s12, %s7993_s14  ;;  %s51_s16 = sadd.s32 1, %s7906_s11 }
   0x6   : > { %p49_p0 = scmp.eq.s32.totalorder %s48_s15, 0  ;;  %p58_p1 = scmp.ne.s32.totalorder %s7906_s11, %s7902_s10 }
   0x7   : > { %p59_p2 = scmp.eq.s32.totalorder %s7910_s12, 0  ;;  %p116_p3 = scmp.ne.s32.totalorder %s7902_s10, %s7898_s30 }
   0x8   : > { %s8003_s17 = scalar_select %p49_p0, %s7906_s11, %s51_s16  }
   0x9   : > { %p8005_p4 = por %p59_p2, %p58_p1  ;;  %p117_p5 = scmp.eq.s32.totalorder %s7990_s13, 0 }
   0xa   : > { %p6384_p7 = scmp.ge.s32.totalorder %s7910_s12, 4 }
   0xb   : > { %p8010_p6 = por %p117_p5, %p116_p3 }
   0xc   : > { %280 = sbr.rel (%p6384_p7) target bundleno = 206 (0xce), region = 40 }
  0x13   : > { %283 = sbr.rel (!%p8005_p4) target bundleno = 180 (0xb4), region = 44  ;;  %s285_s20 = sand.u32 (%p8005_p4), 1, %s7906_s11  }
  0x14   : > { %s7051_s21 = sshll.u32 (%p8005_p4), %s7910_s12, 4  ;;  %s7223_s22 = smul.u32 (%p8005_p4), 2512, %s285_s20 }
  0x15   : > { %s8022_s25 = scalar_lea.vmem (%p8005_p4), %s9668_s1, %s7051_s21 }
  0x16   : > { %v303_v0 = vld [vmem:[%s8022_s25] sm:$0xff] (%p8005_p4)  ;;  %v305_v1 = vld [vmem:[%s8022_s25 + $0x8] sm:$0xff] (%p8005_p4)  ;;  %s8030_s26 = scalar_lea.vmem (%p8005_p4), [#allocation3], %s7223_s22 }
  0x17   : > { %v307_v2 = vld [vmem:[%s8022_s25 + $0x40] sm:$0xff] (%p8005_p4)  ;;  %v309_v3 = vld [vmem:[%s8022_s25 + $0x48] sm:$0xff] (%p8005_p4)  ;;  %304 = vst [vmem:[%s8030_s26] sm:$0xff] (%p8005_p4), %v303_v0  ;;  %306 = vst [vmem:[%s8030_s26 + $0x8] sm:$0xff] (%p8005_p4), %v305_v1 }
  0x18   : > { %v311_v4 = vld [vmem:[%s8022_s25 + $0x80] sm:$0xff] (%p8005_p4)  ;;  %v313_v5 = vld [vmem:[%s8022_s25 + $0x88] sm:$0xff] (%p8005_p4)  ;;  %308 = vst [vmem:[%s8030_s26 + $0x10] sm:$0xff] (%p8005_p4), %v307_v2  ;;  %310 = vst [vmem:[%s8030_s26 + $0x18] sm:$0xff] (%p8005_p4), %v309_v3 }
  0x19   : > { %312 = vst [vmem:[%s8030_s26 + $0x20] sm:$0xff] (%p8005_p4), %v311_v4  ;;  %314 = vst [vmem:[%s8030_s26 + $0x28] sm:$0xff] (%p8005_p4), %v313_v5  ;;  %v315_v6 = vld [vmem:[%s8022_s25 + $0xc0] sm:$0xff] (%p8005_p4)  ;;  %v317_v7 = vld [vmem:[%s8022_s25 + $0xc8] sm:$0xff] (%p8005_p4) }
  0x1a   : > { %v319_v8 = vld [vmem:[%s8022_s25 + $0x100] sm:$0xff]  ;;  %316 = vst [vmem:[%s8030_s26 + $0x30] sm:$0xff] %v315_v6  ;;  %318 = vst [vmem:[%s8030_s26 + $0x38] sm:$0xff] %v317_v7  ;;  %v321_v9 = vld [vmem:[%s8022_s25 + $0x108] sm:$0xff] }
  0x1b   : > { %320 = vst [vmem:[%s8030_s26 + $0x40] sm:$0xff] %v319_v8  ;;  %v323_v10 = vld [vmem:[%s8022_s25 + $0x140] sm:$0xff]  ;;  %v325_v11 = vld [vmem:[%s8022_s25 + $0x148] sm:$0xff]  ;;  %322 = vst [vmem:[%s8030_s26 + $0x48] sm:$0xff] %v321_v9 }
  0x1c   : > { %324 = vst [vmem:[%s8030_s26 + $0x50] sm:$0xff] %v323_v10  ;;  %326 = vst [vmem:[%s8030_s26 + $0x58] sm:$0xff] %v325_v11  ;;  %v327_v12 = vld [vmem:[%s8022_s25 + $0x180] sm:$0xff]  ;;  %v329_v13 = vld [vmem:[%s8022_s25 + $0x188] sm:$0xff] }
  0x1d   : > { %v331_v14 = vld [vmem:[%s8022_s25 + $0x1c0] sm:$0xff]  ;;  %328 = vst [vmem:[%s8030_s26 + $0x60] sm:$0xff] %v327_v12  ;;  %330 = vst [vmem:[%s8030_s26 + $0x68] sm:$0xff] %v329_v13  ;;  %v333_v15 = vld [vmem:[%s8022_s25 + $0x1c8] sm:$0xff] }
  0x1e   : > { %332 = vst [vmem:[%s8030_s26 + $0x70] sm:$0xff] %v331_v14  ;;  %v335_v16 = vld [vmem:[%s8022_s25 + $0x200] sm:$0xff]  ;;  %v337_v17 = vld [vmem:[%s8022_s25 + $0x208] sm:$0xff]  ;;  %334 = vst [vmem:[%s8030_s26 + $0x78] sm:$0xff] %v333_v15 }
  0x1f   : > { %336 = vst [vmem:[%s8030_s26 + $0x80] sm:$0xff] %v335_v16  ;;  %338 = vst [vmem:[%s8030_s26 + $0x88] sm:$0xff] %v337_v17  ;;  %v339_v18 = vld [vmem:[%s8022_s25 + $0x240] sm:$0xff]  ;;  %v341_v19 = vld [vmem:[%s8022_s25 + $0x248] sm:$0xff] }
  0x20   : > { %v343_v20 = vld [vmem:[%s8022_s25 + $0x280] sm:$0xff]  ;;  %340 = vst [vmem:[%s8030_s26 + $0x90] sm:$0xff] %v339_v18  ;;  %342 = vst [vmem:[%s8030_s26 + $0x98] sm:$0xff] %v341_v19  ;;  %v345_v21 = vld [vmem:[%s8022_s25 + $0x288] sm:$0xff] }
  0x21   : > { %344 = vst [vmem:[%s8030_s26 + $0xa0] sm:$0xff] %v343_v20  ;;  %v347_v22 = vld [vmem:[%s8022_s25 + $0x2c0] sm:$0xff]  ;;  %v349_v23 = vld [vmem:[%s8022_s25 + $0x2c8] sm:$0xff]  ;;  %346 = vst [vmem:[%s8030_s26 + $0xa8] sm:$0xff] %v345_v21 }
  0x22   : > { %348 = vst [vmem:[%s8030_s26 + $0xb0] sm:$0xff] %v347_v22  ;;  %350 = vst [vmem:[%s8030_s26 + $0xb8] sm:$0xff] %v349_v23  ;;  %v351_v24 = vld [vmem:[%s8022_s25 + $0x300] sm:$0xff]  ;;  %v353_v25 = vld [vmem:[%s8022_s25 + $0x308] sm:$0xff] }
  0x23   : > { %v355_v26 = vld [vmem:[%s8022_s25 + $0x340] sm:$0xff]  ;;  %352 = vst [vmem:[%s8030_s26 + $0xc0] sm:$0xff] %v351_v24  ;;  %354 = vst [vmem:[%s8030_s26 + $0xc8] sm:$0xff] %v353_v25  ;;  %v357_v27 = vld [vmem:[%s8022_s25 + $0x348] sm:$0xff] }
  0x24   : > { %356 = vst [vmem:[%s8030_s26 + $0xd0] sm:$0xff] %v355_v26  ;;  %v359_v28 = vld [vmem:[%s8022_s25 + $0x380] sm:$0xff]  ;;  %v361_v29 = vld [vmem:[%s8022_s25 + $0x388] sm:$0xff]  ;;  %358 = vst [vmem:[%s8030_s26 + $0xd8] sm:$0xff] %v357_v27 }
  0x25   : > { %360 = vst [vmem:[%s8030_s26 + $0xe0] sm:$0xff] %v359_v28  ;;  %362 = vst [vmem:[%s8030_s26 + $0xe8] sm:$0xff] %v361_v29  ;;  %v363_v30 = vld [vmem:[%s8022_s25 + $0x3c0] sm:$0xff]  ;;  %v365_v31 = vld [vmem:[%s8022_s25 + $0x3c8] sm:$0xff] }
  0x26   : > { %v367_v32 = vld [vmem:[%s8022_s25 + $0x400] sm:$0xff]  ;;  %364 = vst [vmem:[%s8030_s26 + $0xf0] sm:$0xff] %v363_v30  ;;  %366 = vst [vmem:[%s8030_s26 + $0xf8] sm:$0xff] %v365_v31  ;;  %v369_v33 = vld [vmem:[%s8022_s25 + $0x408] sm:$0xff] }
  0x27   : > { %368 = vst [vmem:[%s8030_s26 + $0x100] sm:$0xff] %v367_v32  ;;  %v371_v34 = vld [vmem:[%s8022_s25 + $0x440] sm:$0xff]  ;;  %v373_v35 = vld [vmem:[%s8022_s25 + $0x448] sm:$0xff]  ;;  %370 = vst [vmem:[%s8030_s26 + $0x108] sm:$0xff] %v369_v33 }
  0x28   : > { %372 = vst [vmem:[%s8030_s26 + $0x110] sm:$0xff] %v371_v34  ;;  %374 = vst [vmem:[%s8030_s26 + $0x118] sm:$0xff] %v373_v35  ;;  %v375_v36 = vld [vmem:[%s8022_s25 + $0x480] sm:$0xff]  ;;  %v377_v37 = vld [vmem:[%s8022_s25 + $0x488] sm:$0xff] }
  0x29   : > { %v379_v38 = vld [vmem:[%s8022_s25 + $0x4c0] sm:$0xff]  ;;  %376 = vst [vmem:[%s8030_s26 + $0x120] sm:$0xff] %v375_v36  ;;  %378 = vst [vmem:[%s8030_s26 + $0x128] sm:$0xff] %v377_v37  ;;  %v381_v39 = vld [vmem:[%s8022_s25 + $0x4c8] sm:$0xff] }
  0x2a   : > { %380 = vst [vmem:[%s8030_s26 + $0x130] sm:$0xff] %v379_v38  ;;  %v383_v40 = vld [vmem:[%s8022_s25 + $0x500] sm:$0xff]  ;;  %v385_v41 = vld [vmem:[%s8022_s25 + $0x508] sm:$0xff]  ;;  %382 = vst [vmem:[%s8030_s26 + $0x138] sm:$0xff] %v381_v39 }
  0x2b   : > { %384 = vst [vmem:[%s8030_s26 + $0x140] sm:$0xff] %v383_v40  ;;  %386 = vst [vmem:[%s8030_s26 + $0x148] sm:$0xff] %v385_v41  ;;  %v387_v42 = vld [vmem:[%s8022_s25 + $0x540] sm:$0xff]  ;;  %v389_v43 = vld [vmem:[%s8022_s25 + $0x548] sm:$0xff] }
  0x2c   : > { %v391_v44 = vld [vmem:[%s8022_s25 + $0x580] sm:$0xff]  ;;  %388 = vst [vmem:[%s8030_s26 + $0x150] sm:$0xff] %v387_v42  ;;  %390 = vst [vmem:[%s8030_s26 + $0x158] sm:$0xff] %v389_v43  ;;  %v393_v45 = vld [vmem:[%s8022_s25 + $0x588] sm:$0xff] }
  0x2d   : > { %392 = vst [vmem:[%s8030_s26 + $0x160] sm:$0xff] %v391_v44  ;;  %v395_v46 = vld [vmem:[%s8022_s25 + $0x5c0] sm:$0xff]  ;;  %v397_v47 = vld [vmem:[%s8022_s25 + $0x5c8] sm:$0xff]  ;;  %394 = vst [vmem:[%s8030_s26 + $0x168] sm:$0xff] %v393_v45 }
  0x2e   : > { %396 = vst [vmem:[%s8030_s26 + $0x170] sm:$0xff] %v395_v46  ;;  %398 = vst [vmem:[%s8030_s26 + $0x178] sm:$0xff] %v397_v47  ;;  %v399_v48 = vld [vmem:[%s8022_s25 + $0x600] sm:$0xff]  ;;  %v401_v49 = vld [vmem:[%s8022_s25 + $0x608] sm:$0xff] }
  0x2f   : > { %v403_v50 = vld [vmem:[%s8022_s25 + $0x640] sm:$0xff]  ;;  %400 = vst [vmem:[%s8030_s26 + $0x180] sm:$0xff] %v399_v48  ;;  %402 = vst [vmem:[%s8030_s26 + $0x188] sm:$0xff] %v401_v49  ;;  %v405_v51 = vld [vmem:[%s8022_s25 + $0x648] sm:$0xff] }
  0x30   : > { %404 = vst [vmem:[%s8030_s26 + $0x190] sm:$0xff] %v403_v50  ;;  %v407_v52 = vld [vmem:[%s8022_s25 + $0x680] sm:$0xff]  ;;  %v409_v53 = vld [vmem:[%s8022_s25 + $0x688] sm:$0xff]  ;;  %406 = vst [vmem:[%s8030_s26 + $0x198] sm:$0xff] %v405_v51 }
  0x31   : > { %408 = vst [vmem:[%s8030_s26 + $0x1a0] sm:$0xff] %v407_v52  ;;  %410 = vst [vmem:[%s8030_s26 + $0x1a8] sm:$0xff] %v409_v53  ;;  %v411_v54 = vld [vmem:[%s8022_s25 + $0x6c0] sm:$0xff]  ;;  %v413_v55 = vld [vmem:[%s8022_s25 + $0x6c8] sm:$0xff] }
  0x32   : > { %v415_v56 = vld [vmem:[%s8022_s25 + $0x700] sm:$0xff]  ;;  %412 = vst [vmem:[%s8030_s26 + $0x1b0] sm:$0xff] %v411_v54  ;;  %414 = vst [vmem:[%s8030_s26 + $0x1b8] sm:$0xff] %v413_v55  ;;  %v417_v57 = vld [vmem:[%s8022_s25 + $0x708] sm:$0xff] }
  0x33   : > { %416 = vst [vmem:[%s8030_s26 + $0x1c0] sm:$0xff] %v415_v56  ;;  %v419_v58 = vld [vmem:[%s8022_s25 + $0x740] sm:$0xff]  ;;  %v421_v59 = vld [vmem:[%s8022_s25 + $0x748] sm:$0xff]  ;;  %418 = vst [vmem:[%s8030_s26 + $0x1c8] sm:$0xff] %v417_v57 }
  0x34   : > { %420 = vst [vmem:[%s8030_s26 + $0x1d0] sm:$0xff] %v419_v58  ;;  %422 = vst [vmem:[%s8030_s26 + $0x1d8] sm:$0xff] %v421_v59  ;;  %v423_v60 = vld [vmem:[%s8022_s25 + $0x780] sm:$0xff]  ;;  %v425_v61 = vld [vmem:[%s8022_s25 + $0x788] sm:$0xff] }
  0x35   : > { %v427_v62 = vld [vmem:[%s8022_s25 + $0x7c0] sm:$0xff]  ;;  %424 = vst [vmem:[%s8030_s26 + $0x1e0] sm:$0xff] %v423_v60  ;;  %426 = vst [vmem:[%s8030_s26 + $0x1e8] sm:$0xff] %v425_v61  ;;  %v429_v63 = vld [vmem:[%s8022_s25 + $0x7c8] sm:$0xff] }
  0x36   : > { %428 = vst [vmem:[%s8030_s26 + $0x1f0] sm:$0xff] %v427_v62  ;;  %v431_v0 = vld [vmem:[%s8022_s25 + $0x800] sm:$0xff]  ;;  %v433_v1 = vld [vmem:[%s8022_s25 + $0x808] sm:$0xff]  ;;  %430 = vst [vmem:[%s8030_s26 + $0x1f8] sm:$0xff] %v429_v63 }
  0x37   : > { %432 = vst [vmem:[%s8030_s26 + $0x200] sm:$0xff] %v431_v0  ;;  %434 = vst [vmem:[%s8030_s26 + $0x208] sm:$0xff] %v433_v1  ;;  %v435_v2 = vld [vmem:[%s8022_s25 + $0x840] sm:$0xff]  ;;  %v437_v3 = vld [vmem:[%s8022_s25 + $0x848] sm:$0xff] }
  0x38   : > { %v439_v4 = vld [vmem:[%s8022_s25 + $0x880] sm:$0xff]  ;;  %436 = vst [vmem:[%s8030_s26 + $0x210] sm:$0xff] %v435_v2  ;;  %438 = vst [vmem:[%s8030_s26 + $0x218] sm:$0xff] %v437_v3  ;;  %v441_v5 = vld [vmem:[%s8022_s25 + $0x888] sm:$0xff] }
  0x39   : > { %440 = vst [vmem:[%s8030_s26 + $0x220] sm:$0xff] %v439_v4  ;;  %v443_v6 = vld [vmem:[%s8022_s25 + $0x8c0] sm:$0xff]  ;;  %v445_v7 = vld [vmem:[%s8022_s25 + $0x8c8] sm:$0xff]  ;;  %442 = vst [vmem:[%s8030_s26 + $0x228] sm:$0xff] %v441_v5 }
  0x3a   : > { %444 = vst [vmem:[%s8030_s26 + $0x230] sm:$0xff] %v443_v6  ;;  %446 = vst [vmem:[%s8030_s26 + $0x238] sm:$0xff] %v445_v7  ;;  %v447_v8 = vld [vmem:[%s8022_s25 + $0x900] sm:$0xff]  ;;  %v449_v9 = vld [vmem:[%s8022_s25 + $0x908] sm:$0xff] }
  0x3b   : > { %v451_v10 = vld [vmem:[%s8022_s25 + $0x940] sm:$0xff]  ;;  %448 = vst [vmem:[%s8030_s26 + $0x240] sm:$0xff] %v447_v8  ;;  %450 = vst [vmem:[%s8030_s26 + $0x248] sm:$0xff] %v449_v9  ;;  %v453_v11 = vld [vmem:[%s8022_s25 + $0x948] sm:$0xff] }
  0x3c   : > { %452 = vst [vmem:[%s8030_s26 + $0x250] sm:$0xff] %v451_v10  ;;  %v455_v12 = vld [vmem:[%s8022_s25 + $0x980] sm:$0xff]  ;;  %v457_v13 = vld [vmem:[%s8022_s25 + $0x988] sm:$0xff]  ;;  %454 = vst [vmem:[%s8030_s26 + $0x258] sm:$0xff] %v453_v11 }
  0x3d   : > { %456 = vst [vmem:[%s8030_s26 + $0x260] sm:$0xff] %v455_v12  ;;  %458 = vst [vmem:[%s8030_s26 + $0x268] sm:$0xff] %v457_v13  ;;  %v459_v14 = vld [vmem:[%s8022_s25 + $0x9c0] sm:$0xff]  ;;  %v461_v15 = vld [vmem:[%s8022_s25 + $0x9c8] sm:$0xff] }
  0x3e   : > { %v463_v16 = vld [vmem:[%s8022_s25 + $0xa00] sm:$0xff]  ;;  %460 = vst [vmem:[%s8030_s26 + $0x270] sm:$0xff] %v459_v14  ;;  %462 = vst [vmem:[%s8030_s26 + $0x278] sm:$0xff] %v461_v15  ;;  %v465_v17 = vld [vmem:[%s8022_s25 + $0xa08] sm:$0xff] }
  0x3f   : > { %464 = vst [vmem:[%s8030_s26 + $0x280] sm:$0xff] %v463_v16  ;;  %v467_v18 = vld [vmem:[%s8022_s25 + $0xa40] sm:$0xff]  ;;  %v469_v19 = vld [vmem:[%s8022_s25 + $0xa48] sm:$0xff]  ;;  %466 = vst [vmem:[%s8030_s26 + $0x288] sm:$0xff] %v465_v17 }
  0x40   : > { %468 = vst [vmem:[%s8030_s26 + $0x290] sm:$0xff] %v467_v18  ;;  %470 = vst [vmem:[%s8030_s26 + $0x298] sm:$0xff] %v469_v19  ;;  %v471_v20 = vld [vmem:[%s8022_s25 + $0xa80] sm:$0xff]  ;;  %v473_v21 = vld [vmem:[%s8022_s25 + $0xa88] sm:$0xff] }
  0x41   : > { %v475_v22 = vld [vmem:[%s8022_s25 + $0xac0] sm:$0xff]  ;;  %472 = vst [vmem:[%s8030_s26 + $0x2a0] sm:$0xff] %v471_v20  ;;  %474 = vst [vmem:[%s8030_s26 + $0x2a8] sm:$0xff] %v473_v21  ;;  %v477_v23 = vld [vmem:[%s8022_s25 + $0xac8] sm:$0xff] }
  0x42   : > { %476 = vst [vmem:[%s8030_s26 + $0x2b0] sm:$0xff] %v475_v22  ;;  %v479_v24 = vld [vmem:[%s8022_s25 + $0xb00] sm:$0xff]  ;;  %v481_v25 = vld [vmem:[%s8022_s25 + $0xb08] sm:$0xff]  ;;  %478 = vst [vmem:[%s8030_s26 + $0x2b8] sm:$0xff] %v477_v23 }
  0x43   : > { %480 = vst [vmem:[%s8030_s26 + $0x2c0] sm:$0xff] %v479_v24  ;;  %482 = vst [vmem:[%s8030_s26 + $0x2c8] sm:$0xff] %v481_v25  ;;  %v483_v26 = vld [vmem:[%s8022_s25 + $0xb40] sm:$0xff]  ;;  %v485_v27 = vld [vmem:[%s8022_s25 + $0xb48] sm:$0xff] }
  0x44   : > { %v487_v28 = vld [vmem:[%s8022_s25 + $0xb80] sm:$0xff]  ;;  %484 = vst [vmem:[%s8030_s26 + $0x2d0] sm:$0xff] %v483_v26  ;;  %486 = vst [vmem:[%s8030_s26 + $0x2d8] sm:$0xff] %v485_v27  ;;  %v489_v29 = vld [vmem:[%s8022_s25 + $0xb88] sm:$0xff] }
  0x45   : > { %488 = vst [vmem:[%s8030_s26 + $0x2e0] sm:$0xff] %v487_v28  ;;  %v491_v30 = vld [vmem:[%s8022_s25 + $0xbc0] sm:$0xff]  ;;  %v493_v31 = vld [vmem:[%s8022_s25 + $0xbc8] sm:$0xff]  ;;  %490 = vst [vmem:[%s8030_s26 + $0x2e8] sm:$0xff] %v489_v29 }
  0x46   : > { %492 = vst [vmem:[%s8030_s26 + $0x2f0] sm:$0xff] %v491_v30  ;;  %494 = vst [vmem:[%s8030_s26 + $0x2f8] sm:$0xff] %v493_v31  ;;  %v495_v32 = vld [vmem:[%s8022_s25 + $0xc00] sm:$0xff]  ;;  %v497_v33 = vld [vmem:[%s8022_s25 + $0xc08] sm:$0xff] }
  0x47   : > { %v499_v34 = vld [vmem:[%s8022_s25 + $0xc40] sm:$0xff]  ;;  %496 = vst [vmem:[%s8030_s26 + $0x300] sm:$0xff] %v495_v32  ;;  %498 = vst [vmem:[%s8030_s26 + $0x308] sm:$0xff] %v497_v33  ;;  %v501_v35 = vld [vmem:[%s8022_s25 + $0xc48] sm:$0xff] }
  0x48   : > { %500 = vst [vmem:[%s8030_s26 + $0x310] sm:$0xff] %v499_v34  ;;  %v503_v36 = vld [vmem:[%s8022_s25 + $0xc80] sm:$0xff]  ;;  %v505_v37 = vld [vmem:[%s8022_s25 + $0xc88] sm:$0xff]  ;;  %502 = vst [vmem:[%s8030_s26 + $0x318] sm:$0xff] %v501_v35 }
  0x49   : > { %504 = vst [vmem:[%s8030_s26 + $0x320] sm:$0xff] %v503_v36  ;;  %506 = vst [vmem:[%s8030_s26 + $0x328] sm:$0xff] %v505_v37  ;;  %v507_v38 = vld [vmem:[%s8022_s25 + $0xcc0] sm:$0xff]  ;;  %v509_v39 = vld [vmem:[%s8022_s25 + $0xcc8] sm:$0xff] }
  0x4a   : > { %v511_v40 = vld [vmem:[%s8022_s25 + $0xd00] sm:$0xff]  ;;  %508 = vst [vmem:[%s8030_s26 + $0x330] sm:$0xff] %v507_v38  ;;  %510 = vst [vmem:[%s8030_s26 + $0x338] sm:$0xff] %v509_v39  ;;  %v513_v41 = vld [vmem:[%s8022_s25 + $0xd08] sm:$0xff] }
  0x4b   : > { %512 = vst [vmem:[%s8030_s26 + $0x340] sm:$0xff] %v511_v40  ;;  %v515_v42 = vld [vmem:[%s8022_s25 + $0xd40] sm:$0xff]  ;;  %v517_v43 = vld [vmem:[%s8022_s25 + $0xd48] sm:$0xff]  ;;  %514 = vst [vmem:[%s8030_s26 + $0x348] sm:$0xff] %v513_v41 }
  0x4c   : > { %516 = vst [vmem:[%s8030_s26 + $0x350] sm:$0xff] %v515_v42  ;;  %518 = vst [vmem:[%s8030_s26 + $0x358] sm:$0xff] %v517_v43  ;;  %v519_v44 = vld [vmem:[%s8022_s25 + $0xd80] sm:$0xff]  ;;  %v521_v45 = vld [vmem:[%s8022_s25 + $0xd88] sm:$0xff] }
  0x4d   : > { %v523_v46 = vld [vmem:[%s8022_s25 + $0xdc0] sm:$0xff]  ;;  %520 = vst [vmem:[%s8030_s26 + $0x360] sm:$0xff] %v519_v44  ;;  %522 = vst [vmem:[%s8030_s26 + $0x368] sm:$0xff] %v521_v45  ;;  %v525_v47 = vld [vmem:[%s8022_s25 + $0xdc8] sm:$0xff] }
  0x4e   : > { %524 = vst [vmem:[%s8030_s26 + $0x370] sm:$0xff] %v523_v46  ;;  %v527_v48 = vld [vmem:[%s8022_s25 + $0xe00] sm:$0xff]  ;;  %v529_v49 = vld [vmem:[%s8022_s25 + $0xe08] sm:$0xff]  ;;  %526 = vst [vmem:[%s8030_s26 + $0x378] sm:$0xff] %v525_v47 }
  0x4f   : > { %528 = vst [vmem:[%s8030_s26 + $0x380] sm:$0xff] %v527_v48  ;;  %530 = vst [vmem:[%s8030_s26 + $0x388] sm:$0xff] %v529_v49  ;;  %v531_v50 = vld [vmem:[%s8022_s25 + $0xe40] sm:$0xff]  ;;  %v533_v51 = vld [vmem:[%s8022_s25 + $0xe48] sm:$0xff] }
  0x50   : > { %v535_v52 = vld [vmem:[%s8022_s25 + $0xe80] sm:$0xff]  ;;  %532 = vst [vmem:[%s8030_s26 + $0x390] sm:$0xff] %v531_v50  ;;  %534 = vst [vmem:[%s8030_s26 + $0x398] sm:$0xff] %v533_v51  ;;  %v537_v53 = vld [vmem:[%s8022_s25 + $0xe88] sm:$0xff] }
  0x51   : > { %536 = vst [vmem:[%s8030_s26 + $0x3a0] sm:$0xff] %v535_v52  ;;  %v539_v54 = vld [vmem:[%s8022_s25 + $0xec0] sm:$0xff]  ;;  %v541_v55 = vld [vmem:[%s8022_s25 + $0xec8] sm:$0xff]  ;;  %538 = vst [vmem:[%s8030_s26 + $0x3a8] sm:$0xff] %v537_v53 }
  0x52   : > { %540 = vst [vmem:[%s8030_s26 + $0x3b0] sm:$0xff] %v539_v54  ;;  %542 = vst [vmem:[%s8030_s26 + $0x3b8] sm:$0xff] %v541_v55  ;;  %v543_v56 = vld [vmem:[%s8022_s25 + $0xf00] sm:$0xff]  ;;  %v545_v57 = vld [vmem:[%s8022_s25 + $0xf08] sm:$0xff] }
  0x53   : > { %v547_v58 = vld [vmem:[%s8022_s25 + $0xf40] sm:$0xff]  ;;  %544 = vst [vmem:[%s8030_s26 + $0x3c0] sm:$0xff] %v543_v56  ;;  %546 = vst [vmem:[%s8030_s26 + $0x3c8] sm:$0xff] %v545_v57  ;;  %v549_v59 = vld [vmem:[%s8022_s25 + $0xf48] sm:$0xff] }
  0x54   : > { %548 = vst [vmem:[%s8030_s26 + $0x3d0] sm:$0xff] %v547_v58  ;;  %v551_v60 = vld [vmem:[%s8022_s25 + $0xf80] sm:$0xff]  ;;  %v553_v61 = vld [vmem:[%s8022_s25 + $0xf88] sm:$0xff]  ;;  %550 = vst [vmem:[%s8030_s26 + $0x3d8] sm:$0xff] %v549_v59 }
  0x55   : > { %552 = vst [vmem:[%s8030_s26 + $0x3e0] sm:$0xff] %v551_v60  ;;  %554 = vst [vmem:[%s8030_s26 + $0x3e8] sm:$0xff] %v553_v61  ;;  %v555_v62 = vld [vmem:[%s8022_s25 + $0xfc0] sm:$0xff]  ;;  %v557_v63 = vld [vmem:[%s8022_s25 + $0xfc8] sm:$0xff] }
  0x56   : > { %v559_v0 = vld [vmem:[%s8022_s25 + $0x1000] sm:$0xff]  ;;  %556 = vst [vmem:[%s8030_s26 + $0x3f0] sm:$0xff] %v555_v62  ;;  %558 = vst [vmem:[%s8030_s26 + $0x3f8] sm:$0xff] %v557_v63  ;;  %v561_v1 = vld [vmem:[%s8022_s25 + $0x1008] sm:$0xff] }
  0x57   : > { %560 = vst [vmem:[%s8030_s26 + $0x400] sm:$0xff] %v559_v0  ;;  %v563_v2 = vld [vmem:[%s8022_s25 + $0x1040] sm:$0xff]  ;;  %v565_v3 = vld [vmem:[%s8022_s25 + $0x1048] sm:$0xff]  ;;  %562 = vst [vmem:[%s8030_s26 + $0x408] sm:$0xff] %v561_v1 }
  0x58   : > { %564 = vst [vmem:[%s8030_s26 + $0x410] sm:$0xff] %v563_v2  ;;  %566 = vst [vmem:[%s8030_s26 + $0x418] sm:$0xff] %v565_v3  ;;  %v567_v4 = vld [vmem:[%s8022_s25 + $0x1080] sm:$0xff]  ;;  %v569_v5 = vld [vmem:[%s8022_s25 + $0x1088] sm:$0xff] }
  0x59   : > { %v571_v6 = vld [vmem:[%s8022_s25 + $0x10c0] sm:$0xff]  ;;  %568 = vst [vmem:[%s8030_s26 + $0x420] sm:$0xff] %v567_v4  ;;  %570 = vst [vmem:[%s8030_s26 + $0x428] sm:$0xff] %v569_v5  ;;  %v573_v7 = vld [vmem:[%s8022_s25 + $0x10c8] sm:$0xff] }
  0x5a   : > { %572 = vst [vmem:[%s8030_s26 + $0x430] sm:$0xff] %v571_v6  ;;  %v575_v8 = vld [vmem:[%s8022_s25 + $0x1100] sm:$0xff]  ;;  %v577_v9 = vld [vmem:[%s8022_s25 + $0x1108] sm:$0xff]  ;;  %574 = vst [vmem:[%s8030_s26 + $0x438] sm:$0xff] %v573_v7 }
  0x5b   : > { %576 = vst [vmem:[%s8030_s26 + $0x440] sm:$0xff] %v575_v8  ;;  %578 = vst [vmem:[%s8030_s26 + $0x448] sm:$0xff] %v577_v9  ;;  %v579_v10 = vld [vmem:[%s8022_s25 + $0x1140] sm:$0xff]  ;;  %v581_v11 = vld [vmem:[%s8022_s25 + $0x1148] sm:$0xff] }
  0x5c   : > { %v583_v12 = vld [vmem:[%s8022_s25 + $0x1180] sm:$0xff]  ;;  %580 = vst [vmem:[%s8030_s26 + $0x450] sm:$0xff] %v579_v10  ;;  %582 = vst [vmem:[%s8030_s26 + $0x458] sm:$0xff] %v581_v11  ;;  %v585_v13 = vld [vmem:[%s8022_s25 + $0x1188] sm:$0xff] }
  0x5d   : > { %584 = vst [vmem:[%s8030_s26 + $0x460] sm:$0xff] %v583_v12  ;;  %v587_v14 = vld [vmem:[%s8022_s25 + $0x11c0] sm:$0xff]  ;;  %v589_v15 = vld [vmem:[%s8022_s25 + $0x11c8] sm:$0xff]  ;;  %586 = vst [vmem:[%s8030_s26 + $0x468] sm:$0xff] %v585_v13 }
  0x5e   : > { %588 = vst [vmem:[%s8030_s26 + $0x470] sm:$0xff] %v587_v14  ;;  %590 = vst [vmem:[%s8030_s26 + $0x478] sm:$0xff] %v589_v15  ;;  %v591_v16 = vld [vmem:[%s8022_s25 + $0x1200] sm:$0xff]  ;;  %v593_v17 = vld [vmem:[%s8022_s25 + $0x1208] sm:$0xff] }
  0x5f   : > { %v595_v18 = vld [vmem:[%s8022_s25 + $0x1240] sm:$0xff]  ;;  %592 = vst [vmem:[%s8030_s26 + $0x480] sm:$0xff] %v591_v16  ;;  %594 = vst [vmem:[%s8030_s26 + $0x488] sm:$0xff] %v593_v17  ;;  %v597_v19 = vld [vmem:[%s8022_s25 + $0x1248] sm:$0xff] }
  0x60   : > { %596 = vst [vmem:[%s8030_s26 + $0x490] sm:$0xff] %v595_v18  ;;  %v599_v20 = vld [vmem:[%s8022_s25 + $0x1280] sm:$0xff]  ;;  %v601_v21 = vld [vmem:[%s8022_s25 + $0x1288] sm:$0xff]  ;;  %598 = vst [vmem:[%s8030_s26 + $0x498] sm:$0xff] %v597_v19 }
  0x61   : > { %600 = vst [vmem:[%s8030_s26 + $0x4a0] sm:$0xff] %v599_v20  ;;  %602 = vst [vmem:[%s8030_s26 + $0x4a8] sm:$0xff] %v601_v21  ;;  %v603_v22 = vld [vmem:[%s8022_s25 + $0x12c0] sm:$0xff]  ;;  %v605_v23 = vld [vmem:[%s8022_s25 + $0x12c8] sm:$0xff] }
  0x62   : > { %v607_v24 = vld [vmem:[%s8022_s25 + $0x1300] sm:$0xff]  ;;  %604 = vst [vmem:[%s8030_s26 + $0x4b0] sm:$0xff] %v603_v22  ;;  %606 = vst [vmem:[%s8030_s26 + $0x4b8] sm:$0xff] %v605_v23  ;;  %v609_v25 = vld [vmem:[%s8022_s25 + $0x1308] sm:$0xff] }
  0x63   : > { %608 = vst [vmem:[%s8030_s26 + $0x4c0] sm:$0xff] %v607_v24  ;;  %v611_v26 = vld [vmem:[%s8022_s25 + $0x1340] sm:$0xff]  ;;  %v613_v27 = vld [vmem:[%s8022_s25 + $0x1348] sm:$0xff]  ;;  %610 = vst [vmem:[%s8030_s26 + $0x4c8] sm:$0xff] %v609_v25 }
  0x64   : > { %612 = vst [vmem:[%s8030_s26 + $0x4d0] sm:$0xff] %v611_v26  ;;  %614 = vst [vmem:[%s8030_s26 + $0x4d8] sm:$0xff] %v613_v27  ;;  %v615_v28 = vld [vmem:[%s8022_s25 + $0x1380] sm:$0xff]  ;;  %v617_v29 = vld [vmem:[%s8022_s25 + $0x1388] sm:$0xff] }
  0x65   : > { %v619_v30 = vld [vmem:[%s8022_s25 + $0x13c0] sm:$0xff]  ;;  %616 = vst [vmem:[%s8030_s26 + $0x4e0] sm:$0xff] %v615_v28  ;;  %618 = vst [vmem:[%s8030_s26 + $0x4e8] sm:$0xff] %v617_v29  ;;  %v621_v31 = vld [vmem:[%s8022_s25 + $0x13c8] sm:$0xff] }
  0x66   : > { %620 = vst [vmem:[%s8030_s26 + $0x4f0] sm:$0xff] %v619_v30  ;;  %v623_v32 = vld [vmem:[%s8022_s25 + $0x1400] sm:$0xff]  ;;  %v625_v33 = vld [vmem:[%s8022_s25 + $0x1408] sm:$0xff]  ;;  %622 = vst [vmem:[%s8030_s26 + $0x4f8] sm:$0xff] %v621_v31 }
  0x67   : > { %624 = vst [vmem:[%s8030_s26 + $0x500] sm:$0xff] %v623_v32  ;;  %626 = vst [vmem:[%s8030_s26 + $0x508] sm:$0xff] %v625_v33  ;;  %v627_v34 = vld [vmem:[%s8022_s25 + $0x1440] sm:$0xff]  ;;  %v629_v35 = vld [vmem:[%s8022_s25 + $0x1448] sm:$0xff] }
  0x68   : > { %v631_v36 = vld [vmem:[%s8022_s25 + $0x1480] sm:$0xff]  ;;  %628 = vst [vmem:[%s8030_s26 + $0x510] sm:$0xff] %v627_v34  ;;  %630 = vst [vmem:[%s8030_s26 + $0x518] sm:$0xff] %v629_v35  ;;  %v633_v37 = vld [vmem:[%s8022_s25 + $0x1488] sm:$0xff] }
  0x69   : > { %632 = vst [vmem:[%s8030_s26 + $0x520] sm:$0xff] %v631_v36  ;;  %v635_v38 = vld [vmem:[%s8022_s25 + $0x14c0] sm:$0xff]  ;;  %v637_v39 = vld [vmem:[%s8022_s25 + $0x14c8] sm:$0xff]  ;;  %634 = vst [vmem:[%s8030_s26 + $0x528] sm:$0xff] %v633_v37 }
  0x6a   : > { %636 = vst [vmem:[%s8030_s26 + $0x530] sm:$0xff] %v635_v38  ;;  %638 = vst [vmem:[%s8030_s26 + $0x538] sm:$0xff] %v637_v39  ;;  %v639_v40 = vld [vmem:[%s8022_s25 + $0x1500] sm:$0xff]  ;;  %v641_v41 = vld [vmem:[%s8022_s25 + $0x1508] sm:$0xff] }
  0x6b   : > { %v643_v42 = vld [vmem:[%s8022_s25 + $0x1540] sm:$0xff]  ;;  %640 = vst [vmem:[%s8030_s26 + $0x540] sm:$0xff] %v639_v40  ;;  %642 = vst [vmem:[%s8030_s26 + $0x548] sm:$0xff] %v641_v41  ;;  %v645_v43 = vld [vmem:[%s8022_s25 + $0x1548] sm:$0xff] }
  0x6c   : > { %644 = vst [vmem:[%s8030_s26 + $0x550] sm:$0xff] %v643_v42  ;;  %v647_v44 = vld [vmem:[%s8022_s25 + $0x1580] sm:$0xff]  ;;  %v649_v45 = vld [vmem:[%s8022_s25 + $0x1588] sm:$0xff]  ;;  %646 = vst [vmem:[%s8030_s26 + $0x558] sm:$0xff] %v645_v43 }
  0x6d   : > { %648 = vst [vmem:[%s8030_s26 + $0x560] sm:$0xff] %v647_v44  ;;  %650 = vst [vmem:[%s8030_s26 + $0x568] sm:$0xff] %v649_v45  ;;  %v651_v46 = vld [vmem:[%s8022_s25 + $0x15c0] sm:$0xff]  ;;  %v653_v47 = vld [vmem:[%s8022_s25 + $0x15c8] sm:$0xff] }
  0x6e   : > { %v655_v48 = vld [vmem:[%s8022_s25 + $0x1600] sm:$0xff]  ;;  %652 = vst [vmem:[%s8030_s26 + $0x570] sm:$0xff] %v651_v46  ;;  %654 = vst [vmem:[%s8030_s26 + $0x578] sm:$0xff] %v653_v47  ;;  %v657_v49 = vld [vmem:[%s8022_s25 + $0x1608] sm:$0xff] }
  0x6f   : > { %656 = vst [vmem:[%s8030_s26 + $0x580] sm:$0xff] %v655_v48  ;;  %v659_v50 = vld [vmem:[%s8022_s25 + $0x1640] sm:$0xff]  ;;  %v661_v51 = vld [vmem:[%s8022_s25 + $0x1648] sm:$0xff]  ;;  %658 = vst [vmem:[%s8030_s26 + $0x588] sm:$0xff] %v657_v49 }
  0x70   : > { %660 = vst [vmem:[%s8030_s26 + $0x590] sm:$0xff] %v659_v50  ;;  %662 = vst [vmem:[%s8030_s26 + $0x598] sm:$0xff] %v661_v51  ;;  %v663_v52 = vld [vmem:[%s8022_s25 + $0x1680] sm:$0xff]  ;;  %v665_v53 = vld [vmem:[%s8022_s25 + $0x1688] sm:$0xff] }
  0x71   : > { %v667_v54 = vld [vmem:[%s8022_s25 + $0x16c0] sm:$0xff]  ;;  %664 = vst [vmem:[%s8030_s26 + $0x5a0] sm:$0xff] %v663_v52  ;;  %666 = vst [vmem:[%s8030_s26 + $0x5a8] sm:$0xff] %v665_v53  ;;  %v669_v55 = vld [vmem:[%s8022_s25 + $0x16c8] sm:$0xff] }
  0x72   : > { %668 = vst [vmem:[%s8030_s26 + $0x5b0] sm:$0xff] %v667_v54  ;;  %v671_v56 = vld [vmem:[%s8022_s25 + $0x1700] sm:$0xff]  ;;  %v673_v57 = vld [vmem:[%s8022_s25 + $0x1708] sm:$0xff]  ;;  %670 = vst [vmem:[%s8030_s26 + $0x5b8] sm:$0xff] %v669_v55 }
  0x73   : > { %672 = vst [vmem:[%s8030_s26 + $0x5c0] sm:$0xff] %v671_v56  ;;  %674 = vst [vmem:[%s8030_s26 + $0x5c8] sm:$0xff] %v673_v57  ;;  %v675_v58 = vld [vmem:[%s8022_s25 + $0x1740] sm:$0xff]  ;;  %v677_v59 = vld [vmem:[%s8022_s25 + $0x1748] sm:$0xff] }
  0x74   : > { %v679_v60 = vld [vmem:[%s8022_s25 + $0x1780] sm:$0xff]  ;;  %676 = vst [vmem:[%s8030_s26 + $0x5d0] sm:$0xff] %v675_v58  ;;  %678 = vst [vmem:[%s8030_s26 + $0x5d8] sm:$0xff] %v677_v59  ;;  %v681_v61 = vld [vmem:[%s8022_s25 + $0x1788] sm:$0xff] }
  0x75   : > { %680 = vst [vmem:[%s8030_s26 + $0x5e0] sm:$0xff] %v679_v60  ;;  %v683_v62 = vld [vmem:[%s8022_s25 + $0x17c0] sm:$0xff]  ;;  %v685_v63 = vld [vmem:[%s8022_s25 + $0x17c8] sm:$0xff]  ;;  %682 = vst [vmem:[%s8030_s26 + $0x5e8] sm:$0xff] %v681_v61 }
  0x76   : > { %684 = vst [vmem:[%s8030_s26 + $0x5f0] sm:$0xff] %v683_v62  ;;  %686 = vst [vmem:[%s8030_s26 + $0x5f8] sm:$0xff] %v685_v63  ;;  %v687_v0 = vld [vmem:[%s8022_s25 + $0x1800] sm:$0xff]  ;;  %v689_v1 = vld [vmem:[%s8022_s25 + $0x1808] sm:$0xff] }
  0x77   : > { %v691_v2 = vld [vmem:[%s8022_s25 + $0x1840] sm:$0xff]  ;;  %688 = vst [vmem:[%s8030_s26 + $0x600] sm:$0xff] %v687_v0  ;;  %690 = vst [vmem:[%s8030_s26 + $0x608] sm:$0xff] %v689_v1  ;;  %v693_v3 = vld [vmem:[%s8022_s25 + $0x1848] sm:$0xff] }
  0x78   : > { %692 = vst [vmem:[%s8030_s26 + $0x610] sm:$0xff] %v691_v2  ;;  %v695_v4 = vld [vmem:[%s8022_s25 + $0x1880] sm:$0xff]  ;;  %v697_v5 = vld [vmem:[%s8022_s25 + $0x1888] sm:$0xff]  ;;  %694 = vst [vmem:[%s8030_s26 + $0x618] sm:$0xff] %v693_v3 }
  0x79   : > { %696 = vst [vmem:[%s8030_s26 + $0x620] sm:$0xff] %v695_v4  ;;  %698 = vst [vmem:[%s8030_s26 + $0x628] sm:$0xff] %v697_v5  ;;  %v699_v6 = vld [vmem:[%s8022_s25 + $0x18c0] sm:$0xff]  ;;  %v701_v7 = vld [vmem:[%s8022_s25 + $0x18c8] sm:$0xff] }
  0x7a   : > { %v703_v8 = vld [vmem:[%s8022_s25 + $0x1900] sm:$0xff]  ;;  %700 = vst [vmem:[%s8030_s26 + $0x630] sm:$0xff] %v699_v6  ;;  %702 = vst [vmem:[%s8030_s26 + $0x638] sm:$0xff] %v701_v7  ;;  %v705_v9 = vld [vmem:[%s8022_s25 + $0x1908] sm:$0xff] }
  0x7b   : > { %704 = vst [vmem:[%s8030_s26 + $0x640] sm:$0xff] %v703_v8  ;;  %v707_v10 = vld [vmem:[%s8022_s25 + $0x1940] sm:$0xff]  ;;  %v709_v11 = vld [vmem:[%s8022_s25 + $0x1948] sm:$0xff]  ;;  %706 = vst [vmem:[%s8030_s26 + $0x648] sm:$0xff] %v705_v9 }
  0x7c   : > { %708 = vst [vmem:[%s8030_s26 + $0x650] sm:$0xff] %v707_v10  ;;  %710 = vst [vmem:[%s8030_s26 + $0x658] sm:$0xff] %v709_v11  ;;  %v711_v12 = vld [vmem:[%s8022_s25 + $0x1980] sm:$0xff]  ;;  %v713_v13 = vld [vmem:[%s8022_s25 + $0x1988] sm:$0xff] }
  0x7d   : > { %v715_v14 = vld [vmem:[%s8022_s25 + $0x19c0] sm:$0xff]  ;;  %712 = vst [vmem:[%s8030_s26 + $0x660] sm:$0xff] %v711_v12  ;;  %714 = vst [vmem:[%s8030_s26 + $0x668] sm:$0xff] %v713_v13  ;;  %v717_v15 = vld [vmem:[%s8022_s25 + $0x19c8] sm:$0xff] }
  0x7e   : > { %716 = vst [vmem:[%s8030_s26 + $0x670] sm:$0xff] %v715_v14  ;;  %v719_v16 = vld [vmem:[%s8022_s25 + $0x1a00] sm:$0xff]  ;;  %v721_v17 = vld [vmem:[%s8022_s25 + $0x1a08] sm:$0xff]  ;;  %718 = vst [vmem:[%s8030_s26 + $0x678] sm:$0xff] %v717_v15 }
  0x7f   : > { %720 = vst [vmem:[%s8030_s26 + $0x680] sm:$0xff] %v719_v16  ;;  %722 = vst [vmem:[%s8030_s26 + $0x688] sm:$0xff] %v721_v17  ;;  %v723_v18 = vld [vmem:[%s8022_s25 + $0x1a40] sm:$0xff]  ;;  %v725_v19 = vld [vmem:[%s8022_s25 + $0x1a48] sm:$0xff] }
  0x80   : > { %v727_v20 = vld [vmem:[%s8022_s25 + $0x1a80] sm:$0xff]  ;;  %724 = vst [vmem:[%s8030_s26 + $0x690] sm:$0xff] %v723_v18  ;;  %726 = vst [vmem:[%s8030_s26 + $0x698] sm:$0xff] %v725_v19  ;;  %v729_v21 = vld [vmem:[%s8022_s25 + $0x1a88] sm:$0xff] }
  0x81   : > { %728 = vst [vmem:[%s8030_s26 + $0x6a0] sm:$0xff] %v727_v20  ;;  %v731_v22 = vld [vmem:[%s8022_s25 + $0x1ac0] sm:$0xff]  ;;  %v733_v23 = vld [vmem:[%s8022_s25 + $0x1ac8] sm:$0xff]  ;;  %730 = vst [vmem:[%s8030_s26 + $0x6a8] sm:$0xff] %v729_v21 }
  0x82   : > { %732 = vst [vmem:[%s8030_s26 + $0x6b0] sm:$0xff] %v731_v22  ;;  %734 = vst [vmem:[%s8030_s26 + $0x6b8] sm:$0xff] %v733_v23  ;;  %v735_v24 = vld [vmem:[%s8022_s25 + $0x1b00] sm:$0xff]  ;;  %v737_v25 = vld [vmem:[%s8022_s25 + $0x1b08] sm:$0xff] }
  0x83   : > { %v739_v26 = vld [vmem:[%s8022_s25 + $0x1b40] sm:$0xff]  ;;  %736 = vst [vmem:[%s8030_s26 + $0x6c0] sm:$0xff] %v735_v24  ;;  %738 = vst [vmem:[%s8030_s26 + $0x6c8] sm:$0xff] %v737_v25  ;;  %v741_v27 = vld [vmem:[%s8022_s25 + $0x1b48] sm:$0xff] }
  0x84   : > { %740 = vst [vmem:[%s8030_s26 + $0x6d0] sm:$0xff] %v739_v26  ;;  %v743_v28 = vld [vmem:[%s8022_s25 + $0x1b80] sm:$0xff]  ;;  %v745_v29 = vld [vmem:[%s8022_s25 + $0x1b88] sm:$0xff]  ;;  %742 = vst [vmem:[%s8030_s26 + $0x6d8] sm:$0xff] %v741_v27 }
  0x85   : > { %744 = vst [vmem:[%s8030_s26 + $0x6e0] sm:$0xff] %v743_v28  ;;  %746 = vst [vmem:[%s8030_s26 + $0x6e8] sm:$0xff] %v745_v29  ;;  %v747_v30 = vld [vmem:[%s8022_s25 + $0x1bc0] sm:$0xff]  ;;  %v749_v31 = vld [vmem:[%s8022_s25 + $0x1bc8] sm:$0xff] }
  0x86   : > { %v751_v32 = vld [vmem:[%s8022_s25 + $0x1c00] sm:$0xff]  ;;  %748 = vst [vmem:[%s8030_s26 + $0x6f0] sm:$0xff] %v747_v30  ;;  %750 = vst [vmem:[%s8030_s26 + $0x6f8] sm:$0xff] %v749_v31  ;;  %v753_v33 = vld [vmem:[%s8022_s25 + $0x1c08] sm:$0xff] }
  0x87   : > { %752 = vst [vmem:[%s8030_s26 + $0x700] sm:$0xff] %v751_v32  ;;  %v755_v34 = vld [vmem:[%s8022_s25 + $0x1c40] sm:$0xff]  ;;  %v757_v35 = vld [vmem:[%s8022_s25 + $0x1c48] sm:$0xff]  ;;  %754 = vst [vmem:[%s8030_s26 + $0x708] sm:$0xff] %v753_v33 }
  0x88   : > { %756 = vst [vmem:[%s8030_s26 + $0x710] sm:$0xff] %v755_v34  ;;  %758 = vst [vmem:[%s8030_s26 + $0x718] sm:$0xff] %v757_v35  ;;  %v759_v36 = vld [vmem:[%s8022_s25 + $0x1c80] sm:$0xff]  ;;  %v761_v37 = vld [vmem:[%s8022_s25 + $0x1c88] sm:$0xff] }
  0x89   : > { %v763_v38 = vld [vmem:[%s8022_s25 + $0x1cc0] sm:$0xff]  ;;  %760 = vst [vmem:[%s8030_s26 + $0x720] sm:$0xff] %v759_v36  ;;  %762 = vst [vmem:[%s8030_s26 + $0x728] sm:$0xff] %v761_v37  ;;  %v765_v39 = vld [vmem:[%s8022_s25 + $0x1cc8] sm:$0xff] }
  0x8a   : > { %764 = vst [vmem:[%s8030_s26 + $0x730] sm:$0xff] %v763_v38  ;;  %v767_v40 = vld [vmem:[%s8022_s25 + $0x1d00] sm:$0xff]  ;;  %v769_v41 = vld [vmem:[%s8022_s25 + $0x1d08] sm:$0xff]  ;;  %766 = vst [vmem:[%s8030_s26 + $0x738] sm:$0xff] %v765_v39 }
  0x8b   : > { %768 = vst [vmem:[%s8030_s26 + $0x740] sm:$0xff] %v767_v40  ;;  %770 = vst [vmem:[%s8030_s26 + $0x748] sm:$0xff] %v769_v41  ;;  %v771_v42 = vld [vmem:[%s8022_s25 + $0x1d40] sm:$0xff]  ;;  %v773_v43 = vld [vmem:[%s8022_s25 + $0x1d48] sm:$0xff] }
  0x8c   : > { %v775_v44 = vld [vmem:[%s8022_s25 + $0x1d80] sm:$0xff]  ;;  %772 = vst [vmem:[%s8030_s26 + $0x750] sm:$0xff] %v771_v42  ;;  %774 = vst [vmem:[%s8030_s26 + $0x758] sm:$0xff] %v773_v43  ;;  %v777_v45 = vld [vmem:[%s8022_s25 + $0x1d88] sm:$0xff] }
  0x8d   : > { %776 = vst [vmem:[%s8030_s26 + $0x760] sm:$0xff] %v775_v44  ;;  %v779_v46 = vld [vmem:[%s8022_s25 + $0x1dc0] sm:$0xff]  ;;  %v781_v47 = vld [vmem:[%s8022_s25 + $0x1dc8] sm:$0xff]  ;;  %778 = vst [vmem:[%s8030_s26 + $0x768] sm:$0xff] %v777_v45 }
  0x8e   : > { %780 = vst [vmem:[%s8030_s26 + $0x770] sm:$0xff] %v779_v46  ;;  %782 = vst [vmem:[%s8030_s26 + $0x778] sm:$0xff] %v781_v47  ;;  %v783_v48 = vld [vmem:[%s8022_s25 + $0x1e00] sm:$0xff]  ;;  %v785_v49 = vld [vmem:[%s8022_s25 + $0x1e08] sm:$0xff] }
  0x8f   : > { %v787_v50 = vld [vmem:[%s8022_s25 + $0x1e40] sm:$0xff]  ;;  %784 = vst [vmem:[%s8030_s26 + $0x780] sm:$0xff] %v783_v48  ;;  %786 = vst [vmem:[%s8030_s26 + $0x788] sm:$0xff] %v785_v49  ;;  %v789_v51 = vld [vmem:[%s8022_s25 + $0x1e48] sm:$0xff] }
  0x90   : > { %788 = vst [vmem:[%s8030_s26 + $0x790] sm:$0xff] %v787_v50  ;;  %v791_v52 = vld [vmem:[%s8022_s25 + $0x1e80] sm:$0xff]  ;;  %v793_v53 = vld [vmem:[%s8022_s25 + $0x1e88] sm:$0xff]  ;;  %790 = vst [vmem:[%s8030_s26 + $0x798] sm:$0xff] %v789_v51 }
  0x91   : > { %792 = vst [vmem:[%s8030_s26 + $0x7a0] sm:$0xff] %v791_v52  ;;  %794 = vst [vmem:[%s8030_s26 + $0x7a8] sm:$0xff] %v793_v53  ;;  %v795_v54 = vld [vmem:[%s8022_s25 + $0x1ec0] sm:$0xff]  ;;  %v797_v55 = vld [vmem:[%s8022_s25 + $0x1ec8] sm:$0xff] }
  0x92   : > { %v799_v56 = vld [vmem:[%s8022_s25 + $0x1f00] sm:$0xff]  ;;  %796 = vst [vmem:[%s8030_s26 + $0x7b0] sm:$0xff] %v795_v54  ;;  %798 = vst [vmem:[%s8030_s26 + $0x7b8] sm:$0xff] %v797_v55  ;;  %v801_v57 = vld [vmem:[%s8022_s25 + $0x1f08] sm:$0xff] }
  0x93   : > { %800 = vst [vmem:[%s8030_s26 + $0x7c0] sm:$0xff] %v799_v56  ;;  %v803_v58 = vld [vmem:[%s8022_s25 + $0x1f40] sm:$0xff]  ;;  %v805_v59 = vld [vmem:[%s8022_s25 + $0x1f48] sm:$0xff]  ;;  %802 = vst [vmem:[%s8030_s26 + $0x7c8] sm:$0xff] %v801_v57 }
  0x94   : > { %804 = vst [vmem:[%s8030_s26 + $0x7d0] sm:$0xff] %v803_v58  ;;  %806 = vst [vmem:[%s8030_s26 + $0x7d8] sm:$0xff] %v805_v59  ;;  %v807_v60 = vld [vmem:[%s8022_s25 + $0x1f80] sm:$0xff]  ;;  %v809_v61 = vld [vmem:[%s8022_s25 + $0x1f88] sm:$0xff] }
  0x95   : > { %v811_v62 = vld [vmem:[%s8022_s25 + $0x1fc0] sm:$0xff]  ;;  %808 = vst [vmem:[%s8030_s26 + $0x7e0] sm:$0xff] %v807_v60  ;;  %810 = vst [vmem:[%s8030_s26 + $0x7e8] sm:$0xff] %v809_v61  ;;  %v813_v63 = vld [vmem:[%s8022_s25 + $0x1fc8] sm:$0xff] }
  0x96   : > { %812 = vst [vmem:[%s8030_s26 + $0x7f0] sm:$0xff] %v811_v62  ;;  %v815_v0 = vld [vmem:[%s8022_s25 + $0x2000] sm:$0xff]  ;;  %v817_v1 = vld [vmem:[%s8022_s25 + $0x2008] sm:$0xff]  ;;  %814 = vst [vmem:[%s8030_s26 + $0x7f8] sm:$0xff] %v813_v63 }
  0x97   : > { %816 = vst [vmem:[%s8030_s26 + $0x800] sm:$0xff] %v815_v0  ;;  %818 = vst [vmem:[%s8030_s26 + $0x808] sm:$0xff] %v817_v1  ;;  %v819_v2 = vld [vmem:[%s8022_s25 + $0x2040] sm:$0xff]  ;;  %v821_v3 = vld [vmem:[%s8022_s25 + $0x2048] sm:$0xff] }
  0x98   : > { %v823_v4 = vld [vmem:[%s8022_s25 + $0x2080] sm:$0xff]  ;;  %820 = vst [vmem:[%s8030_s26 + $0x810] sm:$0xff] %v819_v2  ;;  %822 = vst [vmem:[%s8030_s26 + $0x818] sm:$0xff] %v821_v3  ;;  %v825_v5 = vld [vmem:[%s8022_s25 + $0x2088] sm:$0xff] }
  0x99   : > { %824 = vst [vmem:[%s8030_s26 + $0x820] sm:$0xff] %v823_v4  ;;  %v827_v6 = vld [vmem:[%s8022_s25 + $0x20c0] sm:$0xff]  ;;  %v829_v7 = vld [vmem:[%s8022_s25 + $0x20c8] sm:$0xff]  ;;  %826 = vst [vmem:[%s8030_s26 + $0x828] sm:$0xff] %v825_v5 }
  0x9a   : > { %828 = vst [vmem:[%s8030_s26 + $0x830] sm:$0xff] %v827_v6  ;;  %830 = vst [vmem:[%s8030_s26 + $0x838] sm:$0xff] %v829_v7  ;;  %v831_v8 = vld [vmem:[%s8022_s25 + $0x2100] sm:$0xff]  ;;  %v833_v9 = vld [vmem:[%s8022_s25 + $0x2108] sm:$0xff] }
  0x9b   : > { %v835_v10 = vld [vmem:[%s8022_s25 + $0x2140] sm:$0xff]  ;;  %832 = vst [vmem:[%s8030_s26 + $0x840] sm:$0xff] %v831_v8  ;;  %834 = vst [vmem:[%s8030_s26 + $0x848] sm:$0xff] %v833_v9  ;;  %v837_v11 = vld [vmem:[%s8022_s25 + $0x2148] sm:$0xff] }
  0x9c   : > { %836 = vst [vmem:[%s8030_s26 + $0x850] sm:$0xff] %v835_v10  ;;  %v839_v12 = vld [vmem:[%s8022_s25 + $0x2180] sm:$0xff]  ;;  %v841_v13 = vld [vmem:[%s8022_s25 + $0x2188] sm:$0xff]  ;;  %838 = vst [vmem:[%s8030_s26 + $0x858] sm:$0xff] %v837_v11 }
  0x9d   : > { %840 = vst [vmem:[%s8030_s26 + $0x860] sm:$0xff] %v839_v12  ;;  %842 = vst [vmem:[%s8030_s26 + $0x868] sm:$0xff] %v841_v13  ;;  %v843_v14 = vld [vmem:[%s8022_s25 + $0x21c0] sm:$0xff]  ;;  %v845_v15 = vld [vmem:[%s8022_s25 + $0x21c8] sm:$0xff] }
  0x9e   : > { %v847_v16 = vld [vmem:[%s8022_s25 + $0x2200] sm:$0xff]  ;;  %844 = vst [vmem:[%s8030_s26 + $0x870] sm:$0xff] %v843_v14  ;;  %846 = vst [vmem:[%s8030_s26 + $0x878] sm:$0xff] %v845_v15  ;;  %v849_v17 = vld [vmem:[%s8022_s25 + $0x2208] sm:$0xff] }
  0x9f   : > { %848 = vst [vmem:[%s8030_s26 + $0x880] sm:$0xff] %v847_v16  ;;  %v851_v18 = vld [vmem:[%s8022_s25 + $0x2240] sm:$0xff]  ;;  %v853_v19 = vld [vmem:[%s8022_s25 + $0x2248] sm:$0xff]  ;;  %850 = vst [vmem:[%s8030_s26 + $0x888] sm:$0xff] %v849_v17 }
  0xa0   : > { %852 = vst [vmem:[%s8030_s26 + $0x890] sm:$0xff] %v851_v18  ;;  %854 = vst [vmem:[%s8030_s26 + $0x898] sm:$0xff] %v853_v19  ;;  %v855_v20 = vld [vmem:[%s8022_s25 + $0x2280] sm:$0xff]  ;;  %v857_v21 = vld [vmem:[%s8022_s25 + $0x2288] sm:$0xff] }
  0xa1   : > { %v859_v22 = vld [vmem:[%s8022_s25 + $0x22c0] sm:$0xff]  ;;  %856 = vst [vmem:[%s8030_s26 + $0x8a0] sm:$0xff] %v855_v20  ;;  %858 = vst [vmem:[%s8030_s26 + $0x8a8] sm:$0xff] %v857_v21  ;;  %v861_v23 = vld [vmem:[%s8022_s25 + $0x22c8] sm:$0xff] }
  0xa2   : > { %860 = vst [vmem:[%s8030_s26 + $0x8b0] sm:$0xff] %v859_v22  ;;  %v863_v24 = vld [vmem:[%s8022_s25 + $0x2300] sm:$0xff]  ;;  %v865_v25 = vld [vmem:[%s8022_s25 + $0x2308] sm:$0xff]  ;;  %862 = vst [vmem:[%s8030_s26 + $0x8b8] sm:$0xff] %v861_v23 }
  0xa3   : > { %864 = vst [vmem:[%s8030_s26 + $0x8c0] sm:$0xff] %v863_v24  ;;  %866 = vst [vmem:[%s8030_s26 + $0x8c8] sm:$0xff] %v865_v25  ;;  %v867_v26 = vld [vmem:[%s8022_s25 + $0x2340] sm:$0xff]  ;;  %v869_v27 = vld [vmem:[%s8022_s25 + $0x2348] sm:$0xff] }
  0xa4   : > { %v871_v28 = vld [vmem:[%s8022_s25 + $0x2380] sm:$0xff]  ;;  %868 = vst [vmem:[%s8030_s26 + $0x8d0] sm:$0xff] %v867_v26  ;;  %870 = vst [vmem:[%s8030_s26 + $0x8d8] sm:$0xff] %v869_v27  ;;  %v873_v29 = vld [vmem:[%s8022_s25 + $0x2388] sm:$0xff] }
  0xa5   : > { %872 = vst [vmem:[%s8030_s26 + $0x8e0] sm:$0xff] %v871_v28  ;;  %v875_v30 = vld [vmem:[%s8022_s25 + $0x23c0] sm:$0xff]  ;;  %v877_v31 = vld [vmem:[%s8022_s25 + $0x23c8] sm:$0xff]  ;;  %874 = vst [vmem:[%s8030_s26 + $0x8e8] sm:$0xff] %v873_v29 }
  0xa6   : > { %876 = vst [vmem:[%s8030_s26 + $0x8f0] sm:$0xff] %v875_v30  ;;  %878 = vst [vmem:[%s8030_s26 + $0x8f8] sm:$0xff] %v877_v31  ;;  %v879_v32 = vld [vmem:[%s8022_s25 + $0x2400] sm:$0xff]  ;;  %v881_v33 = vld [vmem:[%s8022_s25 + $0x2408] sm:$0xff] }
  0xa7   : > { %v883_v34 = vld [vmem:[%s8022_s25 + $0x2440] sm:$0xff]  ;;  %880 = vst [vmem:[%s8030_s26 + $0x900] sm:$0xff] %v879_v32  ;;  %882 = vst [vmem:[%s8030_s26 + $0x908] sm:$0xff] %v881_v33  ;;  %v885_v35 = vld [vmem:[%s8022_s25 + $0x2448] sm:$0xff] }
  0xa8   : > { %884 = vst [vmem:[%s8030_s26 + $0x910] sm:$0xff] %v883_v34  ;;  %v887_v36 = vld [vmem:[%s8022_s25 + $0x2480] sm:$0xff]  ;;  %v889_v37 = vld [vmem:[%s8022_s25 + $0x2488] sm:$0xff]  ;;  %886 = vst [vmem:[%s8030_s26 + $0x918] sm:$0xff] %v885_v35 }
  0xa9   : > { %888 = vst [vmem:[%s8030_s26 + $0x920] sm:$0xff] %v887_v36  ;;  %890 = vst [vmem:[%s8030_s26 + $0x928] sm:$0xff] %v889_v37  ;;  %v891_v38 = vld [vmem:[%s8022_s25 + $0x24c0] sm:$0xff]  ;;  %v893_v39 = vld [vmem:[%s8022_s25 + $0x24c8] sm:$0xff] }
  0xaa   : > { %v895_v40 = vld [vmem:[%s8022_s25 + $0x2500] sm:$0xff]  ;;  %892 = vst [vmem:[%s8030_s26 + $0x930] sm:$0xff] %v891_v38  ;;  %894 = vst [vmem:[%s8030_s26 + $0x938] sm:$0xff] %v893_v39  ;;  %v897_v41 = vld [vmem:[%s8022_s25 + $0x2508] sm:$0xff] }
  0xab   : > { %896 = vst [vmem:[%s8030_s26 + $0x940] sm:$0xff] %v895_v40  ;;  %v899_v42 = vld [vmem:[%s8022_s25 + $0x2540] sm:$0xff]  ;;  %v901_v43 = vld [vmem:[%s8022_s25 + $0x2548] sm:$0xff]  ;;  %898 = vst [vmem:[%s8030_s26 + $0x948] sm:$0xff] %v897_v41 }
  0xac   : > { %900 = vst [vmem:[%s8030_s26 + $0x950] sm:$0xff] %v899_v42  ;;  %902 = vst [vmem:[%s8030_s26 + $0x958] sm:$0xff] %v901_v43  ;;  %v903_v44 = vld [vmem:[%s8022_s25 + $0x2580] sm:$0xff]  ;;  %v905_v45 = vld [vmem:[%s8022_s25 + $0x2588] sm:$0xff] }
  0xad   : > { %v907_v46 = vld [vmem:[%s8022_s25 + $0x25c0] sm:$0xff]  ;;  %904 = vst [vmem:[%s8030_s26 + $0x960] sm:$0xff] %v903_v44  ;;  %906 = vst [vmem:[%s8030_s26 + $0x968] sm:$0xff] %v905_v45  ;;  %v909_v47 = vld [vmem:[%s8022_s25 + $0x25c8] sm:$0xff] }
  0xae   : > { %908 = vst [vmem:[%s8030_s26 + $0x970] sm:$0xff] %v907_v46  ;;  %v911_v48 = vld [vmem:[%s8022_s25 + $0x2600] sm:$0xff]  ;;  %v913_v49 = vld [vmem:[%s8022_s25 + $0x2608] sm:$0xff]  ;;  %910 = vst [vmem:[%s8030_s26 + $0x978] sm:$0xff] %v909_v47 }
  0xaf   : > { %912 = vst [vmem:[%s8030_s26 + $0x980] sm:$0xff] %v911_v48  ;;  %914 = vst [vmem:[%s8030_s26 + $0x988] sm:$0xff] %v913_v49  ;;  %v915_v50 = vld [vmem:[%s8022_s25 + $0x2640] sm:$0xff]  ;;  %v917_v51 = vld [vmem:[%s8022_s25 + $0x2648] sm:$0xff] }
  0xb0   : > { %v919_v52 = vld [vmem:[%s8022_s25 + $0x2680] sm:$0xff]  ;;  %916 = vst [vmem:[%s8030_s26 + $0x990] sm:$0xff] %v915_v50  ;;  %918 = vst [vmem:[%s8030_s26 + $0x998] sm:$0xff] %v917_v51  ;;  %v921_v53 = vld [vmem:[%s8022_s25 + $0x2688] sm:$0xff] }
  0xb1   : > { %920 = vst [vmem:[%s8030_s26 + $0x9a0] sm:$0xff] %v919_v52  ;;  %v923_v54 = vld [vmem:[%s8022_s25 + $0x26c0] sm:$0xff]  ;;  %v925_v55 = vld [vmem:[%s8022_s25 + $0x26c8] sm:$0xff]  ;;  %922 = vst [vmem:[%s8030_s26 + $0x9a8] sm:$0xff] %v921_v53 }
  0xb2   : > { %924 = vst [vmem:[%s8030_s26 + $0x9b0] sm:$0xff] %v923_v54  ;;  %926 = vst [vmem:[%s8030_s26 + $0x9b8] sm:$0xff] %v925_v55  ;;  %v927_v56 = vld [vmem:[%s8022_s25 + $0x2700] sm:$0xff]  ;;  %v929_v57 = vld [vmem:[%s8022_s25 + $0x2708] sm:$0xff] }
  0xb3   : > { %928 = vst [vmem:[%s8030_s26 + $0x9c0] sm:$0xff] %v927_v56  ;;  %930 = vst [vmem:[%s8030_s26 + $0x9c8] sm:$0xff] %v929_v57 }
  0xb4 PF: > { %s945_s27 = sand.u32 1, %s7906_s11   ;;  %s7053_s28 = sshll.u32 %s7910_s12, 15 }
  0xb5   : > { %s6387_s29 = sshll.u32 %s945_s27, 11  ;;  %s8659_s16 = scalar_lea.hbm %s9670_s3, %s7053_s28 }
  0xb6   : > { %s949_s20 = scalar_lea.vmem [#allocation4], %s6387_s29  ;;  %s8663_s22 = scalar_lea.sflag [#allocation5], %s945_s27 }
  0xb7   : > { %s957_s21 = sshll.u32 %s949_s20, 4  ;;  %s7818_s23 = scalar_lea.hbm %s8659_s16, 32768  ;;  %s8661_s21 = int_to_ptr.vmem [resolvable:$true] %s957_s21 }
  0xb8   : > { %p7819_p8 = scmp.ne.s32.totalorder %s8659_s16, %s7818_s23  ;;  %s7822_s26 = scalar_lea.hbm %s9670_s3, 131072 }
  0xb9   : > { %p7823_p11 = scmp.lt.u32.totalorder %s8659_s16, %s9670_s3  ;;  %p7824_p12 = scmp.lt.u32.totalorder %s7822_s26, %s7818_s23 }
  0xba   : > { %p7820_p9 = pnand %p7819_p8, %p8005_p4  ;;  %p7826_p0 = scmp.lt.u32.totalorder %s7818_s23, %s8659_s16 }
  0xbb   : > { %p7825_p13 = por %p7824_p12, %p7823_p11 }
  0xbc   : > { %p7821_p10 = pneg %p7820_p9 }
  0xbd   : > { %p7827_p1 = por %p7826_p0, %p7825_p13 }
  0xbf   : > { %p7828_p2 = pnand %p7827_p1, %p7821_p10 }
  0xc1   : > { %7831 = shalt.err (!%p7828_p2)
}
  0xc2   : > { %s7832_s27 = scalar_lea.vmem %s8661_s21, 32768  ;;  %s7912_s29 = smov [#allocation4]  }
  0xc3   : > { %p7833_p3 = scmp.ne.s32.totalorder %s8661_s21, %s7832_s27  ;;  %s7836_s15 = sshll.u32 %s7912_s29, 4  ;;  %s7837_s15 = int_to_ptr.vmem [resolvable:$false] %s7836_s15 }
  0xc4   : > { %s7838_s20 = scalar_lea.vmem %s7837_s15, 65536  ;;  %p7839_p8 = scmp.lt.s32.totalorder %s8661_s21, %s7837_s15 }
  0xc5   : > { %p7834_p5 = pnand %p7833_p3, %p8005_p4  ;;  %p7840_p9 = scmp.lt.s32.totalorder %s7838_s20, %s7832_s27 }
  0xc7   : > { %p7835_p7 = pneg %p7834_p5  ;;  %p7841_p11 = por %p7840_p9, %p7839_p8 }
  0xc9   : > { %p7842_p12 = pnand %p7841_p11, %p7835_p7 }
  0xcb   : > { %7845 = shalt.err (!%p7842_p12)
}
  0xcc   : > { %s7913_s23 = smov 512   ;;  %s7914_s24 = smov 32  }
  0xcd   : > { %7225 = dma.hbm_to_vmem [thread:$0]  (%p8005_p4), %s8659_s16, 32768, %s8661_s21, %s8663_s22, %s7913_s23, %s7913_s23, %s7914_s24  }
  0xce PF: > { %p6391_p10 = scmp.ge.s32.totalorder %s7910_s12, 1  ;;  %p965_p13 = scmp.lt.s32.totalorder %s7910_s12, 5 }
  0xd0   : > { %p966_p0 = pnand %p6391_p10, %p965_p13 }
  0xd1   : > { %s972_s25 = sand.u32 (!%p966_p0), 1, %s7902_s10  }
  0xd2   : > { %969 = sbr.rel (%p966_p0) target bundleno = 1674 (0x68a), region = 75  ;;  %s6392_s28 = sshll.u32 (!%p966_p0), %s972_s25, 11 }
  0xd3   : > { %s7224_s26 = smul.u32 (!%p966_p0), 2512, %s972_s25  ;;  %s979_s27 = scalar_lea.sflag (!%p966_p0), [#allocation5], %s972_s25 }
  0xd4   : > { %s8692_s29 = scalar_lea.vmem (!%p966_p0), [#allocation4], %s6392_s28 }
  0xd5   : > { %s8690_s30 = scalar_lea.vmem (!%p966_p0), [#allocation3], %s7224_s26 }
  0xd9   : > { %7889 = dma.done.wait (%p8010_p6), %s979_s27, 32768  }
  0xda   : > { %7891 = vsyncadd (%p8010_p6), %s979_s27, 4294934528  ;;  %s6393_s18 = sshll.u32 %s7990_s13, 2  ;;  %p6394_p1 = scmp.ne.s32.totalorder %s7990_s13, 0 }
  0xdb   : > { %p1022_p4 = scmp.lt.s32.totalorder %s6393_s18, 15  ;;  %v7915_v58 = vmov (!%p6394_p1), 0.0  }
  0xdc   : > { %1031 = sbr.rel (%p6394_p1) target bundleno = 227 (0xe3), region = 87  ;;  %1032 = vst [vmem:[#allocation2] sm:$0xff] (!%p6394_p1), %v7915_v58  ;;  %1033 = vst [vmem:[#allocation2 + $0x8] sm:$0xff] (!%p6394_p1), %v7915_v58 }
  0xdd   : > { %s9684_s18 = smov (!%p1022_p4, %s6393_s18), 15 }
  0xde   : > { %s1024_s21 = scalar_lea.vmem %s9669_s2, %s9684_s18 }
  0xe3 PF: > { %v7273_v59 = vld [vmem:[%s8690_s30 + $0x4] ss:$16 sps:$4 sm:$0xff]   ;;  %v7275_v60 = vld [vmem:[%s8690_s30 + $0xc] ss:$16 sps:$4 sm:$0xff]   ;;  %v7277_v61 = vld [vmem:[%s8690_s30] ss:$16 sps:$4 sm:$0xff]   ;;  %v1352_v31 = vlaneseq }
  0xe4   : > { %3041 = vmatprep.subr.bf16.mxu0 %v7273_v59  ;;  %v7278_v62 = vld [vmem:[%s8690_s30 + $0x8] ss:$16 sps:$4 sm:$0xff]   ;;  %3246 = vmatprep.subr.bf16.mxu1 %v7275_v60  ;;  %v7279_v63 = vld [vmem:[%s8690_s30 + $0x24] ss:$16 sps:$4 sm:$0xff]   ;;  %v7281_v0 = vld [vmem:[%s8690_s30 + $0x2c] ss:$16 sps:$4 sm:$0xff]  }
  0xe5   : > { %3042 = vmatpush1.bf16.msra.mxu0 %v7277_v61  ;;  %3247 = vmatpush1.bf16.msra.mxu1 %v7278_v62  ;;  %v7283_v1 = vld [vmem:[%s8690_s30 + $0x20] ss:$16 sps:$4 sm:$0xff]   ;;  %v7284_v2 = vld [vmem:[%s8690_s30 + $0x28] ss:$16 sps:$4 sm:$0xff]   ;;  %v7285_v3 = vld [vmem:[%s8690_s30 + $0x44] ss:$16 sps:$4 sm:$0xff]  }
  0xe6   : > { %3043 = vmatprep.subr.bf16.mxu0 %v7279_v63  ;;  %3248 = vmatprep.subr.bf16.mxu1 %v7281_v0  ;;  %v7287_v4 = vld [vmem:[%s8690_s30 + $0x4c] ss:$16 sps:$4 sm:$0xff]   ;;  %v7289_v5 = vld [vmem:[%s8690_s30 + $0x40] ss:$16 sps:$4 sm:$0xff]   ;;  %v7290_v6 = vld [vmem:[%s8690_s30 + $0x48] ss:$16 sps:$4 sm:$0xff]  }
  0xe7   : > { %v7291_v7 = vld [vmem:[%s8690_s30 + $0x64] ss:$16 sps:$4 sm:$0xff]   ;;  %v7293_v8 = vld [vmem:[%s8690_s30 + $0x6c] ss:$16 sps:$4 sm:$0xff]   ;;  %v7295_v9 = vld [vmem:[%s8690_s30 + $0x60] ss:$16 sps:$4 sm:$0xff]  }
  0xe8   : > { %v7296_v10 = vld [vmem:[%s8690_s30 + $0x68] ss:$16 sps:$4 sm:$0xff]   ;;  %v7297_v11 = vld [vmem:[%s8690_s30 + $0x84] ss:$16 sps:$4 sm:$0xff]   ;;  %v7299_v12 = vld [vmem:[%s8690_s30 + $0x8c] ss:$16 sps:$4 sm:$0xff]  }
  0xe9   : > { %3044 = vmatpush1.bf16.msra.mxu0 %v7283_v1  ;;  %3249 = vmatpush1.bf16.msra.mxu1 %v7284_v2  ;;  %v7301_v13 = vld [vmem:[%s8690_s30 + $0x80] ss:$16 sps:$4 sm:$0xff]   ;;  %v7302_v14 = vld [vmem:[%s8690_s30 + $0x88] ss:$16 sps:$4 sm:$0xff]   ;;  %v7303_v15 = vld [vmem:[%s8690_s30 + $0xa4] ss:$16 sps:$4 sm:$0xff]  }
  0xea   : > { %3045 = vmatprep.subr.bf16.mxu0 %v7285_v3  ;;  %3250 = vmatprep.subr.bf16.mxu1 %v7287_v4  ;;  %v7305_v16 = vld [vmem:[%s8690_s30 + $0xac] ss:$16 sps:$4 sm:$0xff]   ;;  %v7307_v17 = vld [vmem:[%s8690_s30 + $0xa0] ss:$16 sps:$4 sm:$0xff]   ;;  %v7308_v18 = vld [vmem:[%s8690_s30 + $0xa8] ss:$16 sps:$4 sm:$0xff]  }
  0xeb   : > { %v7309_v19 = vld [vmem:[%s8690_s30 + $0xc4] ss:$16 sps:$4 sm:$0xff]   ;;  %v7311_v20 = vld [vmem:[%s8690_s30 + $0xcc] ss:$16 sps:$4 sm:$0xff]   ;;  %v7313_v21 = vld [vmem:[%s8690_s30 + $0xc0] ss:$16 sps:$4 sm:$0xff]  }
  0xec   : > { %v7314_v22 = vld [vmem:[%s8690_s30 + $0xc8] ss:$16 sps:$4 sm:$0xff]   ;;  %v7315_v23 = vld [vmem:[%s8690_s30 + $0xe4] ss:$16 sps:$4 sm:$0xff]   ;;  %v7317_v24 = vld [vmem:[%s8690_s30 + $0xec] ss:$16 sps:$4 sm:$0xff]  }
  0xed   : > { %3046 = vmatpush1.bf16.msra.mxu0 %v7289_v5  ;;  %3251 = vmatpush1.bf16.msra.mxu1 %v7290_v6  ;;  %v7319_v25 = vld [vmem:[%s8690_s30 + $0xe0] ss:$16 sps:$4 sm:$0xff]   ;;  %v7320_v26 = vld [vmem:[%s8690_s30 + $0xe8] ss:$16 sps:$4 sm:$0xff]   ;;  %v7321_v27 = vld [vmem:[%s8690_s30 + $0x104] ss:$16 sps:$4 sm:$0xff]  }
  0xee   : > { %3047 = vmatprep.subr.bf16.mxu0 %v7291_v7  ;;  %3252 = vmatprep.subr.bf16.mxu1 %v7293_v8  ;;  %v7323_v28 = vld [vmem:[%s8690_s30 + $0x10c] ss:$16 sps:$4 sm:$0xff]   ;;  %v7325_v29 = vld [vmem:[%s8690_s30 + $0x100] ss:$16 sps:$4 sm:$0xff]   ;;  %v7326_v30 = vld [vmem:[%s8690_s30 + $0x108] ss:$16 sps:$4 sm:$0xff]  }
  0xef   : > { %v7916_v32 = vmov 1966171168   ;;  %v7327_v34 = vld [vmem:[%s8690_s30 + $0x124] ss:$16 sps:$4 sm:$0xff]   ;;  %v7329_v35 = vld [vmem:[%s8690_s30 + $0x12c] ss:$16 sps:$4 sm:$0xff]  }
  0xf0   : > { %v1376_v33 = vunpack.c.l.s4 %v7916_v32  ;;  %v7331_v36 = vld [vmem:[%s8690_s30 + $0x120] ss:$16 sps:$4 sm:$0xff]   ;;  %v8745_v37 = vshrl.u32 %v1352_v31, 7  ;;  %v7332_v39 = vld [vmem:[%s8690_s30 + $0x128] ss:$16 sps:$4 sm:$0xff]   ;;  %vm3024_vm0 = vcmask 801792  }
  0xf1   : > { %3048 = vmatpush1.bf16.msra.mxu0 %v7295_v9  ;;  %3253 = vmatpush1.bf16.msra.mxu1 %v7296_v10  ;;  %v7333_v40 = vld [vmem:[%s8690_s30 + $0x144] ss:$16 sps:$4 sm:$0xff]   ;;  %v7335_v41 = vld [vmem:[%s8690_s30 + $0x14c] ss:$16 sps:$4 sm:$0xff]   ;;  %v7337_v42 = vld [vmem:[%s8690_s30 + $0x140] ss:$16 sps:$4 sm:$0xff]  }
  0xf2   : > { %3049 = vmatprep.subr.bf16.mxu0 %v7297_v11  ;;  %3254 = vmatprep.subr.bf16.mxu1 %v7299_v12  ;;  %v1377_v38 = vunpack.c.0.s8 %v1376_v33  ;;  %v7338_v43 = vld [vmem:[%s8690_s30 + $0x148] ss:$16 sps:$4 sm:$0xff]   ;;  %v7339_v45 = vld [vmem:[%s8690_s30 + $0x164] ss:$16 sps:$4 sm:$0xff]   ;;  %v7341_v46 = vld [vmem:[%s8690_s30 + $0x16c] ss:$16 sps:$4 sm:$0xff]  }
  0xf3   : > { %v8760_v47 = vld [vmem:[%s9667_s0] sm:$0xff]  ;;  %v7344_v50 = vld [vmem:[%s8690_s30 + $0x168] ss:$16 sps:$4 sm:$0xff]   ;;  %v7347_v52 = vld [vmem:[%s8690_s30 + $0x18c] ss:$16 sps:$4 sm:$0xff]   ;;  %vm3028_vm1 = vcmask 1040384  }
  0xf4   : > { %v8753_v44 = vsub.s32 %v1377_v38, %v8745_v37  ;;  %v7343_v48 = vld [vmem:[%s8690_s30 + $0x160] ss:$16 sps:$4 sm:$0xff]   ;;  %v7345_v51 = vld [vmem:[%s8690_s30 + $0x184] ss:$16 sps:$4 sm:$0xff]   ;;  %v7350_v56 = vld [vmem:[%s8690_s30 + $0x188] ss:$16 sps:$4 sm:$0xff]  }
  0xf5   : > { %3050 = vmatpush1.bf16.msra.mxu0 %v7301_v13  ;;  %3255 = vmatpush1.bf16.msra.mxu1 %v7302_v14  ;;  %v7349_v54 = vld [vmem:[%s8690_s30 + $0x180] ss:$16 sps:$4 sm:$0xff]   ;;  %v7351_v57 = vld [vmem:[%s8690_s30 + $0x1a4] ss:$16 sps:$4 sm:$0xff]   ;;  %v7353_v58 = vld [vmem:[%s8690_s30 + $0x1ac] ss:$16 sps:$4 sm:$0xff]  }
  0xf6   : > { %3051 = vmatprep.subr.bf16.mxu0 %v7303_v15  ;;  %3256 = vmatprep.subr.bf16.mxu1 %v7305_v16  ;;  %v1381_v49 = vrot.slane %v8760_v47, %v8753_v44  ;;  %v7355_v59 = vld [vmem:[%s8690_s30 + $0x1a0] ss:$16 sps:$4 sm:$0xff]   ;;  %v7356_v60 = vld [vmem:[%s8690_s30 + $0x1a8] ss:$16 sps:$4 sm:$0xff]   ;;  %v7357_v61 = vld [vmem:[%s8690_s30 + $0x1c4] ss:$16 sps:$4 sm:$0xff]  }
  0xf7   : > { %v7359_v62 = vld [vmem:[%s8690_s30 + $0x1cc] ss:$16 sps:$4 sm:$0xff]   ;;  %v7361_v63 = vld [vmem:[%s8690_s30 + $0x1c0] ss:$16 sps:$4 sm:$0xff]   ;;  %v7362_v0 = vld [vmem:[%s8690_s30 + $0x1c8] ss:$16 sps:$4 sm:$0xff]  }
  0xf8   : > { %v1389_v53 = vcombine.high %v1381_v49, %v1381_v49  ;;  %v7363_v1 = vld [vmem:[%s8690_s30 + $0x1e4] ss:$16 sps:$4 sm:$0xff]   ;;  %v7365_v2 = vld [vmem:[%s8690_s30 + $0x1ec] ss:$16 sps:$4 sm:$0xff]   ;;  %v7367_v3 = vld [vmem:[%s8690_s30 + $0x1e0] ss:$16 sps:$4 sm:$0xff]   ;;  %v8787_v8 = vrot.slane %v1381_v49, %v8753_v44 }
  0xf9   : > { %3052 = vmatpush1.bf16.msra.mxu0 %v7307_v17  ;;  %3257 = vmatpush1.bf16.msra.mxu1 %v7308_v18  ;;  %v7368_v4 = vld [vmem:[%s8690_s30 + $0x1e8] ss:$16 sps:$4 sm:$0xff]   ;;  %v7371_v5 = vld [vmem:[%s8690_s30 + $0x204] ss:$16 sps:$4 sm:$0xff]   ;;  %v7374_v6 = vld [vmem:[%s8690_s30 + $0x20c] ss:$16 sps:$4 sm:$0xff]  }
  0xfa   : > { %3053 = vmatprep.subr.bf16.mxu0 %v7309_v19  ;;  %3258 = vmatprep.subr.bf16.mxu1 %v7311_v20  ;;  %v1411_v55 = vrot.slane %v1389_v53, %v8753_v44  ;;  %v7369_v7 = vld [vmem:[%s8690_s30 + $0x200] ss:$16 sps:$4 sm:$0xff]   ;;  %v7372_v9 = vld [vmem:[%s8690_s30 + $0x208] ss:$16 sps:$4 sm:$0xff]   ;;  %v7377_v10 = vld [vmem:[%s8690_s30 + $0x224] ss:$16 sps:$4 sm:$0xff]  }
  0xfb   : > { %v7380_v11 = vld [vmem:[%s8690_s30 + $0x22c] ss:$16 sps:$4 sm:$0xff]   ;;  %v7375_v13 = vld [vmem:[%s8690_s30 + $0x220] ss:$16 sps:$4 sm:$0xff]   ;;  %v7378_v14 = vld [vmem:[%s8690_s30 + $0x228] ss:$16 sps:$4 sm:$0xff]  }
  0xfc   : > { %3073 = vmatprep.mubr.bf16.mxu0 %v1411_v55  ;;  %3278 = vmatprep.mubr.bf16.mxu1 %v1411_v55  ;;  %v1421_v12 = vcombine.high %v1411_v55, %v1411_v55  ;;  %v7383_v15 = vld [vmem:[%s8690_s30 + $0x244] ss:$16 sps:$4 sm:$0xff]   ;;  %v7386_v16 = vld [vmem:[%s8690_s30 + $0x24c] ss:$16 sps:$4 sm:$0xff]   ;;  %v7381_v17 = vld [vmem:[%s8690_s30 + $0x240] ss:$16 sps:$4 sm:$0xff]  }
  0xfd   : > { %3054 = vmatpush1.bf16.msra.mxu0 %v7313_v21  ;;  %3259 = vmatpush1.bf16.msra.mxu1 %v7314_v22  ;;  %v7384_v18 = vld [vmem:[%s8690_s30 + $0x248] ss:$16 sps:$4 sm:$0xff]   ;;  %v7389_v19 = vld [vmem:[%s8690_s30 + $0x264] ss:$16 sps:$4 sm:$0xff]   ;;  %v7392_v20 = vld [vmem:[%s8690_s30 + $0x26c] ss:$16 sps:$4 sm:$0xff]  }
  0xfe   : > { %3055 = vmatprep.subr.bf16.mxu0 %v7315_v23  ;;  %3260 = vmatprep.subr.bf16.mxu1 %v7317_v24  ;;  %v7387_v21 = vld [vmem:[%s8690_s30 + $0x260] ss:$16 sps:$4 sm:$0xff]   ;;  %v7390_v22 = vld [vmem:[%s8690_s30 + $0x268] ss:$16 sps:$4 sm:$0xff]   ;;  %v7395_v23 = vld [vmem:[%s8690_s30 + $0x284] ss:$16 sps:$4 sm:$0xff]  }
  0xff   : > { %v7398_v24 = vld [vmem:[%s8690_s30 + $0x28c] ss:$16 sps:$4 sm:$0xff]   ;;  %v7407_v31 = vld [vmem:[%s8690_s30 + $0x2c4] ss:$16 sps:$4 sm:$0xff]   ;;  %v7405_v33 = vld [vmem:[%s8690_s30 + $0x2c0] ss:$16 sps:$4 sm:$0xff]  }
 0x100   : > { %v7410_v32 = vld [vmem:[%s8690_s30 + $0x2cc] ss:$16 sps:$4 sm:$0xff]   ;;  %v7411_v38 = vld [vmem:[%s8690_s30 + $0x2e0] ss:$16 sps:$4 sm:$0xff]   ;;  %v7426_v49 = vld [vmem:[%s8690_s30 + $0x328] ss:$16 sps:$4 sm:$0xff]  }
 0x101   : > { %3056 = vmatpush1.bf16.msra.mxu0 %v7319_v25  ;;  %3261 = vmatpush1.bf16.msra.mxu1 %v7320_v26  ;;  %v7393_v25 = vld [vmem:[%s8690_s30 + $0x280] ss:$16 sps:$4 sm:$0xff]   ;;  %v7396_v26 = vld [vmem:[%s8690_s30 + $0x288] ss:$16 sps:$4 sm:$0xff]   ;;  %v7440_v55 = vld [vmem:[%s8690_s30 + $0x36c] ss:$16 sps:$4 sm:$0xff]  }
 0x102   : > { %3057 = vmatprep.subr.bf16.mxu0 %v7321_v27  ;;  %3262 = vmatprep.subr.bf16.mxu1 %v7323_v28  ;;  %v7401_v27 = vld [vmem:[%s8690_s30 + $0x2a4] ss:$16 sps:$4 sm:$0xff]   ;;  %v7404_v28 = vld [vmem:[%s8690_s30 + $0x2ac] ss:$16 sps:$4 sm:$0xff]   ;;  %v7432_v53 = vld [vmem:[%s8690_s30 + $0x348] ss:$16 sps:$4 sm:$0xff]  }
 0x103   : > { %p6972_p6 = scmp.ne.s32.totalorder %s7990_s13, 3 }
 0x104   : > { %vm7919_vm2 = vmmov (!%p6972_p6), 0  }
 0x105   : > { %3058 = vmatpush1.bf16.msra.mxu0 %v7325_v29  ;;  %3263 = vmatpush1.bf16.msra.mxu1 %v7326_v30  ;;  %v7399_v29 = vld [vmem:[%s8690_s30 + $0x2a0] ss:$16 sps:$4 sm:$0xff]   ;;  %v7402_v30 = vld [vmem:[%s8690_s30 + $0x2a8] ss:$16 sps:$4 sm:$0xff]  }
 0x106   : > { %3059 = vmatprep.subr.bf16.mxu0 %v7327_v34  ;;  %3264 = vmatprep.subr.bf16.mxu1 %v7329_v35  ;;  %v7408_v34 = vld [vmem:[%s8690_s30 + $0x2c8] ss:$16 sps:$4 sm:$0xff]   ;;  %v7413_v35 = vld [vmem:[%s8690_s30 + $0x2e4] ss:$16 sps:$4 sm:$0xff]  }
 0x109   : > { %3060 = vmatpush1.bf16.msra.mxu0 %v7331_v36  ;;  %3265 = vmatpush1.bf16.msra.mxu1 %v7332_v39  ;;  %v7416_v36 = vld [vmem:[%s8690_s30 + $0x2ec] ss:$16 sps:$4 sm:$0xff]   ;;  %v7414_v39 = vld [vmem:[%s8690_s30 + $0x2e8] ss:$16 sps:$4 sm:$0xff]  }
 0x10a   : > { %3061 = vmatprep.subr.bf16.mxu0 %v7333_v40  ;;  %3266 = vmatprep.subr.bf16.mxu1 %v7335_v41  ;;  %v7419_v40 = vld [vmem:[%s8690_s30 + $0x304] ss:$16 sps:$4 sm:$0xff]   ;;  %v7422_v41 = vld [vmem:[%s8690_s30 + $0x30c] ss:$16 sps:$4 sm:$0xff]  }
 0x10d   : > { %3062 = vmatpush1.bf16.msra.mxu0 %v7337_v42  ;;  %3267 = vmatpush1.bf16.msra.mxu1 %v7338_v43  ;;  %v7417_v42 = vld [vmem:[%s8690_s30 + $0x300] ss:$16 sps:$4 sm:$0xff]   ;;  %v7420_v43 = vld [vmem:[%s8690_s30 + $0x308] ss:$16 sps:$4 sm:$0xff]  }
 0x10e   : > { %3063 = vmatprep.subr.bf16.mxu0 %v7339_v45  ;;  %3268 = vmatprep.subr.bf16.mxu1 %v7341_v46  ;;  %v7425_v45 = vld [vmem:[%s8690_s30 + $0x324] ss:$16 sps:$4 sm:$0xff]   ;;  %v7428_v46 = vld [vmem:[%s8690_s30 + $0x32c] ss:$16 sps:$4 sm:$0xff]  }
 0x111   : > { %3064 = vmatpush1.bf16.msra.mxu0 %v7343_v48  ;;  %3269 = vmatpush1.bf16.msra.mxu1 %v7344_v50  ;;  %v7423_v48 = vld [vmem:[%s8690_s30 + $0x320] ss:$16 sps:$4 sm:$0xff]   ;;  %v7431_v50 = vld [vmem:[%s8690_s30 + $0x344] ss:$16 sps:$4 sm:$0xff]  }
 0x112   : > { %3065 = vmatprep.subr.bf16.mxu0 %v7345_v51  ;;  %3270 = vmatprep.subr.bf16.mxu1 %v7347_v52  ;;  %v7434_v51 = vld [vmem:[%s8690_s30 + $0x34c] ss:$16 sps:$4 sm:$0xff]   ;;  %v7429_v52 = vld [vmem:[%s8690_s30 + $0x340] ss:$16 sps:$4 sm:$0xff]  }
 0x115   : > { %3066 = vmatpush1.bf16.msra.mxu0 %v7349_v54  ;;  %3271 = vmatpush1.bf16.msra.mxu1 %v7350_v56  ;;  %v7437_v54 = vld [vmem:[%s8690_s30 + $0x364] ss:$16 sps:$4 sm:$0xff]   ;;  %v7435_v56 = vld [vmem:[%s8690_s30 + $0x360] ss:$16 sps:$4 sm:$0xff]  }
 0x116   : > { %3067 = vmatprep.subr.bf16.mxu0 %v7351_v57  ;;  %3272 = vmatprep.subr.bf16.mxu1 %v7353_v58  ;;  %v7438_v57 = vld [vmem:[%s8690_s30 + $0x368] ss:$16 sps:$4 sm:$0xff]   ;;  %v7443_v58 = vld [vmem:[%s8690_s30 + $0x384] ss:$16 sps:$4 sm:$0xff]  }
 0x119   : > { %3068 = vmatpush1.bf16.msra.mxu0 %v7355_v59  ;;  %3273 = vmatpush1.bf16.msra.mxu1 %v7356_v60  ;;  %v7446_v59 = vld [vmem:[%s8690_s30 + $0x38c] ss:$16 sps:$4 sm:$0xff]   ;;  %v7441_v60 = vld [vmem:[%s8690_s30 + $0x380] ss:$16 sps:$4 sm:$0xff]  }
 0x11a   : > { %3069 = vmatprep.subr.bf16.mxu0 %v7357_v61  ;;  %3274 = vmatprep.subr.bf16.mxu1 %v7359_v62  ;;  %v7444_v61 = vld [vmem:[%s8690_s30 + $0x388] ss:$16 sps:$4 sm:$0xff]   ;;  %v7449_v62 = vld [vmem:[%s8690_s30 + $0x3a4] ss:$16 sps:$4 sm:$0xff]  }
 0x11d   : > { %3070 = vmatpush1.bf16.msra.mxu0 %v7361_v63  ;;  %3275 = vmatpush1.bf16.msra.mxu1 %v7362_v0  ;;  %v7452_v63 = vld [vmem:[%s8690_s30 + $0x3ac] ss:$16 sps:$4 sm:$0xff]   ;;  %v7447_v0 = vld [vmem:[%s8690_s30 + $0x3a0] ss:$16 sps:$4 sm:$0xff]  }
 0x11e   : > { %3071 = vmatprep.subr.bf16.mxu0 %v7363_v1  ;;  %3276 = vmatprep.subr.bf16.mxu1 %v7365_v2  ;;  %v7450_v1 = vld [vmem:[%s8690_s30 + $0x3a8] ss:$16 sps:$4 sm:$0xff]   ;;  %v7455_v2 = vld [vmem:[%s8690_s30 + $0x3c4] ss:$16 sps:$4 sm:$0xff]  }
 0x121   : > { %3072 = vmatpush1.bf16.msra.mxu0 %v7367_v3  ;;  %3277 = vmatpush1.bf16.msra.mxu1 %v7368_v4  ;;  %v7458_v3 = vld [vmem:[%s8690_s30 + $0x3cc] ss:$16 sps:$4 sm:$0xff]   ;;  %v1374_v4 = vcombine.high %v8760_v47, %v8760_v47  ;;  %v7462_v47 = vld [vmem:[%s8690_s30 + $0x3e8] ss:$16 sps:$4 sm:$0xff]  }
 0x122   : > { %3082 = vmatprep.subr.bf16.mxu0 %v7371_v5  ;;  %3287 = vmatprep.subr.bf16.mxu1 %v7374_v6  ;;  %v7453_v5 = vld [vmem:[%s8690_s30 + $0x3c0] ss:$16 sps:$4 sm:$0xff]   ;;  %v7456_v6 = vld [vmem:[%s8690_s30 + $0x3c8] ss:$16 sps:$4 sm:$0xff]  }
 0x124   : > { %3074 = vmatmul.mubr.bf16.vlgmr.msra.gmra.mrb[0].mxu0 %v8787_v8  ;;  %3279 = vmatmul.mubr.bf16.vlgmr.msra.gmra.mrb[0].mxu1 %v8787_v8 }
 0x125   : > { %3083 = vmatpush1.bf16.msra.mxu0 %v7369_v7  ;;  %3288 = vmatpush1.bf16.msra.mxu1 %v7372_v9  ;;  %v7461_v7 = vld [vmem:[%s8690_s30 + $0x3e4] ss:$16 sps:$4 sm:$0xff]   ;;  %v7464_v9 = vld [vmem:[%s8690_s30 + $0x3ec] ss:$16 sps:$4 sm:$0xff]  }
 0x126   : > { %3084 = vmatprep.subr.bf16.mxu0 %v7377_v10  ;;  %3289 = vmatprep.subr.bf16.mxu1 %v7380_v11  ;;  %v8853_v10 = vrot.slane %v1374_v4, %v8753_v44  ;;  %v7459_v11 = vld [vmem:[%s8690_s30 + $0x3e0] ss:$16 sps:$4 sm:$0xff]   ;;  %v7540_v4 = vld [vmem:[%s8690_s30 + $0x588] ss:$16 sps:$4 sm:$0xff]  }
 0x127   : > { %3114 = vmatprep.mubr.bf16.mxu0 %v1421_v12  ;;  %3319 = vmatprep.mubr.bf16.mxu1 %v1421_v12  ;;  %v7467_v12 = vld [vmem:[%s8690_s30 + $0x404] ss:$16 sps:$4 sm:$0xff]  }
 0x129   : > { %3085 = vmatpush1.bf16.msra.mxu0 %v7375_v13  ;;  %3290 = vmatpush1.bf16.msra.mxu1 %v7378_v14  ;;  %v7470_v13 = vld [vmem:[%s8690_s30 + $0x40c] ss:$16 sps:$4 sm:$0xff]   ;;  %v1390_v14 = vcombine.high %v8853_v10, %v8853_v10 }
 0x12a   : > { %3086 = vmatprep.subr.bf16.mxu0 %v7383_v15  ;;  %3291 = vmatprep.subr.bf16.mxu1 %v7386_v16  ;;  %v7465_v15 = vld [vmem:[%s8690_s30 + $0x400] ss:$16 sps:$4 sm:$0xff]   ;;  %v1419_v16 = vcombine.high %v8787_v8, %v8787_v8  ;;  %v7474_v8 = vld [vmem:[%s8690_s30 + $0x428] ss:$16 sps:$4 sm:$0xff]  }
 0x12d   : > { %3087 = vmatpush1.bf16.msra.mxu0 %v7381_v17  ;;  %3292 = vmatpush1.bf16.msra.mxu1 %v7384_v18  ;;  %v7468_v17 = vld [vmem:[%s8690_s30 + $0x408] ss:$16 sps:$4 sm:$0xff]   ;;  %v7473_v18 = vld [vmem:[%s8690_s30 + $0x424] ss:$16 sps:$4 sm:$0xff]  }
 0x12e   : > { %3088 = vmatprep.subr.bf16.mxu0 %v7389_v19  ;;  %3293 = vmatprep.subr.bf16.mxu1 %v7392_v20  ;;  %v7476_v19 = vld [vmem:[%s8690_s30 + $0x42c] ss:$16 sps:$4 sm:$0xff]   ;;  %v8868_v20 = vrot.slane %v1390_v14, %v8753_v44  ;;  %v7557_v14 = vld [vmem:[%s8690_s30 + $0x5e4] ss:$16 sps:$4 sm:$0xff]  }
 0x131   : > { %3089 = vmatpush1.bf16.msra.mxu0 %v7387_v21  ;;  %3294 = vmatpush1.bf16.msra.mxu1 %v7390_v22  ;;  %v7471_v21 = vld [vmem:[%s8690_s30 + $0x420] ss:$16 sps:$4 sm:$0xff]   ;;  %v7479_v22 = vld [vmem:[%s8690_s30 + $0x444] ss:$16 sps:$4 sm:$0xff]  }
 0x132   : > { %3090 = vmatprep.subr.bf16.mxu0 %v7395_v23  ;;  %3295 = vmatprep.subr.bf16.mxu1 %v7398_v24  ;;  %v7482_v23 = vld [vmem:[%s8690_s30 + $0x44c] ss:$16 sps:$4 sm:$0xff]   ;;  %v7477_v24 = vld [vmem:[%s8690_s30 + $0x440] ss:$16 sps:$4 sm:$0xff]  }
 0x135   : > { %3091 = vmatpush1.bf16.msra.mxu0 %v7393_v25  ;;  %3296 = vmatpush1.bf16.msra.mxu1 %v7396_v26  ;;  %v7480_v25 = vld [vmem:[%s8690_s30 + $0x448] ss:$16 sps:$4 sm:$0xff]   ;;  %v7485_v26 = vld [vmem:[%s8690_s30 + $0x464] ss:$16 sps:$4 sm:$0xff]  }
 0x136   : > { %3092 = vmatprep.subr.bf16.mxu0 %v7401_v27  ;;  %3297 = vmatprep.subr.bf16.mxu1 %v7404_v28  ;;  %v7488_v27 = vld [vmem:[%s8690_s30 + $0x46c] ss:$16 sps:$4 sm:$0xff]   ;;  %v7483_v28 = vld [vmem:[%s8690_s30 + $0x460] ss:$16 sps:$4 sm:$0xff]  }
 0x139   : > { %3093 = vmatpush1.bf16.msra.mxu0 %v7399_v29  ;;  %3298 = vmatpush1.bf16.msra.mxu1 %v7402_v30  ;;  %v7486_v29 = vld [vmem:[%s8690_s30 + $0x468] ss:$16 sps:$4 sm:$0xff]   ;;  %v7491_v30 = vld [vmem:[%s8690_s30 + $0x484] ss:$16 sps:$4 sm:$0xff]  }
 0x13a   : > { %3094 = vmatprep.subr.bf16.mxu0 %v7407_v31  ;;  %3299 = vmatprep.subr.bf16.mxu1 %v7410_v32  ;;  %v7494_v31 = vld [vmem:[%s8690_s30 + $0x48c] ss:$16 sps:$4 sm:$0xff]   ;;  %v7489_v32 = vld [vmem:[%s8690_s30 + $0x480] ss:$16 sps:$4 sm:$0xff]  }
 0x13d   : > { %3095 = vmatpush1.bf16.msra.mxu0 %v7405_v33  ;;  %3300 = vmatpush1.bf16.msra.mxu1 %v7408_v34  ;;  %v7492_v33 = vld [vmem:[%s8690_s30 + $0x488] ss:$16 sps:$4 sm:$0xff]   ;;  %v7497_v34 = vld [vmem:[%s8690_s30 + $0x4a4] ss:$16 sps:$4 sm:$0xff]  }
 0x13e   : > { %3096 = vmatprep.subr.bf16.mxu0 %v7413_v35  ;;  %3301 = vmatprep.subr.bf16.mxu1 %v7416_v36  ;;  %v7500_v35 = vld [vmem:[%s8690_s30 + $0x4ac] ss:$16 sps:$4 sm:$0xff]   ;;  %v7495_v36 = vld [vmem:[%s8690_s30 + $0x4a0] ss:$16 sps:$4 sm:$0xff]  }
 0x141   : > { %3097 = vmatpush1.bf16.msra.mxu0 %v7411_v38  ;;  %3302 = vmatpush1.bf16.msra.mxu1 %v7414_v39  ;;  %v7498_v38 = vld [vmem:[%s8690_s30 + $0x4a8] ss:$16 sps:$4 sm:$0xff]   ;;  %v7503_v39 = vld [vmem:[%s8690_s30 + $0x4c4] ss:$16 sps:$4 sm:$0xff]  }
 0x142   : > { %3098 = vmatprep.subr.bf16.mxu0 %v7419_v40  ;;  %3303 = vmatprep.subr.bf16.mxu1 %v7422_v41  ;;  %v7506_v40 = vld [vmem:[%s8690_s30 + $0x4cc] ss:$16 sps:$4 sm:$0xff]   ;;  %v7501_v41 = vld [vmem:[%s8690_s30 + $0x4c0] ss:$16 sps:$4 sm:$0xff]  }
 0x145   : > { %3099 = vmatpush1.bf16.msra.mxu0 %v7417_v42  ;;  %3304 = vmatpush1.bf16.msra.mxu1 %v7420_v43  ;;  %v7504_v42 = vld [vmem:[%s8690_s30 + $0x4c8] ss:$16 sps:$4 sm:$0xff]   ;;  %v7509_v43 = vld [vmem:[%s8690_s30 + $0x4e4] ss:$16 sps:$4 sm:$0xff]  }
 0x146   : > { %3100 = vmatprep.subr.bf16.mxu0 %v7425_v45  ;;  %3305 = vmatprep.subr.bf16.mxu1 %v7428_v46  ;;  %v7512_v45 = vld [vmem:[%s8690_s30 + $0x4ec] ss:$16 sps:$4 sm:$0xff]   ;;  %v7507_v46 = vld [vmem:[%s8690_s30 + $0x4e0] ss:$16 sps:$4 sm:$0xff]  }
 0x149   : > { %3101 = vmatpush1.bf16.msra.mxu0 %v7423_v48  ;;  %3306 = vmatpush1.bf16.msra.mxu1 %v7426_v49  ;;  %v7510_v48 = vld [vmem:[%s8690_s30 + $0x4e8] ss:$16 sps:$4 sm:$0xff]   ;;  %v7515_v49 = vld [vmem:[%s8690_s30 + $0x504] ss:$16 sps:$4 sm:$0xff]  }
 0x14a   : > { %3102 = vmatprep.subr.bf16.mxu0 %v7431_v50  ;;  %3307 = vmatprep.subr.bf16.mxu1 %v7434_v51  ;;  %v7518_v50 = vld [vmem:[%s8690_s30 + $0x50c] ss:$16 sps:$4 sm:$0xff]   ;;  %v7513_v51 = vld [vmem:[%s8690_s30 + $0x500] ss:$16 sps:$4 sm:$0xff]  }
 0x14d   : > { %3103 = vmatpush1.bf16.msra.mxu0 %v7429_v52  ;;  %3308 = vmatpush1.bf16.msra.mxu1 %v7432_v53  ;;  %v7516_v52 = vld [vmem:[%s8690_s30 + $0x508] ss:$16 sps:$4 sm:$0xff]   ;;  %v7521_v53 = vld [vmem:[%s8690_s30 + $0x524] ss:$16 sps:$4 sm:$0xff]  }
 0x14e   : > { %3104 = vmatprep.subr.bf16.mxu0 %v7437_v54  ;;  %3309 = vmatprep.subr.bf16.mxu1 %v7440_v55  ;;  %v7524_v54 = vld [vmem:[%s8690_s30 + $0x52c] ss:$16 sps:$4 sm:$0xff]   ;;  %v7519_v55 = vld [vmem:[%s8690_s30 + $0x520] ss:$16 sps:$4 sm:$0xff]  }
 0x151   : > { %3105 = vmatpush1.bf16.msra.mxu0 %v7435_v56  ;;  %3310 = vmatpush1.bf16.msra.mxu1 %v7438_v57  ;;  %v7522_v56 = vld [vmem:[%s8690_s30 + $0x528] ss:$16 sps:$4 sm:$0xff]   ;;  %v7527_v57 = vld [vmem:[%s8690_s30 + $0x544] ss:$16 sps:$4 sm:$0xff]  }
 0x152   : > { %3106 = vmatprep.subr.bf16.mxu0 %v7443_v58  ;;  %3311 = vmatprep.subr.bf16.mxu1 %v7446_v59  ;;  %v7530_v58 = vld [vmem:[%s8690_s30 + $0x54c] ss:$16 sps:$4 sm:$0xff]   ;;  %v7525_v59 = vld [vmem:[%s8690_s30 + $0x540] ss:$16 sps:$4 sm:$0xff]  }
 0x155   : > { %3107 = vmatpush1.bf16.msra.mxu0 %v7441_v60  ;;  %3312 = vmatpush1.bf16.msra.mxu1 %v7444_v61  ;;  %v7528_v60 = vld [vmem:[%s8690_s30 + $0x548] ss:$16 sps:$4 sm:$0xff]   ;;  %v7533_v61 = vld [vmem:[%s8690_s30 + $0x564] ss:$16 sps:$4 sm:$0xff]  }
 0x156   : > { %3108 = vmatprep.subr.bf16.mxu0 %v7449_v62  ;;  %3313 = vmatprep.subr.bf16.mxu1 %v7452_v63  ;;  %v7536_v62 = vld [vmem:[%s8690_s30 + $0x56c] ss:$16 sps:$4 sm:$0xff]   ;;  %v7531_v63 = vld [vmem:[%s8690_s30 + $0x560] ss:$16 sps:$4 sm:$0xff]  }
 0x159   : > { %3109 = vmatpush1.bf16.msra.mxu0 %v7447_v0  ;;  %3314 = vmatpush1.bf16.msra.mxu1 %v7450_v1  ;;  %v7534_v0 = vld [vmem:[%s8690_s30 + $0x568] ss:$16 sps:$4 sm:$0xff]   ;;  %v7539_v1 = vld [vmem:[%s8690_s30 + $0x584] ss:$16 sps:$4 sm:$0xff]  }
 0x15a   : > { %3110 = vmatprep.subr.bf16.mxu0 %v7455_v2  ;;  %3315 = vmatprep.subr.bf16.mxu1 %v7458_v3  ;;  %v7542_v2 = vld [vmem:[%s8690_s30 + $0x58c] ss:$16 sps:$4 sm:$0xff]   ;;  %v7537_v3 = vld [vmem:[%s8690_s30 + $0x580] ss:$16 sps:$4 sm:$0xff]  }
 0x15d   : > { %3111 = vmatpush1.bf16.msra.mxu0 %v7453_v5  ;;  %3316 = vmatpush1.bf16.msra.mxu1 %v7456_v6  ;;  %v7545_v5 = vld [vmem:[%s8690_s30 + $0x5a4] ss:$16 sps:$4 sm:$0xff]   ;;  %v7548_v6 = vld [vmem:[%s8690_s30 + $0x5ac] ss:$16 sps:$4 sm:$0xff]  }
 0x15e   : > { %3112 = vmatprep.subr.bf16.mxu0 %v7461_v7  ;;  %3317 = vmatprep.subr.bf16.mxu1 %v7464_v9  ;;  %v7543_v7 = vld [vmem:[%s8690_s30 + $0x5a0] ss:$16 sps:$4 sm:$0xff]   ;;  %v7546_v9 = vld [vmem:[%s8690_s30 + $0x5a8] ss:$16 sps:$4 sm:$0xff]  }
 0x161   : > { %3113 = vmatpush1.bf16.msra.mxu0 %v7459_v11  ;;  %3318 = vmatpush1.bf16.msra.mxu1 %v7462_v47  ;;  %v7551_v11 = vld [vmem:[%s8690_s30 + $0x5c4] ss:$16 sps:$4 sm:$0xff]   ;;  %v7554_v47 = vld [vmem:[%s8690_s30 + $0x5cc] ss:$16 sps:$4 sm:$0xff]  }
 0x162   : > { %3123 = vmatprep.subr.bf16.mxu0 %v7467_v12  ;;  %3328 = vmatprep.subr.bf16.mxu1 %v7470_v13  ;;  %v7549_v12 = vld [vmem:[%s8690_s30 + $0x5c0] ss:$16 sps:$4 sm:$0xff]   ;;  %v7552_v13 = vld [vmem:[%s8690_s30 + $0x5c8] ss:$16 sps:$4 sm:$0xff]  }
 0x164   : > { %3115 = vmatmul.mubr.bf16.vlgmr.msra.gmra.mrb[0].mxu0 %v1419_v16  ;;  %3320 = vmatmul.mubr.bf16.vlgmr.msra.gmra.mrb[0].mxu1 %v1419_v16  ;;  %v7555_v16 = vld [vmem:[%s8690_s30 + $0x5e0] ss:$16 sps:$4 sm:$0xff]  }
 0x165   : > { %3124 = vmatpush1.bf16.msra.mxu0 %v7465_v15  ;;  %3329 = vmatpush1.bf16.msra.mxu1 %v7468_v17  ;;  %v7560_v15 = vld [vmem:[%s8690_s30 + $0x5ec] ss:$16 sps:$4 sm:$0xff]   ;;  %v7558_v17 = vld [vmem:[%s8690_s30 + $0x5e8] ss:$16 sps:$4 sm:$0xff]  }
 0x166   : > { %3125 = vmatprep.subr.bf16.mxu0 %v7473_v18  ;;  %3330 = vmatprep.subr.bf16.mxu1 %v7476_v19  ;;  %v7564_v18 = vld [vmem:[%s8690_s30 + $0x604] ss:$16 sps:$4 sm:$0xff]   ;;  %v7567_v19 = vld [vmem:[%s8690_s30 + $0x60c] ss:$16 sps:$4 sm:$0xff]  }
 0x167   : > { %3155 = vmatprep.mubr.bf16.mxu0 %v8868_v20  ;;  %3360 = vmatprep.mubr.bf16.mxu1 %v8868_v20 }
 0x169   : > { %3126 = vmatpush1.bf16.msra.mxu0 %v7471_v21  ;;  %3331 = vmatpush1.bf16.msra.mxu1 %v7474_v8  ;;  %v7562_v21 = vld [vmem:[%s8690_s30 + $0x600] ss:$16 sps:$4 sm:$0xff]   ;;  %v8935_v8 = vrot.slane %v8853_v10, %v8753_v44 }
 0x16a   : > { %3127 = vmatprep.subr.bf16.mxu0 %v7479_v22  ;;  %3332 = vmatprep.subr.bf16.mxu1 %v7482_v23  ;;  %v7565_v22 = vld [vmem:[%s8690_s30 + $0x608] ss:$16 sps:$4 sm:$0xff]   ;;  %v7570_v23 = vld [vmem:[%s8690_s30 + $0x624] ss:$16 sps:$4 sm:$0xff]   ;;  %v7568_v10 = vld [vmem:[%s8690_s30 + $0x620] ss:$16 sps:$4 sm:$0xff]  }
 0x16d   : > { %3128 = vmatpush1.bf16.msra.mxu0 %v7477_v24  ;;  %3333 = vmatpush1.bf16.msra.mxu1 %v7480_v25  ;;  %v7573_v24 = vld [vmem:[%s8690_s30 + $0x62c] ss:$16 sps:$4 sm:$0xff]   ;;  %v1422_v25 = vcombine.high %v8868_v20, %v8868_v20  ;;  %v7574_v20 = vld [vmem:[%s8690_s30 + $0x640] ss:$16 sps:$4 sm:$0xff]  }
 0x16e   : > { %3129 = vmatprep.subr.bf16.mxu0 %v7485_v26  ;;  %3334 = vmatprep.subr.bf16.mxu1 %v7488_v27  ;;  %v7571_v26 = vld [vmem:[%s8690_s30 + $0x628] ss:$16 sps:$4 sm:$0xff]   ;;  %v7576_v27 = vld [vmem:[%s8690_s30 + $0x644] ss:$16 sps:$4 sm:$0xff]  }
 0x171   : > { %3130 = vmatpush1.bf16.msra.mxu0 %v7483_v28  ;;  %3335 = vmatpush1.bf16.msra.mxu1 %v7486_v29  ;;  %v7579_v28 = vld [vmem:[%s8690_s30 + $0x64c] ss:$16 sps:$4 sm:$0xff]   ;;  %v7577_v29 = vld [vmem:[%s8690_s30 + $0x648] ss:$16 sps:$4 sm:$0xff]  }
 0x172   : > { %3131 = vmatprep.subr.bf16.mxu0 %v7491_v30  ;;  %3336 = vmatprep.subr.bf16.mxu1 %v7494_v31  ;;  %v7582_v30 = vld [vmem:[%s8690_s30 + $0x664] ss:$16 sps:$4 sm:$0xff]   ;;  %v7585_v31 = vld [vmem:[%s8690_s30 + $0x66c] ss:$16 sps:$4 sm:$0xff]  }
 0x175   : > { %3132 = vmatpush1.bf16.msra.mxu0 %v7489_v32  ;;  %3337 = vmatpush1.bf16.msra.mxu1 %v7492_v33  ;;  %v7580_v32 = vld [vmem:[%s8690_s30 + $0x660] ss:$16 sps:$4 sm:$0xff]   ;;  %v7583_v33 = vld [vmem:[%s8690_s30 + $0x668] ss:$16 sps:$4 sm:$0xff]  }
 0x176   : > { %3133 = vmatprep.subr.bf16.mxu0 %v7497_v34  ;;  %3338 = vmatprep.subr.bf16.mxu1 %v7500_v35  ;;  %v7588_v34 = vld [vmem:[%s8690_s30 + $0x684] ss:$16 sps:$4 sm:$0xff]   ;;  %v7591_v35 = vld [vmem:[%s8690_s30 + $0x68c] ss:$16 sps:$4 sm:$0xff]  }
 0x179   : > { %3134 = vmatpush1.bf16.msra.mxu0 %v7495_v36  ;;  %3339 = vmatpush1.bf16.msra.mxu1 %v7498_v38  ;;  %v7586_v36 = vld [vmem:[%s8690_s30 + $0x680] ss:$16 sps:$4 sm:$0xff]   ;;  %v7589_v38 = vld [vmem:[%s8690_s30 + $0x688] ss:$16 sps:$4 sm:$0xff]  }
 0x17a   : > { %3135 = vmatprep.subr.bf16.mxu0 %v7503_v39  ;;  %3340 = vmatprep.subr.bf16.mxu1 %v7506_v40  ;;  %v7594_v39 = vld [vmem:[%s8690_s30 + $0x6a4] ss:$16 sps:$4 sm:$0xff]   ;;  %v7597_v40 = vld [vmem:[%s8690_s30 + $0x6ac] ss:$16 sps:$4 sm:$0xff]  }
 0x17d   : > { %3136 = vmatpush1.bf16.msra.mxu0 %v7501_v41  ;;  %3341 = vmatpush1.bf16.msra.mxu1 %v7504_v42  ;;  %v7592_v41 = vld [vmem:[%s8690_s30 + $0x6a0] ss:$16 sps:$4 sm:$0xff]   ;;  %v7595_v42 = vld [vmem:[%s8690_s30 + $0x6a8] ss:$16 sps:$4 sm:$0xff]  }
 0x17e   : > { %3137 = vmatprep.subr.bf16.mxu0 %v7509_v43  ;;  %3342 = vmatprep.subr.bf16.mxu1 %v7512_v45  ;;  %v7600_v43 = vld [vmem:[%s8690_s30 + $0x6c4] ss:$16 sps:$4 sm:$0xff]   ;;  %v7603_v45 = vld [vmem:[%s8690_s30 + $0x6cc] ss:$16 sps:$4 sm:$0xff]  }
 0x181   : > { %3138 = vmatpush1.bf16.msra.mxu0 %v7507_v46  ;;  %3343 = vmatpush1.bf16.msra.mxu1 %v7510_v48  ;;  %v7598_v46 = vld [vmem:[%s8690_s30 + $0x6c0] ss:$16 sps:$4 sm:$0xff]   ;;  %v7601_v48 = vld [vmem:[%s8690_s30 + $0x6c8] ss:$16 sps:$4 sm:$0xff]  }
 0x182   : > { %3139 = vmatprep.subr.bf16.mxu0 %v7515_v49  ;;  %3344 = vmatprep.subr.bf16.mxu1 %v7518_v50  ;;  %v7606_v49 = vld [vmem:[%s8690_s30 + $0x6e4] ss:$16 sps:$4 sm:$0xff]   ;;  %v7609_v50 = vld [vmem:[%s8690_s30 + $0x6ec] ss:$16 sps:$4 sm:$0xff]  }
 0x185   : > { %3140 = vmatpush1.bf16.msra.mxu0 %v7513_v51  ;;  %3345 = vmatpush1.bf16.msra.mxu1 %v7516_v52  ;;  %v7604_v51 = vld [vmem:[%s8690_s30 + $0x6e0] ss:$16 sps:$4 sm:$0xff]   ;;  %v7607_v52 = vld [vmem:[%s8690_s30 + $0x6e8] ss:$16 sps:$4 sm:$0xff]  }
 0x186   : > { %3141 = vmatprep.subr.bf16.mxu0 %v7521_v53  ;;  %3346 = vmatprep.subr.bf16.mxu1 %v7524_v54  ;;  %v7612_v53 = vld [vmem:[%s8690_s30 + $0x704] ss:$16 sps:$4 sm:$0xff]   ;;  %v7615_v54 = vld [vmem:[%s8690_s30 + $0x70c] ss:$16 sps:$4 sm:$0xff]  }
 0x189   : > { %3142 = vmatpush1.bf16.msra.mxu0 %v7519_v55  ;;  %3347 = vmatpush1.bf16.msra.mxu1 %v7522_v56  ;;  %v7610_v55 = vld [vmem:[%s8690_s30 + $0x700] ss:$16 sps:$4 sm:$0xff]   ;;  %v7613_v56 = vld [vmem:[%s8690_s30 + $0x708] ss:$16 sps:$4 sm:$0xff]  }
 0x18a   : > { %3143 = vmatprep.subr.bf16.mxu0 %v7527_v57  ;;  %3348 = vmatprep.subr.bf16.mxu1 %v7530_v58  ;;  %v7618_v57 = vld [vmem:[%s8690_s30 + $0x724] ss:$16 sps:$4 sm:$0xff]   ;;  %v7621_v58 = vld [vmem:[%s8690_s30 + $0x72c] ss:$16 sps:$4 sm:$0xff]  }
 0x18d   : > { %3144 = vmatpush1.bf16.msra.mxu0 %v7525_v59  ;;  %3349 = vmatpush1.bf16.msra.mxu1 %v7528_v60  ;;  %v7616_v59 = vld [vmem:[%s8690_s30 + $0x720] ss:$16 sps:$4 sm:$0xff]   ;;  %v7619_v60 = vld [vmem:[%s8690_s30 + $0x728] ss:$16 sps:$4 sm:$0xff]  }
 0x18e   : > { %3145 = vmatprep.subr.bf16.mxu0 %v7533_v61  ;;  %3350 = vmatprep.subr.bf16.mxu1 %v7536_v62  ;;  %v7624_v61 = vld [vmem:[%s8690_s30 + $0x744] ss:$16 sps:$4 sm:$0xff]   ;;  %v7627_v62 = vld [vmem:[%s8690_s30 + $0x74c] ss:$16 sps:$4 sm:$0xff]  }
 0x191   : > { %3146 = vmatpush1.bf16.msra.mxu0 %v7531_v63  ;;  %3351 = vmatpush1.bf16.msra.mxu1 %v7534_v0  ;;  %v7622_v63 = vld [vmem:[%s8690_s30 + $0x740] ss:$16 sps:$4 sm:$0xff]   ;;  %v7625_v0 = vld [vmem:[%s8690_s30 + $0x748] ss:$16 sps:$4 sm:$0xff]  }
 0x192   : > { %3147 = vmatprep.subr.bf16.mxu0 %v7539_v1  ;;  %3352 = vmatprep.subr.bf16.mxu1 %v7542_v2  ;;  %v7630_v1 = vld [vmem:[%s8690_s30 + $0x764] ss:$16 sps:$4 sm:$0xff]   ;;  %v7633_v2 = vld [vmem:[%s8690_s30 + $0x76c] ss:$16 sps:$4 sm:$0xff]  }
 0x195   : > { %3148 = vmatpush1.bf16.msra.mxu0 %v7537_v3  ;;  %3353 = vmatpush1.bf16.msra.mxu1 %v7540_v4  ;;  %v7628_v3 = vld [vmem:[%s8690_s30 + $0x760] ss:$16 sps:$4 sm:$0xff]   ;;  %v7631_v4 = vld [vmem:[%s8690_s30 + $0x768] ss:$16 sps:$4 sm:$0xff]  }
 0x196   : > { %3149 = vmatprep.subr.bf16.mxu0 %v7545_v5  ;;  %3354 = vmatprep.subr.bf16.mxu1 %v7548_v6  ;;  %v7636_v5 = vld [vmem:[%s8690_s30 + $0x784] ss:$16 sps:$4 sm:$0xff]   ;;  %v7639_v6 = vld [vmem:[%s8690_s30 + $0x78c] ss:$16 sps:$4 sm:$0xff]  }
 0x199   : > { %3150 = vmatpush1.bf16.msra.mxu0 %v7543_v7  ;;  %3355 = vmatpush1.bf16.msra.mxu1 %v7546_v9  ;;  %v7634_v7 = vld [vmem:[%s8690_s30 + $0x780] ss:$16 sps:$4 sm:$0xff]   ;;  %v7637_v9 = vld [vmem:[%s8690_s30 + $0x788] ss:$16 sps:$4 sm:$0xff]  }
 0x19a   : > { %3151 = vmatprep.subr.bf16.mxu0 %v7551_v11  ;;  %3356 = vmatprep.subr.bf16.mxu1 %v7554_v47  ;;  %v7642_v11 = vld [vmem:[%s8690_s30 + $0x7a4] ss:$16 sps:$4 sm:$0xff]   ;;  %v7645_v47 = vld [vmem:[%s8690_s30 + $0x7ac] ss:$16 sps:$4 sm:$0xff]  }
 0x19d   : > { %3152 = vmatpush1.bf16.msra.mxu0 %v7549_v12  ;;  %3357 = vmatpush1.bf16.msra.mxu1 %v7552_v13  ;;  %v7640_v12 = vld [vmem:[%s8690_s30 + $0x7a0] ss:$16 sps:$4 sm:$0xff]   ;;  %v7643_v13 = vld [vmem:[%s8690_s30 + $0x7a8] ss:$16 sps:$4 sm:$0xff]  }
 0x19e   : > { %3153 = vmatprep.subr.bf16.mxu0 %v7557_v14  ;;  %3358 = vmatprep.subr.bf16.mxu1 %v7560_v15  ;;  %v7648_v14 = vld [vmem:[%s8690_s30 + $0x7c4] ss:$16 sps:$4 sm:$0xff]   ;;  %v7651_v15 = vld [vmem:[%s8690_s30 + $0x7cc] ss:$16 sps:$4 sm:$0xff]  }
 0x1a1   : > { %3154 = vmatpush1.bf16.msra.mxu0 %v7555_v16  ;;  %3359 = vmatpush1.bf16.msra.mxu1 %v7558_v17  ;;  %v7646_v16 = vld [vmem:[%s8690_s30 + $0x7c0] ss:$16 sps:$4 sm:$0xff]   ;;  %v7649_v17 = vld [vmem:[%s8690_s30 + $0x7c8] ss:$16 sps:$4 sm:$0xff]  }
 0x1a2   : > { %3164 = vmatprep.subr.bf16.mxu0 %v7564_v18  ;;  %3369 = vmatprep.subr.bf16.mxu1 %v7567_v19  ;;  %v7654_v18 = vld [vmem:[%s8690_s30 + $0x7e4] ss:$16 sps:$4 sm:$0xff]   ;;  %v7657_v19 = vld [vmem:[%s8690_s30 + $0x7ec] ss:$16 sps:$4 sm:$0xff]  }
 0x1a4   : > { %3156 = vmatmul.mubr.bf16.vlgmr.msra.gmra.mrb[0].mxu0 %v8935_v8  ;;  %3361 = vmatmul.mubr.bf16.vlgmr.msra.gmra.mrb[0].mxu1 %v8935_v8 }
 0x1a5   : > { %3165 = vmatpush1.bf16.msra.mxu0 %v7562_v21  ;;  %3370 = vmatpush1.bf16.msra.mxu1 %v7565_v22  ;;  %v9003_v21 = vld.sshfl [vmem:[%s9667_s0 + $0x8] sm:$0x11 pattern:$0x75316420]  ;;  %v7652_v22 = vld [vmem:[%s8690_s30 + $0x7e0] ss:$16 sps:$4 sm:$0xff]  }
 0x1a6   : > { %3166 = vmatprep.subr.bf16.mxu0 %v7570_v23  ;;  %3371 = vmatprep.subr.bf16.mxu1 %v7573_v24  ;;  %v7655_v23 = vld [vmem:[%s8690_s30 + $0x7e8] ss:$16 sps:$4 sm:$0xff]   ;;  %v7660_v24 = vld [vmem:[%s8690_s30 + $0x804] ss:$16 sps:$4 sm:$0xff]  }
 0x1a7   : > { %3196 = vmatprep.mubr.bf16.mxu0 %v1422_v25  ;;  %3401 = vmatprep.mubr.bf16.mxu1 %v1422_v25  ;;  %v7663_v25 = vld [vmem:[%s8690_s30 + $0x80c] ss:$16 sps:$4 sm:$0xff]  }
 0x1a9   : > { %3167 = vmatpush1.bf16.msra.mxu0 %v7568_v10  ;;  %3372 = vmatpush1.bf16.msra.mxu1 %v7571_v26  ;;  %v1430_v10 = vcombine.high %v9003_v21, %v9003_v21  ;;  %v1420_v26 = vcombine.high %v8935_v8, %v8935_v8  ;;  %v7664_v8 = vld [vmem:[%s8690_s30 + $0x820] ss:$16 sps:$4 sm:$0xff]  }
 0x1aa   : > { %3168 = vmatprep.subr.bf16.mxu0 %v7576_v27  ;;  %3373 = vmatprep.subr.bf16.mxu1 %v7579_v28  ;;  %v7658_v27 = vld [vmem:[%s8690_s30 + $0x800] ss:$16 sps:$4 sm:$0xff]   ;;  %v7661_v28 = vld [vmem:[%s8690_s30 + $0x808] ss:$16 sps:$4 sm:$0xff]  }
 0x1ad   : > { %3169 = vmatpush1.bf16.msra.mxu0 %v7574_v20  ;;  %3374 = vmatpush1.bf16.msra.mxu1 %v7577_v29  ;;  %v7666_v20 = vld [vmem:[%s8690_s30 + $0x824] ss:$16 sps:$4 sm:$0xff]   ;;  %v7669_v29 = vld [vmem:[%s8690_s30 + $0x82c] ss:$16 sps:$4 sm:$0xff]  }
 0x1ae   : > { %3170 = vmatprep.subr.bf16.mxu0 %v7582_v30  ;;  %3375 = vmatprep.subr.bf16.mxu1 %v7585_v31  ;;  %v1444_v30 = vrot.slane %v1430_v10, %v8753_v44  ;;  %v7667_v31 = vld [vmem:[%s8690_s30 + $0x828] ss:$16 sps:$4 sm:$0xff]  }
 0x1b1   : > { %3171 = vmatpush1.bf16.msra.mxu0 %v7580_v32  ;;  %3376 = vmatpush1.bf16.msra.mxu1 %v7583_v33  ;;  %v7672_v32 = vld [vmem:[%s8690_s30 + $0x844] ss:$16 sps:$4 sm:$0xff]   ;;  %v7675_v33 = vld [vmem:[%s8690_s30 + $0x84c] ss:$16 sps:$4 sm:$0xff]  }
 0x1b2   : > { %3172 = vmatprep.subr.bf16.mxu0 %v7588_v34  ;;  %3377 = vmatprep.subr.bf16.mxu1 %v7591_v35  ;;  %v7670_v34 = vld [vmem:[%s8690_s30 + $0x840] ss:$16 sps:$4 sm:$0xff]   ;;  %v7673_v35 = vld [vmem:[%s8690_s30 + $0x848] ss:$16 sps:$4 sm:$0xff]  }
 0x1b5   : > { %3173 = vmatpush1.bf16.msra.mxu0 %v7586_v36  ;;  %3378 = vmatpush1.bf16.msra.mxu1 %v7589_v38  ;;  %v7678_v36 = vld [vmem:[%s8690_s30 + $0x864] ss:$16 sps:$4 sm:$0xff]   ;;  %v7681_v38 = vld [vmem:[%s8690_s30 + $0x86c] ss:$16 sps:$4 sm:$0xff]  }
 0x1b6   : > { %3174 = vmatprep.subr.bf16.mxu0 %v7594_v39  ;;  %3379 = vmatprep.subr.bf16.mxu1 %v7597_v40  ;;  %v7676_v39 = vld [vmem:[%s8690_s30 + $0x860] ss:$16 sps:$4 sm:$0xff]   ;;  %v7679_v40 = vld [vmem:[%s8690_s30 + $0x868] ss:$16 sps:$4 sm:$0xff]  }
 0x1b9   : > { %3175 = vmatpush1.bf16.msra.mxu0 %v7592_v41  ;;  %3380 = vmatpush1.bf16.msra.mxu1 %v7595_v42  ;;  %v7684_v41 = vld [vmem:[%s8690_s30 + $0x884] ss:$16 sps:$4 sm:$0xff]   ;;  %v7687_v42 = vld [vmem:[%s8690_s30 + $0x88c] ss:$16 sps:$4 sm:$0xff]  }
 0x1ba   : > { %3176 = vmatprep.subr.bf16.mxu0 %v7600_v43  ;;  %3381 = vmatprep.subr.bf16.mxu1 %v7603_v45  ;;  %v7682_v43 = vld [vmem:[%s8690_s30 + $0x880] ss:$16 sps:$4 sm:$0xff]   ;;  %v7685_v45 = vld [vmem:[%s8690_s30 + $0x888] ss:$16 sps:$4 sm:$0xff]  }
 0x1bd   : > { %3177 = vmatpush1.bf16.msra.mxu0 %v7598_v46  ;;  %3382 = vmatpush1.bf16.msra.mxu1 %v7601_v48  ;;  %v7690_v46 = vld [vmem:[%s8690_s30 + $0x8a4] ss:$16 sps:$4 sm:$0xff]   ;;  %v7693_v48 = vld [vmem:[%s8690_s30 + $0x8ac] ss:$16 sps:$4 sm:$0xff]  }
 0x1be   : > { %3178 = vmatprep.subr.bf16.mxu0 %v7606_v49  ;;  %3383 = vmatprep.subr.bf16.mxu1 %v7609_v50  ;;  %v7688_v49 = vld [vmem:[%s8690_s30 + $0x8a0] ss:$16 sps:$4 sm:$0xff]   ;;  %v7691_v50 = vld [vmem:[%s8690_s30 + $0x8a8] ss:$16 sps:$4 sm:$0xff]  }
 0x1c1   : > { %3179 = vmatpush1.bf16.msra.mxu0 %v7604_v51  ;;  %3384 = vmatpush1.bf16.msra.mxu1 %v7607_v52  ;;  %v7696_v51 = vld [vmem:[%s8690_s30 + $0x8c4] ss:$16 sps:$4 sm:$0xff]   ;;  %v7699_v52 = vld [vmem:[%s8690_s30 + $0x8cc] ss:$16 sps:$4 sm:$0xff]  }
 0x1c2   : > { %3180 = vmatprep.subr.bf16.mxu0 %v7612_v53  ;;  %3385 = vmatprep.subr.bf16.mxu1 %v7615_v54  ;;  %v7694_v53 = vld [vmem:[%s8690_s30 + $0x8c0] ss:$16 sps:$4 sm:$0xff]   ;;  %v7697_v54 = vld [vmem:[%s8690_s30 + $0x8c8] ss:$16 sps:$4 sm:$0xff]  }
 0x1c5   : > { %3181 = vmatpush1.bf16.msra.mxu0 %v7610_v55  ;;  %3386 = vmatpush1.bf16.msra.mxu1 %v7613_v56  ;;  %v7702_v55 = vld [vmem:[%s8690_s30 + $0x8e4] ss:$16 sps:$4 sm:$0xff]   ;;  %v7705_v56 = vld [vmem:[%s8690_s30 + $0x8ec] ss:$16 sps:$4 sm:$0xff]  }
 0x1c6   : > { %3182 = vmatprep.subr.bf16.mxu0 %v7618_v57  ;;  %3387 = vmatprep.subr.bf16.mxu1 %v7621_v58  ;;  %v7700_v57 = vld [vmem:[%s8690_s30 + $0x8e0] ss:$16 sps:$4 sm:$0xff]   ;;  %v7703_v58 = vld [vmem:[%s8690_s30 + $0x8e8] ss:$16 sps:$4 sm:$0xff]  }
 0x1c9   : > { %3183 = vmatpush1.bf16.msra.mxu0 %v7616_v59  ;;  %3388 = vmatpush1.bf16.msra.mxu1 %v7619_v60  ;;  %v7708_v59 = vld [vmem:[%s8690_s30 + $0x904] ss:$16 sps:$4 sm:$0xff]   ;;  %v7711_v60 = vld [vmem:[%s8690_s30 + $0x90c] ss:$16 sps:$4 sm:$0xff]  }
 0x1ca   : > { %3184 = vmatprep.subr.bf16.mxu0 %v7624_v61  ;;  %3389 = vmatprep.subr.bf16.mxu1 %v7627_v62  ;;  %v7706_v61 = vld [vmem:[%s8690_s30 + $0x900] ss:$16 sps:$4 sm:$0xff]   ;;  %v7709_v62 = vld [vmem:[%s8690_s30 + $0x908] ss:$16 sps:$4 sm:$0xff]  }
 0x1cd   : > { %3185 = vmatpush1.bf16.msra.mxu0 %v7622_v63  ;;  %3390 = vmatpush1.bf16.msra.mxu1 %v7625_v0  ;;  %v7714_v63 = vld [vmem:[%s8690_s30 + $0x924] ss:$16 sps:$4 sm:$0xff]   ;;  %v7717_v0 = vld [vmem:[%s8690_s30 + $0x92c] ss:$16 sps:$4 sm:$0xff]  }
 0x1ce   : > { %3186 = vmatprep.subr.bf16.mxu0 %v7630_v1  ;;  %3391 = vmatprep.subr.bf16.mxu1 %v7633_v2  ;;  %v7712_v1 = vld [vmem:[%s8690_s30 + $0x920] ss:$16 sps:$4 sm:$0xff]   ;;  %v7715_v2 = vld [vmem:[%s8690_s30 + $0x928] ss:$16 sps:$4 sm:$0xff]  }
 0x1d1   : > { %3187 = vmatpush1.bf16.msra.mxu0 %v7628_v3  ;;  %3392 = vmatpush1.bf16.msra.mxu1 %v7631_v4  ;;  %v7720_v3 = vld [vmem:[%s8690_s30 + $0x944] ss:$16 sps:$4 sm:$0xff]   ;;  %v7723_v4 = vld [vmem:[%s8690_s30 + $0x94c] ss:$16 sps:$4 sm:$0xff]  }
 0x1d2   : > { %3188 = vmatprep.subr.bf16.mxu0 %v7636_v5  ;;  %3393 = vmatprep.subr.bf16.mxu1 %v7639_v6  ;;  %v7718_v5 = vld [vmem:[%s8690_s30 + $0x940] ss:$16 sps:$4 sm:$0xff]   ;;  %v7721_v6 = vld [vmem:[%s8690_s30 + $0x948] ss:$16 sps:$4 sm:$0xff]  }
 0x1d5   : > { %3189 = vmatpush1.bf16.msra.mxu0 %v7634_v7  ;;  %3394 = vmatpush1.bf16.msra.mxu1 %v7637_v9  ;;  %v7726_v7 = vld [vmem:[%s8690_s30 + $0x964] ss:$16 sps:$4 sm:$0xff]   ;;  %v7729_v9 = vld [vmem:[%s8690_s30 + $0x96c] ss:$16 sps:$4 sm:$0xff]  }
 0x1d6   : > { %3190 = vmatprep.subr.bf16.mxu0 %v7642_v11  ;;  %3395 = vmatprep.subr.bf16.mxu1 %v7645_v47  ;;  %v7724_v11 = vld [vmem:[%s8690_s30 + $0x960] ss:$16 sps:$4 sm:$0xff]   ;;  %v7727_v47 = vld [vmem:[%s8690_s30 + $0x968] ss:$16 sps:$4 sm:$0xff]  }
 0x1d9   : > { %3191 = vmatpush1.bf16.msra.mxu0 %v7640_v12  ;;  %3396 = vmatpush1.bf16.msra.mxu1 %v7643_v13  ;;  %v7732_v12 = vld [vmem:[%s8690_s30 + $0x984] ss:$16 sps:$4 sm:$0xff]   ;;  %v7735_v13 = vld [vmem:[%s8690_s30 + $0x98c] ss:$16 sps:$4 sm:$0xff]  }
 0x1da   : > { %3192 = vmatprep.subr.bf16.mxu0 %v7648_v14  ;;  %3397 = vmatprep.subr.bf16.mxu1 %v7651_v15  ;;  %v7730_v14 = vld [vmem:[%s8690_s30 + $0x980] ss:$16 sps:$4 sm:$0xff]   ;;  %v7733_v15 = vld [vmem:[%s8690_s30 + $0x988] ss:$16 sps:$4 sm:$0xff]  }
 0x1dd   : > { %3193 = vmatpush1.bf16.msra.mxu0 %v7646_v16  ;;  %3398 = vmatpush1.bf16.msra.mxu1 %v7649_v17  ;;  %v7738_v16 = vld [vmem:[%s8690_s30 + $0x9a4] ss:$16 sps:$4 sm:$0xff]   ;;  %v7741_v17 = vld [vmem:[%s8690_s30 + $0x9ac] ss:$16 sps:$4 sm:$0xff]  }
 0x1de   : > { %3194 = vmatprep.subr.bf16.mxu0 %v7654_v18  ;;  %3399 = vmatprep.subr.bf16.mxu1 %v7657_v19  ;;  %v1348_v18 = vld [vmem:[%s8690_s30 + $0x9c0] sm:$0x11]  ;;  %v1349_v19 = vld [vmem:[%s8690_s30 + $0x9c8] sm:$0x11] }
 0x1df   : > { %v6708_v10 = vcombine.low %v1348_v18, %v1348_v18 }
 0x1e1   : > { %3195 = vmatpush1.bf16.msra.mxu0 %v7652_v22  ;;  %3400 = vmatpush1.bf16.msra.mxu1 %v7655_v23  ;;  %v7736_v22 = vld [vmem:[%s8690_s30 + $0x9a0] ss:$16 sps:$4 sm:$0xff]   ;;  %v7739_v23 = vld [vmem:[%s8690_s30 + $0x9a8] ss:$16 sps:$4 sm:$0xff]  }
 0x1e2   : > { %3205 = vmatprep.subr.bf16.mxu0 %v7660_v24  ;;  %3410 = vmatprep.subr.bf16.mxu1 %v7663_v25  ;;  %v6709_v24 = vcombine.high %v1348_v18, %v1348_v18  ;;  %v6711_v25 = vcombine.high %v1349_v19, %v1349_v19 }
 0x1e4   : > { %3197 = vmatmul.mubr.bf16.vlgmr.msra.gmra.mrb[0].mxu0 %v1420_v26  ;;  %3402 = vmatmul.mubr.bf16.vlgmr.msra.gmra.mrb[0].mxu1 %v1420_v26  ;;  %v6710_v26 = vcombine.low %v1349_v19, %v1349_v19 }
 0x1e5   : > { %3206 = vmatpush1.bf16.msra.mxu0 %v7658_v27  ;;  %3411 = vmatpush1.bf16.msra.mxu1 %v7661_v28  ;;  %v3461_v27 = vld [vmem:[%s8692_s29] sm:$0xff] }
 0x1e6   : > { %3207 = vmatprep.subr.bf16.mxu0 %v7666_v20  ;;  %3412 = vmatprep.subr.bf16.mxu1 %v7669_v29  ;;  %v3465_v28 = vld [vmem:[%s8692_s29 + $0x20] sm:$0xff]  ;;  %v3462_v20 = vld [vmem:[%s8692_s29 + $0x8] sm:$0xff] }
 0x1e7   : > { %6713 = vmatprep.mubr.msk.bf16.mxu0 %vm3024_vm0, %v1444_v30  ;;  %6715 = vmatprep.mubr.msk.bf16.mxu1 %vm3024_vm0, %v1444_v30  ;;  %v3466_v29 = vld [vmem:[%s8692_s29 + $0x28] sm:$0xff]  ;;  %v3030_v30 = vsel %vm3028_vm1, %v6708_v10, 0 }
 0x1e9   : > { %3208 = vmatpush1.bf16.msra.mxu0 %v7664_v8  ;;  %3413 = vmatpush1.bf16.msra.mxu1 %v7667_v31  ;;  %v3036_v8 = vsel %vm3028_vm1, %v6710_v26, 0  ;;  %v6717_v31 = vcombine.high %v3461_v27, %v3465_v28 }
 0x1ea   : > { %3209 = vmatprep.subr.bf16.mxu0 %v7672_v32  ;;  %3414 = vmatprep.subr.bf16.mxu1 %v7675_v33  ;;  %v6719_v32 = vcombine.high %v3462_v20, %v3466_v29  ;;  %v3469_v33 = vld [vmem:[%s8692_s29 + $0x40] sm:$0xff] }
 0x1ed   : > { %3210 = vmatpush1.bf16.msra.mxu0 %v7670_v34  ;;  %3415 = vmatpush1.bf16.msra.mxu1 %v7673_v35  ;;  %v3473_v34 = vld [vmem:[%s8692_s29 + $0x60] sm:$0xff]  ;;  %v3470_v35 = vld [vmem:[%s8692_s29 + $0x48] sm:$0xff] }
 0x1ee   : > { %3211 = vmatprep.subr.bf16.mxu0 %v7678_v36  ;;  %3416 = vmatprep.subr.bf16.mxu1 %v7681_v38  ;;  %v3474_v36 = vld [vmem:[%s8692_s29 + $0x68] sm:$0xff]  ;;  %v1437_v38 = vrot.slane %v9003_v21, %v8753_v44  ;;  %v6724_v44 = vcombine.low %v3469_v33, %v3473_v34 }
 0x1ef   : > { %v6726_v21 = vcombine.low %v3470_v35, %v3474_v36 }
 0x1f1   : > { %3212 = vmatpush1.bf16.msra.mxu0 %v7676_v39  ;;  %3417 = vmatpush1.bf16.msra.mxu1 %v7679_v40  ;;  %v6716_v39 = vcombine.low %v3461_v27, %v3465_v28  ;;  %v6718_v40 = vcombine.low %v3462_v20, %v3466_v29  ;;  %v3525_v20 = vld [vmem:[%s8692_s29 + $0x200] sm:$0xff] }
 0x1f2   : > { %3213 = vmatprep.subr.bf16.mxu0 %v7684_v41  ;;  %3418 = vmatprep.subr.bf16.mxu1 %v7687_v42  ;;  %v6725_v41 = vcombine.high %v3469_v33, %v3473_v34  ;;  %v6727_v42 = vcombine.high %v3470_v35, %v3474_v36  ;;  %v3529_v29 = vld [vmem:[%s8692_s29 + $0x220] sm:$0xff] }
 0x1f3   : > { %v6781_v33 = vcombine.high %v3525_v20, %v3529_v29  ;;  %v3533_v35 = vld [vmem:[%s8692_s29 + $0x240] sm:$0xff] }
 0x1f4   : > { %v3537_v36 = vld [vmem:[%s8692_s29 + $0x260] sm:$0xff] }
 0x1f5   : > { %3214 = vmatpush1.bf16.msra.mxu0 %v7682_v43  ;;  %3419 = vmatpush1.bf16.msra.mxu1 %v7685_v45  ;;  %v3477_v43 = vld [vmem:[%s8692_s29 + $0x80] sm:$0xff] }
 0x1f6   : > { %3215 = vmatprep.subr.bf16.mxu0 %v7690_v46  ;;  %3420 = vmatprep.subr.bf16.mxu1 %v7693_v48  ;;  %v3481_v45 = vld [vmem:[%s8692_s29 + $0xa0] sm:$0xff]  ;;  %v3478_v46 = vld [vmem:[%s8692_s29 + $0x88] sm:$0xff] }
 0x1f7   : > { %v3482_v48 = vld [vmem:[%s8692_s29 + $0xa8] sm:$0xff] }
 0x1f9   : > { %3216 = vmatpush1.bf16.msra.mxu0 %v7688_v49  ;;  %3421 = vmatpush1.bf16.msra.mxu1 %v7691_v50  ;;  %v6733_v49 = vcombine.high %v3477_v43, %v3481_v45  ;;  %v6735_v50 = vcombine.high %v3478_v46, %v3482_v48 }
 0x1fa   : > { %3217 = vmatprep.subr.bf16.mxu0 %v7696_v51  ;;  %3422 = vmatprep.subr.bf16.mxu1 %v7699_v52  ;;  %v3485_v51 = vld [vmem:[%s8692_s29 + $0xc0] sm:$0xff] }
 0x1fb   : > { %v3489_v52 = vld [vmem:[%s8692_s29 + $0xe0] sm:$0xff] }
 0x1fd   : > { %3218 = vmatpush1.bf16.msra.mxu0 %v7694_v53  ;;  %3423 = vmatpush1.bf16.msra.mxu1 %v7697_v54  ;;  %v3486_v53 = vld [vmem:[%s8692_s29 + $0xc8] sm:$0xff] }
 0x1fe   : > { %3219 = vmatprep.subr.bf16.mxu0 %v7702_v55  ;;  %3424 = vmatprep.subr.bf16.mxu1 %v7705_v56  ;;  %v3490_v54 = vld [vmem:[%s8692_s29 + $0xe8] sm:$0xff]  ;;  %v6732_v55 = vcombine.low %v3477_v43, %v3481_v45  ;;  %v6734_v56 = vcombine.low %v3478_v46, %v3482_v48  ;;  %v3541_v45 = vld [vmem:[%s8692_s29 + $0x280] sm:$0xff] }
 0x1ff   : > { %v3545_v46 = vld [vmem:[%s8692_s29 + $0x2a0] sm:$0xff]  ;;  %v3542_v48 = vld [vmem:[%s8692_s29 + $0x288] sm:$0xff] }
 0x201   : > { %3220 = vmatpush1.bf16.msra.mxu0 %v7700_v57  ;;  %3425 = vmatpush1.bf16.msra.mxu1 %v7703_v58  ;;  %v6741_v57 = vcombine.high %v3485_v51, %v3489_v52  ;;  %v6743_v58 = vcombine.high %v3486_v53, %v3490_v54 }
 0x202   : > { %3221 = vmatprep.subr.bf16.mxu0 %v7708_v59  ;;  %3426 = vmatprep.subr.bf16.mxu1 %v7711_v60  ;;  %v3493_v59 = vld [vmem:[%s8692_s29 + $0x100] sm:$0xff] }
 0x203   : > { %v3497_v60 = vld [vmem:[%s8692_s29 + $0x120] sm:$0xff] }
 0x205   : > { %3222 = vmatpush1.bf16.msra.mxu0 %v7706_v61  ;;  %3427 = vmatpush1.bf16.msra.mxu1 %v7709_v62  ;;  %v3494_v61 = vld [vmem:[%s8692_s29 + $0x108] sm:$0xff] }
 0x206   : > { %3223 = vmatprep.subr.bf16.mxu0 %v7714_v63  ;;  %3428 = vmatprep.subr.bf16.mxu1 %v7717_v0  ;;  %v3498_v62 = vld [vmem:[%s8692_s29 + $0x128] sm:$0xff]  ;;  %v6740_v63 = vcombine.low %v3485_v51, %v3489_v52  ;;  %v6742_v0 = vcombine.low %v3486_v53, %v3490_v54  ;;  %v3549_v52 = vld [vmem:[%s8692_s29 + $0x2c0] sm:$0xff] }
 0x207   : > { %v3553_v53 = vld [vmem:[%s8692_s29 + $0x2e0] sm:$0xff]  ;;  %v3550_v54 = vld [vmem:[%s8692_s29 + $0x2c8] sm:$0xff] }
 0x209   : > { %3224 = vmatpush1.bf16.msra.mxu0 %v7712_v1  ;;  %3429 = vmatpush1.bf16.msra.mxu1 %v7715_v2  ;;  %v6749_v1 = vcombine.high %v3493_v59, %v3497_v60  ;;  %v6751_v2 = vcombine.high %v3494_v61, %v3498_v62 }
 0x20a   : > { %3225 = vmatprep.subr.bf16.mxu0 %v7720_v3  ;;  %3430 = vmatprep.subr.bf16.mxu1 %v7723_v4  ;;  %v3501_v3 = vld [vmem:[%s8692_s29 + $0x140] sm:$0xff] }
 0x20b   : > { %v3505_v4 = vld [vmem:[%s8692_s29 + $0x160] sm:$0xff] }
 0x20d   : > { %3226 = vmatpush1.bf16.msra.mxu0 %v7718_v5  ;;  %3431 = vmatpush1.bf16.msra.mxu1 %v7721_v6  ;;  %v3502_v5 = vld [vmem:[%s8692_s29 + $0x148] sm:$0xff] }
 0x20e   : > { %3227 = vmatprep.subr.bf16.mxu0 %v7726_v7  ;;  %3432 = vmatprep.subr.bf16.mxu1 %v7729_v9  ;;  %v3506_v6 = vld [vmem:[%s8692_s29 + $0x168] sm:$0xff]  ;;  %v6748_v7 = vcombine.low %v3493_v59, %v3497_v60  ;;  %v6750_v9 = vcombine.low %v3494_v61, %v3498_v62  ;;  %v3557_v60 = vld [vmem:[%s8692_s29 + $0x300] sm:$0xff] }
 0x20f   : > { %v3561_v61 = vld [vmem:[%s8692_s29 + $0x320] sm:$0xff]  ;;  %v3558_v62 = vld [vmem:[%s8692_s29 + $0x308] sm:$0xff] }
 0x211   : > { %3228 = vmatpush1.bf16.msra.mxu0 %v7724_v11  ;;  %3433 = vmatpush1.bf16.msra.mxu1 %v7727_v47  ;;  %v6757_v11 = vcombine.high %v3501_v3, %v3505_v4  ;;  %v6759_v47 = vcombine.high %v3502_v5, %v3506_v6 }
 0x212   : > { %3229 = vmatprep.subr.bf16.mxu0 %v7732_v12  ;;  %3434 = vmatprep.subr.bf16.mxu1 %v7735_v13  ;;  %v3509_v12 = vld [vmem:[%s8692_s29 + $0x180] sm:$0xff] }
 0x213   : > { %v3513_v13 = vld [vmem:[%s8692_s29 + $0x1a0] sm:$0xff] }
 0x214   : > { %v6765_v18 = vcombine.high %v3509_v12, %v3513_v13  ;;  %v6764_v10 = vcombine.low %v3509_v12, %v3513_v13 }
 0x215   : > { %3230 = vmatpush1.bf16.msra.mxu0 %v7730_v14  ;;  %3435 = vmatpush1.bf16.msra.mxu1 %v7733_v15  ;;  %v3510_v14 = vld [vmem:[%s8692_s29 + $0x188] sm:$0xff] }
 0x216   : > { %3231 = vmatprep.subr.bf16.mxu0 %v7738_v16  ;;  %3436 = vmatprep.subr.bf16.mxu1 %v7741_v17  ;;  %v3514_v15 = vld [vmem:[%s8692_s29 + $0x1a8] sm:$0xff]  ;;  %v6756_v16 = vcombine.low %v3501_v3, %v3505_v4  ;;  %v6758_v17 = vcombine.low %v3502_v5, %v3506_v6  ;;  %v3565_v4 = vld [vmem:[%s8692_s29 + $0x340] sm:$0xff] }
 0x217   : > { %v6767_v19 = vcombine.high %v3510_v14, %v3514_v15  ;;  %v6766_v26 = vcombine.low %v3510_v14, %v3514_v15  ;;  %v3569_v5 = vld [vmem:[%s8692_s29 + $0x360] sm:$0xff]  ;;  %v3566_v6 = vld [vmem:[%s8692_s29 + $0x348] sm:$0xff] }
 0x218   : > { %v6820_v13 = vcombine.low %v3565_v4, %v3569_v5  ;;  %v3573_v15 = vld [vmem:[%s8692_s29 + $0x380] sm:$0xff] }
 0x219   : > { %3232 = vmatpush1.bf16.msra.mxu0 %v7736_v22  ;;  %3437 = vmatpush1.bf16.msra.mxu1 %v7739_v23  ;;  %v3517_v22 = vld [vmem:[%s8692_s29 + $0x1c0] sm:$0xff] }
 0x21a   : > { %6712 = vmatprep.subr.msk.bf16.mxu0 %vm3028_vm1, %v6709_v24  ;;  %6714 = vmatprep.subr.msk.bf16.mxu1 %vm3028_vm1, %v6711_v25  ;;  %v3521_v23 = vld [vmem:[%s8692_s29 + $0x1e0] sm:$0xff]  ;;  %v3518_v24 = vld [vmem:[%s8692_s29 + $0x1c8] sm:$0xff] }
 0x21b   : > { %v3522_v25 = vld [vmem:[%s8692_s29 + $0x1e8] sm:$0xff]  ;;  %v6773_v27 = vcombine.high %v3517_v22, %v3521_v23 }
 0x21c   : > { %v6775_v28 = vcombine.high %v3518_v24, %v3522_v25 }
 0x21d   : > { %3234 = vmatpush1.bf16.msra.mxu0 %v3030_v30  ;;  %3439 = vmatpush1.bf16.msra.mxu1 %v3036_v8  ;;  %v3526_v30 = vld [vmem:[%s8692_s29 + $0x208] sm:$0xff] }
 0x21e   : > { %4997 = vmatprep.subr.bf16.mxu0 %v6717_v31  ;;  %5079 = vmatprep.subr.bf16.mxu1 %v6719_v32  ;;  %v3530_v8 = vld [vmem:[%s8692_s29 + $0x228] sm:$0xff]  ;;  %v6772_v31 = vcombine.low %v3517_v22, %v3521_v23  ;;  %v6774_v32 = vcombine.low %v3518_v24, %v3522_v25  ;;  %v3581_v25 = vld [vmem:[%s8692_s29 + $0x3c0] sm:$0xff] }
 0x21f   : > { %v6783_v34 = vcombine.high %v3526_v30, %v3530_v8 }
 0x220   : > { %3238 = vmatmul.mubr.bf16.vlgmr.msra.gmra.mrb[0].mxu0 %v1437_v38  ;;  %3443 = vmatmul.mubr.bf16.vlgmr.msra.gmra.mrb[0].mxu1 %v1437_v38  ;;  %v3534_v38 = vld [vmem:[%s8692_s29 + $0x248] sm:$0xff] }
 0x221   : > { %4998 = vmatpush1.bf16.msra.mxu0 %v6716_v39  ;;  %5080 = vmatpush1.bf16.msra.mxu1 %v6718_v40  ;;  %v3538_v39 = vld [vmem:[%s8692_s29 + $0x268] sm:$0xff]  ;;  %v6780_v40 = vcombine.low %v3525_v20, %v3529_v29 }
 0x222   : > { %4999 = vmatprep.subr.bf16.mxu0 %v6725_v41  ;;  %5081 = vmatprep.subr.bf16.mxu1 %v6727_v42  ;;  %v6782_v41 = vcombine.low %v3526_v30, %v3530_v8  ;;  %v6789_v42 = vcombine.high %v3533_v35, %v3537_v36  ;;  %v6791_v43 = vcombine.high %v3534_v38, %v3538_v39  ;;  %v3589_v8 = vld [vmem:[%s8692_s29 + $0x400] sm:$0xff] }
 0x225   : > { %5000 = vmatpush1.bf16.msra.mxu0 %v6724_v44  ;;  %5082 = vmatpush1.bf16.msra.mxu1 %v6726_v21  ;;  %v3546_v44 = vld [vmem:[%s8692_s29 + $0x2a8] sm:$0xff]  ;;  %v6788_v21 = vcombine.low %v3533_v35, %v3537_v36 }
 0x226   : > { %5001 = vmatprep.subr.bf16.mxu0 %v6733_v49  ;;  %5083 = vmatprep.subr.bf16.mxu1 %v6735_v50  ;;  %v6790_v49 = vcombine.low %v3534_v38, %v3538_v39  ;;  %v6797_v50 = vcombine.high %v3541_v45, %v3545_v46  ;;  %v6799_v51 = vcombine.high %v3542_v48, %v3546_v44  ;;  %v1354_v39 = vsub.s32 0, %v8745_v37 }
 0x229   : > { %5002 = vmatpush1.bf16.msra.mxu0 %v6732_v55  ;;  %5084 = vmatpush1.bf16.msra.mxu1 %v6734_v56  ;;  %v3554_v55 = vld [vmem:[%s8692_s29 + $0x2e8] sm:$0xff]  ;;  %v6796_v56 = vcombine.low %v3541_v45, %v3545_v46 }
 0x22a   : > { %5003 = vmatprep.subr.bf16.mxu0 %v6741_v57  ;;  %5085 = vmatprep.subr.bf16.mxu1 %v6743_v58  ;;  %v6798_v57 = vcombine.low %v3542_v48, %v3546_v44  ;;  %v6805_v58 = vcombine.high %v3549_v52, %v3553_v53  ;;  %v6807_v59 = vcombine.high %v3550_v54, %v3554_v55 }
 0x22d   : > { %5004 = vmatpush1.bf16.msra.mxu0 %v6740_v63  ;;  %5086 = vmatpush1.bf16.msra.mxu1 %v6742_v0  ;;  %v3562_v63 = vld [vmem:[%s8692_s29 + $0x328] sm:$0xff]  ;;  %v6804_v0 = vcombine.low %v3549_v52, %v3553_v53 }
 0x22e   : > { %5005 = vmatprep.subr.bf16.mxu0 %v6749_v1  ;;  %5087 = vmatprep.subr.bf16.mxu1 %v6751_v2  ;;  %v6806_v1 = vcombine.low %v3550_v54, %v3554_v55  ;;  %v6813_v2 = vcombine.high %v3557_v60, %v3561_v61  ;;  %v6815_v3 = vcombine.high %v3558_v62, %v3562_v63 }
 0x231   : > { %5006 = vmatpush1.bf16.msra.mxu0 %v6748_v7  ;;  %5088 = vmatpush1.bf16.msra.mxu1 %v6750_v9  ;;  %v3570_v7 = vld [vmem:[%s8692_s29 + $0x368] sm:$0xff]  ;;  %v6812_v9 = vcombine.low %v3557_v60, %v3561_v61  ;;  %v3601_v61 = vld [vmem:[%s8692_s29 + $0x460] sm:$0xff] }
 0x232   : > { %5007 = vmatprep.subr.bf16.mxu0 %v6757_v11  ;;  %5089 = vmatprep.subr.bf16.mxu1 %v6759_v47  ;;  %v6814_v11 = vcombine.low %v3558_v62, %v3562_v63  ;;  %v6821_v47 = vcombine.high %v3565_v4, %v3569_v5  ;;  %v6823_v12 = vcombine.high %v3566_v6, %v3570_v7  ;;  %v3598_v62 = vld [vmem:[%s8692_s29 + $0x448] sm:$0xff]  ;;  %v3609_v5 = vld [vmem:[%s8692_s29 + $0x4a0] sm:$0xff] }
 0x233   : > { %v6822_v14 = vcombine.low %v3566_v6, %v3570_v7  ;;  %v3602_v63 = vld [vmem:[%s8692_s29 + $0x468] sm:$0xff] }
 0x234   : > { %v6855_v4 = vcombine.high %v3598_v62, %v3602_v63  ;;  %v3606_v6 = vld [vmem:[%s8692_s29 + $0x488] sm:$0xff] }
 0x235   : > { %5008 = vmatpush1.bf16.msra.mxu0 %v6756_v16  ;;  %5090 = vmatpush1.bf16.msra.mxu1 %v6758_v17  ;;  %v3577_v16 = vld [vmem:[%s8692_s29 + $0x3a0] sm:$0xff]  ;;  %v3574_v17 = vld [vmem:[%s8692_s29 + $0x388] sm:$0xff] }
 0x236   : > { %5009 = vmatprep.subr.bf16.mxu0 %v6765_v18  ;;  %5091 = vmatprep.subr.bf16.mxu1 %v6767_v19  ;;  %v6829_v18 = vcombine.high %v3573_v15, %v3577_v16  ;;  %v3578_v19 = vld [vmem:[%s8692_s29 + $0x3a8] sm:$0xff]  ;;  %v6828_v22 = vcombine.low %v3573_v15, %v3577_v16  ;;  %v3617_v15 = vld [vmem:[%s8692_s29 + $0x4e0] sm:$0xff] }
 0x237   : > { %v6830_v23 = vcombine.low %v3574_v17, %v3578_v19  ;;  %v6831_v24 = vcombine.high %v3574_v17, %v3578_v19  ;;  %v3610_v7 = vld [vmem:[%s8692_s29 + $0x4a8] sm:$0xff] }
 0x238   : > { %v3614_v16 = vld [vmem:[%s8692_s29 + $0x4c8] sm:$0xff]  ;;  %v6862_v19 = vcombine.low %v3606_v6, %v3610_v7 }
 0x239   : > { %5010 = vmatpush1.bf16.msra.mxu0 %v6764_v10  ;;  %5092 = vmatpush1.bf16.msra.mxu1 %v6766_v26  ;;  %v3585_v10 = vld [vmem:[%s8692_s29 + $0x3e0] sm:$0xff]  ;;  %v3582_v26 = vld [vmem:[%s8692_s29 + $0x3c8] sm:$0xff] }
 0x23a   : > { %5011 = vmatprep.subr.bf16.mxu0 %v6773_v27  ;;  %5093 = vmatprep.subr.bf16.mxu1 %v6775_v28  ;;  %v6837_v27 = vcombine.high %v3581_v25, %v3585_v10  ;;  %v3586_v28 = vld [vmem:[%s8692_s29 + $0x3e8] sm:$0xff]  ;;  %v6836_v20 = vcombine.low %v3581_v25, %v3585_v10  ;;  %v3625_v25 = vld [vmem:[%s8692_s29 + $0x520] sm:$0xff] }
 0x23b   : > { %v6838_v29 = vcombine.low %v3582_v26, %v3586_v28  ;;  %v6839_v30 = vcombine.high %v3582_v26, %v3586_v28  ;;  %v3618_v17 = vld [vmem:[%s8692_s29 + $0x4e8] sm:$0xff] }
 0x23c   : > { %v3622_v10 = vld [vmem:[%s8692_s29 + $0x508] sm:$0xff]  ;;  %v6870_v28 = vcombine.low %v3614_v16, %v3618_v17 }
 0x23d   : > { %5012 = vmatpush1.bf16.msra.mxu0 %v6772_v31  ;;  %5094 = vmatpush1.bf16.msra.mxu1 %v6774_v32  ;;  %v3593_v31 = vld [vmem:[%s8692_s29 + $0x420] sm:$0xff]  ;;  %v3590_v32 = vld [vmem:[%s8692_s29 + $0x408] sm:$0xff] }
 0x23e   : > { %5013 = vmatprep.subr.bf16.mxu0 %v6781_v33  ;;  %5095 = vmatprep.subr.bf16.mxu1 %v6783_v34  ;;  %v6845_v33 = vcombine.high %v3589_v8, %v3593_v31  ;;  %v3594_v34 = vld [vmem:[%s8692_s29 + $0x428] sm:$0xff]  ;;  %v6844_v35 = vcombine.low %v3589_v8, %v3593_v31  ;;  %v3633_v8 = vld [vmem:[%s8692_s29 + $0x560] sm:$0xff] }
 0x23f   : > { %v6846_v36 = vcombine.low %v3590_v32, %v3594_v34  ;;  %v6847_v38 = vcombine.high %v3590_v32, %v3594_v34  ;;  %v3626_v26 = vld [vmem:[%s8692_s29 + $0x528] sm:$0xff] }
 0x240   : > { %v3630_v31 = vld [vmem:[%s8692_s29 + $0x548] sm:$0xff]  ;;  %v6878_v34 = vcombine.low %v3622_v10, %v3626_v26 }
 0x241   : > { %5014 = vmatpush1.bf16.msra.mxu0 %v6780_v40  ;;  %5096 = vmatpush1.bf16.msra.mxu1 %v6782_v41  ;;  %v9146_v40 = vld [vmem:[%s1024_s21] sm:$0xf]  ;;  %v1358_v41 = vsub.s32 1, %v8745_v37  ;;  %v3634_v32 = vld [vmem:[%s8692_s29 + $0x568] sm:$0xff] }
 0x242   : > { %5015 = vmatprep.subr.bf16.mxu0 %v6789_v42  ;;  %5097 = vmatprep.subr.bf16.mxu1 %v6791_v43  ;;  %v1366_v42 = vsub.s32 3, %v8745_v37  ;;  %v1355_v43 = vrot.slane %v9146_v40, %v1354_v39 }
 0x243   : > { %v1359_v45 = vrot.slane %v9146_v40, %v1358_v41 }
 0x244   : > { %v1367_v46 = vrot.slane %v9146_v40, %v1366_v42 }
 0x245   : > { %5016 = vmatpush1.bf16.msra.mxu0 %v6788_v21  ;;  %5098 = vmatpush1.bf16.msra.mxu1 %v6790_v49 }
 0x246   : > { %5017 = vmatprep.subr.bf16.mxu0 %v6797_v50  ;;  %5099 = vmatprep.subr.bf16.mxu1 %v6799_v51 }
 0x249   : > { %5018 = vmatpush1.bf16.msra.mxu0 %v6796_v56  ;;  %5100 = vmatpush1.bf16.msra.mxu1 %v6798_v57 }
 0x24a   : > { %5019 = vmatprep.subr.bf16.mxu0 %v6805_v58  ;;  %5101 = vmatprep.subr.bf16.mxu1 %v6807_v59  ;;  %v3597_v59 = vld [vmem:[%s8692_s29 + $0x440] sm:$0xff] }
 0x24d   : > { %5020 = vmatpush1.bf16.msra.mxu0 %v6804_v0  ;;  %5102 = vmatpush1.bf16.msra.mxu1 %v6806_v1 }
 0x24e   : > { %5021 = vmatprep.subr.bf16.mxu0 %v6813_v2  ;;  %5103 = vmatprep.subr.bf16.mxu1 %v6815_v3  ;;  %v3605_v2 = vld [vmem:[%s8692_s29 + $0x480] sm:$0xff]  ;;  %v6853_v3 = vcombine.high %v3597_v59, %v3601_v61 }
 0x251   : > { %5022 = vmatpush1.bf16.msra.mxu0 %v6812_v9  ;;  %5104 = vmatpush1.bf16.msra.mxu1 %v6814_v11  ;;  %v6852_v11 = vcombine.low %v3597_v59, %v3601_v61  ;;  %v3653_v59 = vld [vmem:[%s8692_s29 + $0x600] sm:$0xff]  ;;  %v3654_v61 = vld [vmem:[%s8692_s29 + $0x608] sm:$0xff] }
 0x252   : > { %5023 = vmatprep.subr.bf16.mxu0 %v6821_v47  ;;  %5105 = vmatprep.subr.bf16.mxu1 %v6823_v12  ;;  %v6854_v47 = vcombine.low %v3598_v62, %v3602_v63  ;;  %v6861_v12 = vcombine.high %v3605_v2, %v3609_v5  ;;  %v3658_v62 = vld [vmem:[%s8692_s29 + $0x628] sm:$0xff] }
 0x255   : > { %5024 = vmatpush1.bf16.msra.mxu0 %v6820_v13  ;;  %5106 = vmatpush1.bf16.msra.mxu1 %v6822_v14  ;;  %v6863_v13 = vcombine.high %v3606_v6, %v3610_v7  ;;  %v3613_v14 = vld [vmem:[%s8692_s29 + $0x4c0] sm:$0xff]  ;;  %v3662_v7 = vld [vmem:[%s8692_s29 + $0x648] sm:$0xff] }
 0x256   : > { %5025 = vmatprep.subr.bf16.mxu0 %v6829_v18  ;;  %5107 = vmatprep.subr.bf16.mxu1 %v6831_v24  ;;  %v6860_v18 = vcombine.low %v3605_v2, %v3609_v5  ;;  %v3621_v24 = vld [vmem:[%s8692_s29 + $0x500] sm:$0xff] }
 0x257   : > { %v3661_v5 = vld [vmem:[%s8692_s29 + $0x640] sm:$0xff] }
 0x258   : > { %v3665_v6 = vld [vmem:[%s8692_s29 + $0x660] sm:$0xff] }
 0x259   : > { %5026 = vmatpush1.bf16.msra.mxu0 %v6828_v22  ;;  %5108 = vmatpush1.bf16.msra.mxu1 %v6830_v23  ;;  %v6869_v22 = vcombine.high %v3613_v14, %v3617_v15  ;;  %v6871_v23 = vcombine.high %v3614_v16, %v3618_v17  ;;  %v3673_v16 = vld [vmem:[%s8692_s29 + $0x6a0] sm:$0xff]  ;;  %v3670_v17 = vld [vmem:[%s8692_s29 + $0x688] sm:$0xff] }
 0x25a   : > { %5027 = vmatprep.subr.bf16.mxu0 %v6837_v27  ;;  %5109 = vmatprep.subr.bf16.mxu1 %v6839_v30  ;;  %v6868_v27 = vcombine.low %v3613_v14, %v3617_v15  ;;  %v3629_v30 = vld [vmem:[%s8692_s29 + $0x540] sm:$0xff] }
 0x25b   : > { %v3669_v15 = vld [vmem:[%s8692_s29 + $0x680] sm:$0xff] }
 0x25d   : > { %5028 = vmatpush1.bf16.msra.mxu0 %v6836_v20  ;;  %5110 = vmatpush1.bf16.msra.mxu1 %v6838_v29  ;;  %v6877_v20 = vcombine.high %v3621_v24, %v3625_v25  ;;  %v6879_v29 = vcombine.high %v3622_v10, %v3626_v26  ;;  %v3681_v10 = vld [vmem:[%s8692_s29 + $0x6e0] sm:$0xff]  ;;  %v3678_v26 = vld [vmem:[%s8692_s29 + $0x6c8] sm:$0xff] }
 0x25e   : > { %5038 = vmatprep.subr.bf16.mxu0 %v6845_v33  ;;  %5120 = vmatprep.subr.bf16.mxu1 %v6847_v38  ;;  %v6876_v33 = vcombine.low %v3621_v24, %v3625_v25  ;;  %v3637_v38 = vld [vmem:[%s8692_s29 + $0x580] sm:$0xff] }
 0x25f   : > { %v3677_v25 = vld [vmem:[%s8692_s29 + $0x6c0] sm:$0xff] }
 0x2f3   : > { %v3239_v48 = vpop.f32.mrb[0].mxu0  ;;  %v9159_v44 = vpop.f32.mrb[0].mxu1 }
 0x2f4   : > { %v7171_v21 = vadd.f32 %v3239_v48, %v1355_v43  ;;  %v3241_v49 = vpop.f32.mrb[1].mxu0  ;;  %v3446_v50 = vpop.f32.mrb[1].mxu1  ;;  %v3641_v43 = vld [vmem:[%s8692_s29 + $0x5a0] sm:$0xff]  ;;  %v6884_v48 = vcombine.low %v3629_v30, %v3633_v8 }
 0x2f5   : > { %v7172_v51 = vadd.f32 %v3241_v49, %v1359_v45  ;;  %v7174_v52 = vadd.f32 %v3446_v50, %v1367_v46  ;;  %v3243_v53 = vpop.f32.mrb[2].mxu0  ;;  %v3448_v54 = vpop.f32.mrb[2].mxu1  ;;  %v3638_v45 = vld [vmem:[%s8692_s29 + $0x588] sm:$0xff]  ;;  %v6893_v49 = vcombine.high %v3637_v38, %v3641_v43 }
 0x2f6   : > { %v3451_v55 = vmax.f32 %v7171_v21, 0.0  ;;  %v3244_v56 = vpop.f32.mrb[3].mxu0  ;;  %v3449_v57 = vpop.f32.mrb[3].mxu1  ;;  %v3642_v46 = vld [vmem:[%s8692_s29 + $0x5a8] sm:$0xff]  ;;  %v6886_v21 = vcombine.low %v3630_v31, %v3634_v32 }
 0x2f7   : > { %v3452_v58 = vmax.f32 %v7172_v51, 0.0  ;;  %v3454_v60 = vmax.f32 %v7174_v52, 0.0  ;;  %v6895_v50 = vcombine.high %v3638_v45, %v3642_v46  ;;  %v3645_v51 = vld [vmem:[%s8692_s29 + $0x5c0] sm:$0xff]  ;;  %v3646_v53 = vld [vmem:[%s8692_s29 + $0x5c8] sm:$0xff]  ;;  %v6894_v56 = vcombine.low %v3638_v45, %v3642_v46 }
 0x2f8   : > { %v9167_v1 = vpack.c.bf16 %v3451_v55, %v3451_v55  ;;  %v3649_v52 = vld [vmem:[%s8692_s29 + $0x5e0] sm:$0xff]  ;;  %v3650_v54 = vld [vmem:[%s8692_s29 + $0x5e8] sm:$0xff]  ;;  %v6892_v55 = vcombine.low %v3637_v38, %v3641_v43 }
 0x2f9   : > { %v9165_v0 = vpack.c.bf16 %v3452_v58, %v3452_v58  ;;  %v9175_v9 = vpack.c.bf16 %v3454_v60, %v3454_v60  ;;  %v6901_v57 = vcombine.high %v3645_v51, %v3649_v52  ;;  %v6903_v58 = vcombine.high %v3646_v53, %v3650_v54  ;;  %v3657_v60 = vld [vmem:[%s8692_s29 + $0x620] sm:$0xff]  ;;  %v3694_v46 = vld [vmem:[%s8692_s29 + $0x748] sm:$0xff] }
 0x2fa   : > { %v6900_v63 = vcombine.low %v3645_v51, %v3649_v52  ;;  %v6902_v2 = vcombine.low %v3646_v53, %v3650_v54  ;;  %v3693_v43 = vld [vmem:[%s8692_s29 + $0x740] sm:$0xff] }
 0x2fb   : > { %5029 = vmatprep.mubr.bf16.mxu0 %v9165_v0  ;;  %5111 = vmatprep.mubr.bf16.mxu1 %v9165_v0  ;;  %v3697_v45 = vld [vmem:[%s8692_s29 + $0x760] sm:$0xff] }
 0x2fc   : > { %5030 = vmatmul.mubr.bf16.vlgmr.msra.gmra.mrb[4].mxu0 %v9167_v1  ;;  %5112 = vmatmul.mubr.bf16.vlgmr.msra.gmra.mrb[4].mxu1 %v9167_v1  ;;  %v6949_v51 = vcombine.high %v3693_v43, %v3697_v45  ;;  %v3701_v53 = vld [vmem:[%s8692_s29 + $0x780] sm:$0xff] }
 0x2fd   : > { %5039 = vmatpush1.bf16.msra.mxu0 %v6844_v35  ;;  %5121 = vmatpush1.bf16.msra.mxu1 %v6846_v36  ;;  %v6885_v35 = vcombine.high %v3629_v30, %v3633_v8  ;;  %v6887_v36 = vcombine.high %v3630_v31, %v3634_v32  ;;  %v3685_v8 = vld [vmem:[%s8692_s29 + $0x700] sm:$0xff]  ;;  %v3686_v32 = vld [vmem:[%s8692_s29 + $0x708] sm:$0xff] }
 0x2fe   : > { %5070 = vmatprep.mubr.bf16.mxu0 %v9175_v9  ;;  %5152 = vmatprep.mubr.bf16.mxu1 %v9175_v9  ;;  %v3689_v31 = vld [vmem:[%s8692_s29 + $0x720] sm:$0xff] }
 0x2ff   : > { %5040 = vmatprep.subr.bf16.mxu0 %v6853_v3  ;;  %5122 = vmatprep.subr.bf16.mxu1 %v6855_v4  ;;  %v6909_v3 = vcombine.high %v3653_v59, %v3657_v60  ;;  %v6911_v4 = vcombine.high %v3654_v61, %v3658_v62  ;;  %v3705_v54 = vld [vmem:[%s8692_s29 + $0x7a0] sm:$0xff] }
 0x301   : > { %5041 = vmatpush1.bf16.msra.mxu0 %v6852_v11  ;;  %5123 = vmatpush1.bf16.msra.mxu1 %v6854_v47  ;;  %v3666_v11 = vld [vmem:[%s8692_s29 + $0x668] sm:$0xff]  ;;  %v6908_v47 = vcombine.low %v3653_v59, %v3657_v60  ;;  %v6957_v60 = vcombine.high %v3701_v53, %v3705_v54 }
 0x302   : > { %5042 = vmatprep.subr.bf16.mxu0 %v6861_v12  ;;  %5124 = vmatprep.subr.bf16.mxu1 %v6863_v13  ;;  %v6910_v12 = vcombine.low %v3654_v61, %v3658_v62  ;;  %v6917_v13 = vcombine.high %v3661_v5, %v3665_v6  ;;  %v6919_v14 = vcombine.high %v3662_v7, %v3666_v11  ;;  %v3709_v62 = vld [vmem:[%s8692_s29 + $0x7c0] sm:$0xff] }
 0x305   : > { %5043 = vmatpush1.bf16.msra.mxu0 %v6860_v18  ;;  %5125 = vmatpush1.bf16.msra.mxu1 %v6862_v19  ;;  %v3674_v18 = vld [vmem:[%s8692_s29 + $0x6a8] sm:$0xff]  ;;  %v6916_v19 = vcombine.low %v3661_v5, %v3665_v6 }
 0x306   : > { %5044 = vmatprep.subr.bf16.mxu0 %v6869_v22  ;;  %5126 = vmatprep.subr.bf16.mxu1 %v6871_v23  ;;  %v6918_v22 = vcombine.low %v3662_v7, %v3666_v11  ;;  %v6925_v23 = vcombine.high %v3669_v15, %v3673_v16  ;;  %v6927_v24 = vcombine.high %v3670_v17, %v3674_v18  ;;  %v3463_v11 = vld [vmem:[%s8692_s29 + $0x10] sm:$0xff] }
 0x309   : > { %5045 = vmatpush1.bf16.msra.mxu0 %v6868_v27  ;;  %5127 = vmatpush1.bf16.msra.mxu1 %v6870_v28  ;;  %v3682_v27 = vld [vmem:[%s8692_s29 + $0x6e8] sm:$0xff]  ;;  %v6924_v28 = vcombine.low %v3669_v15, %v3673_v16 }
 0x30a   : > { %5046 = vmatprep.subr.bf16.mxu0 %v6877_v20  ;;  %5128 = vmatprep.subr.bf16.mxu1 %v6879_v29  ;;  %v6926_v20 = vcombine.low %v3670_v17, %v3674_v18  ;;  %v6933_v29 = vcombine.high %v3677_v25, %v3681_v10  ;;  %v6935_v30 = vcombine.high %v3678_v26, %v3682_v27  ;;  %v3471_v18 = vld [vmem:[%s8692_s29 + $0x50] sm:$0xff] }
 0x30d   : > { %5047 = vmatpush1.bf16.msra.mxu0 %v6876_v33  ;;  %5129 = vmatpush1.bf16.msra.mxu1 %v6878_v34  ;;  %v3690_v33 = vld [vmem:[%s8692_s29 + $0x728] sm:$0xff]  ;;  %v6932_v34 = vcombine.low %v3677_v25, %v3681_v10 }
 0x30e   : > { %5048 = vmatprep.subr.bf16.mxu0 %v6885_v35  ;;  %5130 = vmatprep.subr.bf16.mxu1 %v6887_v36  ;;  %v6934_v35 = vcombine.low %v3678_v26, %v3682_v27  ;;  %v6941_v36 = vcombine.high %v3685_v8, %v3689_v31  ;;  %v6943_v38 = vcombine.high %v3686_v32, %v3690_v33 }
 0x311   : > { %5049 = vmatpush1.bf16.msra.mxu0 %v6884_v48  ;;  %5131 = vmatpush1.bf16.msra.mxu1 %v6886_v21  ;;  %v3698_v48 = vld [vmem:[%s8692_s29 + $0x768] sm:$0xff]  ;;  %v6940_v21 = vcombine.low %v3685_v8, %v3689_v31 }
 0x312   : > { %5050 = vmatprep.subr.bf16.mxu0 %v6893_v49  ;;  %5132 = vmatprep.subr.bf16.mxu1 %v6895_v50  ;;  %v6942_v49 = vcombine.low %v3686_v32, %v3690_v33  ;;  %v1362_v50 = vsub.s32 2, %v8745_v37  ;;  %v6951_v52 = vcombine.high %v3694_v46, %v3698_v48 }
 0x314   : > { %v1363_v59 = vrot.slane %v9146_v40, %v1362_v50 }
 0x315   : > { %5051 = vmatpush1.bf16.msra.mxu0 %v6892_v55  ;;  %5133 = vmatpush1.bf16.msra.mxu1 %v6894_v56  ;;  %v3702_v55 = vld [vmem:[%s8692_s29 + $0x788] sm:$0xff] }
 0x316   : > { %5052 = vmatprep.subr.bf16.mxu0 %v6901_v57  ;;  %5134 = vmatprep.subr.bf16.mxu1 %v6903_v58  ;;  %v3706_v56 = vld [vmem:[%s8692_s29 + $0x7a8] sm:$0xff]  ;;  %v6948_v57 = vcombine.low %v3693_v43, %v3697_v45  ;;  %v6950_v58 = vcombine.low %v3694_v46, %v3698_v48  ;;  %v7173_v6 = vadd.f32 %v9159_v44, %v1363_v59  ;;  %v3495_v48 = vld [vmem:[%s8692_s29 + $0x110] sm:$0xff]  ;;  %v3508_v59 = vld [vmem:[%s8692_s29 + $0x178] sm:$0xff] }
 0x317   : > { %v6959_v61 = vcombine.high %v3702_v55, %v3706_v56  ;;  %v6958_v5 = vcombine.low %v3702_v55, %v3706_v56  ;;  %v3503_v56 = vld [vmem:[%s8692_s29 + $0x150] sm:$0xff] }
 0x318   : > { %v3453_v16 = vmax.f32 %v7173_v6, 0.0 }
 0x319   : > { %5053 = vmatpush1.bf16.msra.mxu0 %v6900_v63  ;;  %5135 = vmatpush1.bf16.msra.mxu1 %v6902_v2  ;;  %v3713_v63 = vld [vmem:[%s8692_s29 + $0x7e0] sm:$0xff]  ;;  %v3710_v2 = vld [vmem:[%s8692_s29 + $0x7c8] sm:$0xff] }
 0x31a   : > { %5054 = vmatprep.subr.bf16.mxu0 %v6909_v3  ;;  %5136 = vmatprep.subr.bf16.mxu1 %v6911_v4  ;;  %v3714_v3 = vld [vmem:[%s8692_s29 + $0x7e8] sm:$0xff]  ;;  %v6956_v4 = vcombine.low %v3701_v53, %v3705_v54  ;;  %v6965_v40 = vcombine.high %v3709_v62, %v3713_v63  ;;  %v9246_v25 = vpack.c.bf16 %v3453_v16, %v3453_v16 }
 0x31b   : > { %v6967_v7 = vcombine.high %v3710_v2, %v3714_v3  ;;  %v6966_v15 = vcombine.low %v3710_v2, %v3714_v3  ;;  %v3511_v2 = vld [vmem:[%s8692_s29 + $0x190] sm:$0xff] }
 0x31c   : > { %v3515_v3 = vld [vmem:[%s8692_s29 + $0x1b0] sm:$0xff] }
 0x31d   : > { %5055 = vmatpush1.bf16.msra.mxu0 %v6908_v47  ;;  %5137 = vmatpush1.bf16.msra.mxu1 %v6910_v12  ;;  %v3467_v47 = vld [vmem:[%s8692_s29 + $0x30] sm:$0xff]  ;;  %v3464_v12 = vld [vmem:[%s8692_s29 + $0x18] sm:$0xff] }
 0x31e   : > { %5056 = vmatprep.subr.bf16.mxu0 %v6917_v13  ;;  %5138 = vmatprep.subr.bf16.mxu1 %v6919_v14  ;;  %v3468_v13 = vld [vmem:[%s8692_s29 + $0x38] sm:$0xff]  ;;  %v6964_v14 = vcombine.low %v3709_v62, %v3713_v63  ;;  %v6721_v44 = vcombine.high %v3463_v11, %v3467_v47 }
 0x31f   : > { %v6723_v17 = vcombine.high %v3464_v12, %v3468_v13  ;;  %v6722_v10 = vcombine.low %v3464_v12, %v3468_v13  ;;  %v3523_v12 = vld [vmem:[%s8692_s29 + $0x1f0] sm:$0xff]  ;;  %v3520_v13 = vld [vmem:[%s8692_s29 + $0x1d8] sm:$0xff] }
 0x321   : > { %5057 = vmatpush1.bf16.msra.mxu0 %v6916_v19  ;;  %5139 = vmatpush1.bf16.msra.mxu1 %v6918_v22  ;;  %v3475_v19 = vld [vmem:[%s8692_s29 + $0x70] sm:$0xff]  ;;  %v3472_v22 = vld [vmem:[%s8692_s29 + $0x58] sm:$0xff] }
 0x322   : > { %5058 = vmatprep.subr.bf16.mxu0 %v6925_v23  ;;  %5140 = vmatprep.subr.bf16.mxu1 %v6927_v24  ;;  %v3476_v23 = vld [vmem:[%s8692_s29 + $0x78] sm:$0xff]  ;;  %v6720_v24 = vcombine.low %v3463_v11, %v3467_v47  ;;  %v6729_v26 = vcombine.high %v3471_v18, %v3475_v19  ;;  %v6728_v8 = vcombine.low %v3471_v18, %v3475_v19  ;;  %v3519_v47 = vld [vmem:[%s8692_s29 + $0x1d0] sm:$0xff] }
 0x323   : > { %v6731_v27 = vcombine.high %v3472_v22, %v3476_v23  ;;  %v6730_v31 = vcombine.low %v3472_v22, %v3476_v23  ;;  %v3527_v18 = vld [vmem:[%s8692_s29 + $0x210] sm:$0xff]  ;;  %v3528_v22 = vld [vmem:[%s8692_s29 + $0x218] sm:$0xff] }
 0x324   : > { %v3531_v19 = vld [vmem:[%s8692_s29 + $0x230] sm:$0xff]  ;;  %v3532_v23 = vld [vmem:[%s8692_s29 + $0x238] sm:$0xff] }
 0x325   : > { %5059 = vmatpush1.bf16.msra.mxu0 %v6924_v28  ;;  %5141 = vmatpush1.bf16.msra.mxu1 %v6926_v20  ;;  %v3479_v28 = vld [vmem:[%s8692_s29 + $0x90] sm:$0xff] }
 0x326   : > { %5060 = vmatprep.subr.bf16.mxu0 %v6933_v29  ;;  %5142 = vmatprep.subr.bf16.mxu1 %v6935_v30  ;;  %v3483_v20 = vld [vmem:[%s8692_s29 + $0xb0] sm:$0xff]  ;;  %v3480_v29 = vld [vmem:[%s8692_s29 + $0x98] sm:$0xff] }
 0x327   : > { %v3484_v30 = vld [vmem:[%s8692_s29 + $0xb8] sm:$0xff]  ;;  %v6737_v32 = vcombine.high %v3479_v28, %v3483_v20  ;;  %v6736_v43 = vcombine.low %v3479_v28, %v3483_v20  ;;  %v3535_v28 = vld [vmem:[%s8692_s29 + $0x250] sm:$0xff] }
 0x328   : > { %v6739_v33 = vcombine.high %v3480_v29, %v3484_v30  ;;  %v6738_v45 = vcombine.low %v3480_v29, %v3484_v30  ;;  %v3539_v20 = vld [vmem:[%s8692_s29 + $0x270] sm:$0xff]  ;;  %v3536_v29 = vld [vmem:[%s8692_s29 + $0x258] sm:$0xff] }
 0x329   : > { %5061 = vmatpush1.bf16.msra.mxu0 %v6932_v34  ;;  %5143 = vmatpush1.bf16.msra.mxu1 %v6934_v35  ;;  %v3487_v34 = vld [vmem:[%s8692_s29 + $0xd0] sm:$0xff]  ;;  %v3540_v30 = vld [vmem:[%s8692_s29 + $0x278] sm:$0xff] }
 0x32a   : > { %5062 = vmatprep.subr.bf16.mxu0 %v6941_v36  ;;  %5144 = vmatprep.subr.bf16.mxu1 %v6943_v38  ;;  %v3491_v35 = vld [vmem:[%s8692_s29 + $0xf0] sm:$0xff]  ;;  %v3488_v36 = vld [vmem:[%s8692_s29 + $0xd8] sm:$0xff] }
 0x32b   : > { %v3492_v38 = vld [vmem:[%s8692_s29 + $0xf8] sm:$0xff] }
 0x32c   : > { %v6747_v46 = vcombine.high %v3488_v36, %v3492_v38  ;;  %v6746_v53 = vcombine.low %v3488_v36, %v3492_v38  ;;  %v3544_v36 = vld [vmem:[%s8692_s29 + $0x298] sm:$0xff] }
 0x32d   : > { %5063 = vmatpush1.bf16.msra.mxu0 %v6940_v21  ;;  %5145 = vmatpush1.bf16.msra.mxu1 %v6942_v49  ;;  %v3499_v21 = vld [vmem:[%s8692_s29 + $0x130] sm:$0xff]  ;;  %v3496_v49 = vld [vmem:[%s8692_s29 + $0x118] sm:$0xff] }
 0x32e   : > { %5064 = vmatprep.subr.bf16.mxu0 %v6949_v51  ;;  %5146 = vmatprep.subr.bf16.mxu1 %v6951_v52  ;;  %v3500_v51 = vld [vmem:[%s8692_s29 + $0x138] sm:$0xff]  ;;  %v6744_v52 = vcombine.low %v3487_v34, %v3491_v35  ;;  %v6753_v54 = vcombine.high %v3495_v48, %v3499_v21 }
 0x32f   : > { %v6755_v55 = vcombine.high %v3496_v49, %v3500_v51  ;;  %v3548_v38 = vld [vmem:[%s8692_s29 + $0x2b8] sm:$0xff] }
 0x331   : > { %5065 = vmatpush1.bf16.msra.mxu0 %v6948_v57  ;;  %5147 = vmatpush1.bf16.msra.mxu1 %v6950_v58  ;;  %v3507_v57 = vld [vmem:[%s8692_s29 + $0x170] sm:$0xff]  ;;  %v3504_v58 = vld [vmem:[%s8692_s29 + $0x158] sm:$0xff] }
 0x332   : > { %5066 = vmatprep.subr.bf16.mxu0 %v6957_v60  ;;  %5148 = vmatprep.subr.bf16.mxu1 %v6959_v61  ;;  %v6752_v60 = vcombine.low %v3495_v48, %v3499_v21  ;;  %v6754_v61 = vcombine.low %v3496_v49, %v3500_v51  ;;  %v6761_v62 = vcombine.high %v3503_v56, %v3507_v57  ;;  %v3551_v48 = vld [vmem:[%s8692_s29 + $0x2d0] sm:$0xff]  ;;  %v3552_v49 = vld [vmem:[%s8692_s29 + $0x2d8] sm:$0xff] }
 0x333   : > { %v6763_v63 = vcombine.high %v3504_v58, %v3508_v59  ;;  %v6760_v6 = vcombine.low %v3503_v56, %v3507_v57  ;;  %v3555_v21 = vld [vmem:[%s8692_s29 + $0x2f0] sm:$0xff]  ;;  %v3556_v51 = vld [vmem:[%s8692_s29 + $0x2f8] sm:$0xff] }
 0x334   : > { %v3559_v56 = vld [vmem:[%s8692_s29 + $0x310] sm:$0xff] }
 0x335   : > { %5067 = vmatpush1.bf16.msra.mxu0 %v6956_v4  ;;  %5149 = vmatpush1.bf16.msra.mxu1 %v6958_v5  ;;  %v3512_v4 = vld [vmem:[%s8692_s29 + $0x198] sm:$0xff]  ;;  %v3563_v57 = vld [vmem:[%s8692_s29 + $0x330] sm:$0xff] }
 0x336   : > { %5068 = vmatprep.subr.bf16.mxu0 %v6965_v40  ;;  %5150 = vmatprep.subr.bf16.mxu1 %v6967_v7  ;;  %v3516_v5 = vld [vmem:[%s8692_s29 + $0x1b8] sm:$0xff]  ;;  %v6762_v40 = vcombine.low %v3504_v58, %v3508_v59  ;;  %v6769_v7 = vcombine.high %v3511_v2, %v3515_v3 }
 0x337   : > { %v6771_v11 = vcombine.high %v3512_v4, %v3516_v5  ;;  %v6770_v16 = vcombine.low %v3512_v4, %v3516_v5  ;;  %v3560_v58 = vld [vmem:[%s8692_s29 + $0x318] sm:$0xff] }
 0x338   : > { %v3564_v59 = vld [vmem:[%s8692_s29 + $0x338] sm:$0xff] }
 0x339   : > { %5069 = vmatpush1.bf16.msra.mxu0 %v6964_v14  ;;  %5151 = vmatpush1.bf16.msra.mxu1 %v6966_v15  ;;  %v3524_v14 = vld [vmem:[%s8692_s29 + $0x1f8] sm:$0xff]  ;;  %v6768_v15 = vcombine.low %v3511_v2, %v3515_v3  ;;  %v3567_v2 = vld [vmem:[%s8692_s29 + $0x350] sm:$0xff] }
 0x33a   : > { %5161 = vmatprep.subr.bf16.mxu0 %v6721_v44  ;;  %5243 = vmatprep.subr.bf16.mxu1 %v6723_v17  ;;  %v6777_v44 = vcombine.high %v3519_v47, %v3523_v12  ;;  %v6779_v17 = vcombine.high %v3520_v13, %v3524_v14  ;;  %v3571_v3 = vld [vmem:[%s8692_s29 + $0x370] sm:$0xff]  ;;  %v3568_v4 = vld [vmem:[%s8692_s29 + $0x358] sm:$0xff] }
 0x33b   : > { %v3572_v5 = vld [vmem:[%s8692_s29 + $0x378] sm:$0xff] }
 0x33c   : > { %5071 = vmatmul.mubr.bf16.vlgmr.msra.gmra.mrb[4].mxu0 %v9246_v25  ;;  %5153 = vmatmul.mubr.bf16.vlgmr.msra.gmra.mrb[4].mxu1 %v9246_v25 }
 0x33d   : > { %5162 = vmatpush1.bf16.msra.mxu0 %v6720_v24  ;;  %5193 = vmatprep.mubr.bf16.mxu0 %v9165_v0  ;;  %v6776_v24 = vcombine.low %v3519_v47, %v3523_v12  ;;  %v3575_v47 = vld [vmem:[%s8692_s29 + $0x390] sm:$0xff] }
 0x33e   : > { %5244 = vmatpush1.bf16.msra.mxu1 %v6722_v10  ;;  %5275 = vmatprep.mubr.bf16.mxu1 %v9165_v0  ;;  %v6745_v0 = vcombine.high %v3487_v34, %v3491_v35  ;;  %v6778_v10 = vcombine.low %v3520_v13, %v3524_v14  ;;  %v3543_v34 = vld [vmem:[%s8692_s29 + $0x290] sm:$0xff]  ;;  %v3576_v13 = vld [vmem:[%s8692_s29 + $0x398] sm:$0xff] }
 0x33f   : > { %5163 = vmatprep.subr.bf16.mxu0 %v6729_v26  ;;  %5245 = vmatprep.subr.bf16.mxu1 %v6731_v27  ;;  %v6785_v26 = vcombine.high %v3527_v18, %v3531_v19  ;;  %v6787_v27 = vcombine.high %v3528_v22, %v3532_v23  ;;  %v3547_v35 = vld [vmem:[%s8692_s29 + $0x2b0] sm:$0xff]  ;;  %v3580_v14 = vld [vmem:[%s8692_s29 + $0x3b8] sm:$0xff] }
 0x340   : > { %v3579_v12 = vld [vmem:[%s8692_s29 + $0x3b0] sm:$0xff] }
 0x341   : > { %5164 = vmatpush1.bf16.msra.mxu0 %v6728_v8  ;;  %v6784_v8 = vcombine.low %v3527_v18, %v3531_v19  ;;  %v3583_v18 = vld [vmem:[%s8692_s29 + $0x3d0] sm:$0xff] }
 0x342   : > { %5246 = vmatpush1.bf16.msra.mxu1 %v6730_v31  ;;  %5165 = vmatprep.subr.bf16.mxu0 %v6737_v32  ;;  %v6786_v31 = vcombine.low %v3528_v22, %v3532_v23  ;;  %v6793_v32 = vcombine.high %v3535_v28, %v3539_v20  ;;  %v3587_v19 = vld [vmem:[%s8692_s29 + $0x3f0] sm:$0xff]  ;;  %v3584_v22 = vld [vmem:[%s8692_s29 + $0x3d8] sm:$0xff] }
 0x343   : > { %5247 = vmatprep.subr.bf16.mxu1 %v6739_v33  ;;  %v6795_v33 = vcombine.high %v3536_v29, %v3540_v30  ;;  %v3588_v23 = vld [vmem:[%s8692_s29 + $0x3f8] sm:$0xff] }
 0x345   : > { %5166 = vmatpush1.bf16.msra.mxu0 %v6736_v43  ;;  %v6792_v43 = vcombine.low %v3535_v28, %v3539_v20  ;;  %v3591_v28 = vld [vmem:[%s8692_s29 + $0x410] sm:$0xff] }
 0x346   : > { %5248 = vmatpush1.bf16.msra.mxu1 %v6738_v45  ;;  %5167 = vmatprep.subr.bf16.mxu0 %v6745_v0  ;;  %v6794_v45 = vcombine.low %v3536_v29, %v3540_v30  ;;  %v6801_v0 = vcombine.high %v3543_v34, %v3547_v35  ;;  %v3595_v20 = vld [vmem:[%s8692_s29 + $0x430] sm:$0xff]  ;;  %v3592_v29 = vld [vmem:[%s8692_s29 + $0x418] sm:$0xff] }
 0x347   : > { %5249 = vmatprep.subr.bf16.mxu1 %v6747_v46  ;;  %v6803_v46 = vcombine.high %v3544_v36, %v3548_v38  ;;  %v3596_v30 = vld [vmem:[%s8692_s29 + $0x438] sm:$0xff] }
 0x349   : > { %5168 = vmatpush1.bf16.msra.mxu0 %v6744_v52  ;;  %v6800_v52 = vcombine.low %v3543_v34, %v3547_v35  ;;  %v3599_v34 = vld [vmem:[%s8692_s29 + $0x450] sm:$0xff] }
 0x34a   : > { %5250 = vmatpush1.bf16.msra.mxu1 %v6746_v53  ;;  %5169 = vmatprep.subr.bf16.mxu0 %v6753_v54  ;;  %v6802_v53 = vcombine.low %v3544_v36, %v3548_v38  ;;  %v6809_v54 = vcombine.high %v3551_v48, %v3555_v21  ;;  %v3603_v35 = vld [vmem:[%s8692_s29 + $0x470] sm:$0xff]  ;;  %v6848_v36 = vcombine.low %v3591_v28, %v3595_v20  ;;  %v3600_v38 = vld [vmem:[%s8692_s29 + $0x458] sm:$0xff] }
 0x34b   : > { %5251 = vmatprep.subr.bf16.mxu1 %v6755_v55  ;;  %v6811_v55 = vcombine.high %v3552_v49, %v3556_v51 }
 0x34d   : > { %5170 = vmatpush1.bf16.msra.mxu0 %v6752_v60  ;;  %v6808_v60 = vcombine.low %v3551_v48, %v3555_v21  ;;  %v3611_v48 = vld [vmem:[%s8692_s29 + $0x4b0] sm:$0xff] }
 0x34e   : > { %5252 = vmatpush1.bf16.msra.mxu1 %v6754_v61  ;;  %5171 = vmatprep.subr.bf16.mxu0 %v6761_v62  ;;  %v6810_v61 = vcombine.low %v3552_v49, %v3556_v51  ;;  %v6817_v62 = vcombine.high %v3559_v56, %v3563_v57  ;;  %v3608_v49 = vld [vmem:[%s8692_s29 + $0x498] sm:$0xff] }
 0x34f   : > { %5253 = vmatprep.subr.bf16.mxu1 %v6763_v63  ;;  %v6819_v63 = vcombine.high %v3560_v58, %v3564_v59  ;;  %v3612_v51 = vld [vmem:[%s8692_s29 + $0x4b8] sm:$0xff] }
 0x351   : > { %5172 = vmatpush1.bf16.msra.mxu0 %v6760_v6  ;;  %v6816_v6 = vcombine.low %v3559_v56, %v3563_v57  ;;  %v3615_v56 = vld [vmem:[%s8692_s29 + $0x4d0] sm:$0xff] }
 0x352   : > { %5254 = vmatpush1.bf16.msra.mxu1 %v6762_v40  ;;  %5173 = vmatprep.subr.bf16.mxu0 %v6769_v7  ;;  %v6818_v40 = vcombine.low %v3560_v58, %v3564_v59  ;;  %v6825_v7 = vcombine.high %v3567_v2, %v3571_v3  ;;  %v3619_v57 = vld [vmem:[%s8692_s29 + $0x4f0] sm:$0xff]  ;;  %v3616_v58 = vld [vmem:[%s8692_s29 + $0x4d8] sm:$0xff] }
 0x353   : > { %5255 = vmatprep.subr.bf16.mxu1 %v6771_v11  ;;  %v6827_v11 = vcombine.high %v3568_v4, %v3572_v5 }
 0x355   : > { %5174 = vmatpush1.bf16.msra.mxu0 %v6768_v15  ;;  %v6824_v15 = vcombine.low %v3567_v2, %v3571_v3  ;;  %v3624_v2 = vld [vmem:[%s8692_s29 + $0x518] sm:$0xff] }
 0x356   : > { %5256 = vmatpush1.bf16.msra.mxu1 %v6770_v16  ;;  %5175 = vmatprep.subr.bf16.mxu0 %v6777_v44  ;;  %v6826_v16 = vcombine.low %v3568_v4, %v3572_v5  ;;  %v6833_v44 = vcombine.high %v3575_v47, %v3579_v12  ;;  %v3628_v3 = vld [vmem:[%s8692_s29 + $0x538] sm:$0xff]  ;;  %v6872_v4 = vcombine.low %v3615_v56, %v3619_v57 }
 0x357   : > { %5257 = vmatprep.subr.bf16.mxu1 %v6779_v17  ;;  %v6835_v17 = vcombine.high %v3576_v13, %v3580_v14 }
 0x359   : > { %5176 = vmatpush1.bf16.msra.mxu0 %v6776_v24  ;;  %v6832_v24 = vcombine.low %v3575_v47, %v3579_v12  ;;  %v3632_v47 = vld [vmem:[%s8692_s29 + $0x558] sm:$0xff] }
 0x35a   : > { %5258 = vmatpush1.bf16.msra.mxu1 %v6778_v10  ;;  %5177 = vmatprep.subr.bf16.mxu0 %v6785_v26  ;;  %v6834_v10 = vcombine.low %v3576_v13, %v3580_v14  ;;  %v6841_v26 = vcombine.high %v3583_v18, %v3587_v19  ;;  %v3636_v12 = vld [vmem:[%s8692_s29 + $0x578] sm:$0xff]  ;;  %v6882_v14 = vcombine.low %v3624_v2, %v3628_v3 }
 0x35b   : > { %5259 = vmatprep.subr.bf16.mxu1 %v6787_v27  ;;  %v6843_v27 = vcombine.high %v3584_v22, %v3588_v23 }
 0x35d   : > { %5178 = vmatpush1.bf16.msra.mxu0 %v6784_v8  ;;  %v6840_v8 = vcombine.low %v3583_v18, %v3587_v19  ;;  %v3640_v18 = vld [vmem:[%s8692_s29 + $0x598] sm:$0xff] }
 0x35e   : > { %5260 = vmatpush1.bf16.msra.mxu1 %v6786_v31  ;;  %5179 = vmatprep.subr.bf16.mxu0 %v6793_v32  ;;  %v6842_v31 = vcombine.low %v3584_v22, %v3588_v23  ;;  %v6849_v32 = vcombine.high %v3591_v28, %v3595_v20  ;;  %v3644_v19 = vld [vmem:[%s8692_s29 + $0x5b8] sm:$0xff]  ;;  %v6890_v23 = vcombine.low %v3632_v47, %v3636_v12 }
 0x35f   : > { %5261 = vmatprep.subr.bf16.mxu1 %v6795_v33  ;;  %v6851_v33 = vcombine.high %v3592_v29, %v3596_v30  ;;  %v3648_v28 = vld [vmem:[%s8692_s29 + $0x5d8] sm:$0xff] }
 0x360   : > { %v3652_v20 = vld [vmem:[%s8692_s29 + $0x5f8] sm:$0xff] }
 0x361   : > { %5180 = vmatpush1.bf16.msra.mxu0 %v6792_v43  ;;  %v3604_v43 = vld [vmem:[%s8692_s29 + $0x478] sm:$0xff] }
 0x362   : > { %5262 = vmatpush1.bf16.msra.mxu1 %v6794_v45  ;;  %5181 = vmatprep.subr.bf16.mxu0 %v6801_v0  ;;  %v6850_v45 = vcombine.low %v3592_v29, %v3596_v30  ;;  %v6857_v0 = vcombine.high %v3599_v34, %v3603_v35  ;;  %v6859_v21 = vcombine.high %v3600_v38, %v3604_v43 }
 0x363   : > { %5263 = vmatprep.subr.bf16.mxu1 %v6803_v46  ;;  %v3607_v46 = vld [vmem:[%s8692_s29 + $0x490] sm:$0xff]  ;;  %v6898_v30 = vcombine.low %v3640_v18, %v3644_v19 }
 0x364   : > { %v6864_v59 = vcombine.low %v3607_v46, %v3611_v48 }
 0x365   : > { %5182 = vmatpush1.bf16.msra.mxu0 %v6800_v52  ;;  %v6856_v52 = vcombine.low %v3599_v34, %v3603_v35  ;;  %v3656_v34 = vld [vmem:[%s8692_s29 + $0x618] sm:$0xff] }
 0x366   : > { %5264 = vmatpush1.bf16.msra.mxu1 %v6802_v53  ;;  %5183 = vmatprep.subr.bf16.mxu0 %v6809_v54  ;;  %v6858_v53 = vcombine.low %v3600_v38, %v3604_v43  ;;  %v6865_v54 = vcombine.high %v3607_v46, %v3611_v48  ;;  %v3660_v35 = vld [vmem:[%s8692_s29 + $0x638] sm:$0xff]  ;;  %v6906_v38 = vcombine.low %v3648_v28, %v3652_v20  ;;  %v3667_v46 = vld [vmem:[%s8692_s29 + $0x670] sm:$0xff] }
 0x367   : > { %5265 = vmatprep.subr.bf16.mxu1 %v6811_v55  ;;  %v6867_v55 = vcombine.high %v3608_v49, %v3612_v51  ;;  %v3664_v48 = vld [vmem:[%s8692_s29 + $0x658] sm:$0xff] }
 0x369   : > { %5184 = vmatpush1.bf16.msra.mxu0 %v6808_v60  ;;  %v6866_v60 = vcombine.low %v3608_v49, %v3612_v51  ;;  %v6914_v51 = vcombine.low %v3656_v34, %v3660_v35 }
 0x36a   : > { %5266 = vmatpush1.bf16.msra.mxu1 %v6810_v61  ;;  %5185 = vmatprep.subr.bf16.mxu0 %v6817_v62  ;;  %v6873_v61 = vcombine.high %v3615_v56, %v3619_v57  ;;  %v3623_v62 = vld [vmem:[%s8692_s29 + $0x510] sm:$0xff]  ;;  %v3672_v56 = vld [vmem:[%s8692_s29 + $0x698] sm:$0xff] }
 0x36b   : > { %5267 = vmatprep.subr.bf16.mxu1 %v6819_v63  ;;  %v3627_v63 = vld [vmem:[%s8692_s29 + $0x530] sm:$0xff]  ;;  %v3676_v57 = vld [vmem:[%s8692_s29 + $0x6b8] sm:$0xff] }
 0x36c   : > { %v6880_v13 = vcombine.low %v3623_v62, %v3627_v63 }
 0x36d   : > { %5186 = vmatpush1.bf16.msra.mxu0 %v6816_v6  ;;  %v6881_v6 = vcombine.high %v3623_v62, %v3627_v63  ;;  %v3680_v62 = vld [vmem:[%s8692_s29 + $0x6d8] sm:$0xff] }
 0x36e   : > { %5268 = vmatpush1.bf16.msra.mxu1 %v6818_v40  ;;  %5187 = vmatprep.subr.bf16.mxu0 %v6825_v7  ;;  %v6883_v40 = vcombine.high %v3624_v2, %v3628_v3  ;;  %v3631_v7 = vld [vmem:[%s8692_s29 + $0x550] sm:$0xff]  ;;  %v3684_v63 = vld [vmem:[%s8692_s29 + $0x6f8] sm:$0xff]  ;;  %v6930_v3 = vcombine.low %v3672_v56, %v3676_v57 }
 0x36f   : > { %5269 = vmatprep.subr.bf16.mxu1 %v6827_v11  ;;  %v3635_v11 = vld [vmem:[%s8692_s29 + $0x570] sm:$0xff] }
 0x370   : > { %v6888_v22 = vcombine.low %v3631_v7, %v3635_v11 }
 0x371   : > { %5188 = vmatpush1.bf16.msra.mxu0 %v6824_v15  ;;  %v6889_v15 = vcombine.high %v3631_v7, %v3635_v11  ;;  %v3688_v7 = vld [vmem:[%s8692_s29 + $0x718] sm:$0xff] }
 0x372   : > { %5270 = vmatpush1.bf16.msra.mxu1 %v6826_v16  ;;  %5189 = vmatprep.subr.bf16.mxu0 %v6833_v44  ;;  %v6891_v16 = vcombine.high %v3632_v47, %v3636_v12  ;;  %v3639_v44 = vld [vmem:[%s8692_s29 + $0x590] sm:$0xff]  ;;  %v3692_v11 = vld [vmem:[%s8692_s29 + $0x738] sm:$0xff]  ;;  %v6938_v12 = vcombine.low %v3680_v62, %v3684_v63 }
 0x373   : > { %5271 = vmatprep.subr.bf16.mxu1 %v6835_v17  ;;  %v3643_v17 = vld [vmem:[%s8692_s29 + $0x5b0] sm:$0xff] }
 0x374   : > { %v6896_v29 = vcombine.low %v3639_v44, %v3643_v17 }
 0x375   : > { %5190 = vmatpush1.bf16.msra.mxu0 %v6832_v24  ;;  %v6897_v24 = vcombine.high %v3639_v44, %v3643_v17  ;;  %v3696_v44 = vld [vmem:[%s8692_s29 + $0x758] sm:$0xff] }
 0x376   : > { %5272 = vmatpush1.bf16.msra.mxu1 %v6834_v10  ;;  %5191 = vmatprep.subr.bf16.mxu0 %v6841_v26  ;;  %v6899_v10 = vcombine.high %v3640_v18, %v3644_v19  ;;  %v3647_v26 = vld [vmem:[%s8692_s29 + $0x5d0] sm:$0xff]  ;;  %v3700_v17 = vld [vmem:[%s8692_s29 + $0x778] sm:$0xff]  ;;  %v6946_v19 = vcombine.low %v3688_v7, %v3692_v11 }
 0x377   : > { %5273 = vmatprep.subr.bf16.mxu1 %v6843_v27  ;;  %v3651_v27 = vld [vmem:[%s8692_s29 + $0x5f0] sm:$0xff] }
 0x379   : > { %5192 = vmatpush1.bf16.msra.mxu0 %v6840_v8  ;;  %v6905_v8 = vcombine.high %v3647_v26, %v3651_v27 }
 0x37a   : > { %5274 = vmatpush1.bf16.msra.mxu1 %v6842_v31  ;;  %5202 = vmatprep.subr.bf16.mxu0 %v6849_v32  ;;  %v6907_v31 = vcombine.high %v3648_v28, %v3652_v20  ;;  %v3655_v32 = vld [vmem:[%s8692_s29 + $0x610] sm:$0xff]  ;;  %v6954_v20 = vcombine.low %v3696_v44, %v3700_v17 }
 0x37b   : > { %5284 = vmatprep.subr.bf16.mxu1 %v6851_v33  ;;  %v3659_v33 = vld [vmem:[%s8692_s29 + $0x630] sm:$0xff] }
 0x37c   : > { %5194 = vmatmul.mubr.bf16.vlgmr.msra.gmra.mrb[8].mxu0 %v9167_v1  ;;  %v6913_v43 = vcombine.high %v3655_v32, %v3659_v33  ;;  %v6912_v49 = vcombine.low %v3655_v32, %v3659_v33  ;;  %v3712_v32 = vld [vmem:[%s8692_s29 + $0x7d8] sm:$0xff] }
 0x37d   : > { %5276 = vmatmul.mubr.bf16.vlgmr.msra.gmra.mrb[8].mxu1 %v9167_v1  ;;  %5203 = vmatpush1.bf16.msra.mxu0 %v6848_v36  ;;  %v3620_v1 = vld [vmem:[%s8692_s29 + $0x4f8] sm:$0xff]  ;;  %v6904_v36 = vcombine.low %v3647_v26, %v3651_v27 }
 0x37e   : > { %5234 = vmatprep.mubr.bf16.mxu0 %v9175_v9  ;;  %5285 = vmatpush1.bf16.msra.mxu1 %v6850_v45  ;;  %v6874_v5 = vcombine.low %v3616_v58, %v3620_v1  ;;  %v6915_v45 = vcombine.high %v3656_v34, %v3660_v35  ;;  %v3704_v26 = vld [vmem:[%s8692_s29 + $0x798] sm:$0xff] }
 0x37f   : > { %5316 = vmatprep.mubr.bf16.mxu1 %v9175_v9  ;;  %5204 = vmatprep.subr.bf16.mxu0 %v6857_v0  ;;  %v6875_v9 = vcombine.high %v3616_v58, %v3620_v1  ;;  %v3663_v0 = vld [vmem:[%s8692_s29 + $0x650] sm:$0xff]  ;;  %v3708_v27 = vld [vmem:[%s8692_s29 + $0x7b8] sm:$0xff] }
 0x380   : > { %5286 = vmatprep.subr.bf16.mxu1 %v6859_v21  ;;  %v3668_v21 = vld [vmem:[%s8692_s29 + $0x678] sm:$0xff]  ;;  %v6920_v58 = vcombine.low %v3663_v0, %v3667_v46  ;;  %v6962_v35 = vcombine.low %v3704_v26, %v3708_v27 }
 0x381   : > { %5205 = vmatpush1.bf16.msra.mxu0 %v6856_v52  ;;  %v6921_v52 = vcombine.high %v3663_v0, %v3667_v46  ;;  %v6922_v1 = vcombine.low %v3664_v48, %v3668_v21  ;;  %v3716_v33 = vld [vmem:[%s8692_s29 + $0x7f8] sm:$0xff]  ;;  %v7917_v0 = vmov 1983009808  }
 0x382   : > { %5287 = vmatpush1.bf16.msra.mxu1 %v6858_v53  ;;  %5206 = vmatprep.subr.bf16.mxu0 %v6865_v54  ;;  %v6923_v53 = vcombine.high %v3664_v48, %v3668_v21  ;;  %v3671_v54 = vld [vmem:[%s8692_s29 + $0x690] sm:$0xff]  ;;  %v5336_v46 = vunpack.c.l.s4 %v7917_v0  ;;  %v7771_v0 = vld [vmem:[%s9672_s5 + $0xf0] sm:$0xff] (!%p6972_p6)  }
 0x383   : > { %5288 = vmatprep.subr.bf16.mxu1 %v6867_v55  ;;  %v3675_v55 = vld [vmem:[%s8692_s29 + $0x6b0] sm:$0xff] }
 0x384   : > { %v6928_v2 = vcombine.low %v3671_v54, %v3675_v55  ;;  %v5337_v48 = vunpack.c.0.s8 %v5336_v46  ;;  %v7772_v46 = vld [vmem:[%s9672_s5 + $0x30] sm:$0xff] (!%p6972_p6)  }
 0x385   : > { %5207 = vmatpush1.bf16.msra.mxu0 %v6864_v59  ;;  %v6929_v59 = vcombine.high %v3671_v54, %v3675_v55 }
 0x386   : > { %5289 = vmatpush1.bf16.msra.mxu1 %v6866_v60  ;;  %5208 = vmatprep.subr.bf16.mxu0 %v6873_v61  ;;  %v6931_v60 = vcombine.high %v3672_v56, %v3676_v57  ;;  %v3679_v61 = vld [vmem:[%s8692_s29 + $0x6d0] sm:$0xff] }
 0x387   : > { %5290 = vmatprep.subr.bf16.mxu1 %v6875_v9  ;;  %v3683_v9 = vld [vmem:[%s8692_s29 + $0x6f0] sm:$0xff] }
 0x388   : > { %v6936_v47 = vcombine.low %v3679_v61, %v3683_v9 }
 0x389   : > { %5209 = vmatpush1.bf16.msra.mxu0 %v6872_v4  ;;  %v6937_v4 = vcombine.high %v3679_v61, %v3683_v9 }
 0x38a   : > { %5291 = vmatpush1.bf16.msra.mxu1 %v6874_v5  ;;  %5210 = vmatprep.subr.bf16.mxu0 %v6881_v6  ;;  %v6939_v5 = vcombine.high %v3680_v62, %v3684_v63  ;;  %v3687_v6 = vld [vmem:[%s8692_s29 + $0x710] sm:$0xff] }
 0x38b   : > { %5292 = vmatprep.subr.bf16.mxu1 %v6883_v40  ;;  %v3691_v40 = vld [vmem:[%s8692_s29 + $0x730] sm:$0xff] }
 0x38c   : > { %v6944_v18 = vcombine.low %v3687_v6, %v3691_v40 }
 0x38d   : > { %5211 = vmatpush1.bf16.msra.mxu0 %v6880_v13  ;;  %v6945_v13 = vcombine.high %v3687_v6, %v3691_v40 }
 0x38e   : > { %5293 = vmatpush1.bf16.msra.mxu1 %v6882_v14  ;;  %5212 = vmatprep.subr.bf16.mxu0 %v6889_v15  ;;  %v6947_v14 = vcombine.high %v3688_v7, %v3692_v11  ;;  %v3695_v15 = vld [vmem:[%s8692_s29 + $0x750] sm:$0xff] }
 0x38f   : > { %5294 = vmatprep.subr.bf16.mxu1 %v6891_v16  ;;  %v3699_v16 = vld [vmem:[%s8692_s29 + $0x770] sm:$0xff] }
 0x390   : > { %v6952_v28 = vcombine.low %v3695_v15, %v3699_v16 }
 0x391   : > { %5213 = vmatpush1.bf16.msra.mxu0 %v6888_v22  ;;  %v6953_v22 = vcombine.high %v3695_v15, %v3699_v16  ;;  %v7746_v16 = vld [vmem:[%s9672_s5 + $0x40] sm:$0xff] (!%p6972_p6)  }
 0x392   : > { %5295 = vmatpush1.bf16.msra.mxu1 %v6890_v23  ;;  %5214 = vmatprep.subr.bf16.mxu0 %v6897_v24  ;;  %v6955_v23 = vcombine.high %v3696_v44, %v3700_v17  ;;  %v3703_v24 = vld [vmem:[%s8692_s29 + $0x790] sm:$0xff] }
 0x393   : > { %5296 = vmatprep.subr.bf16.mxu1 %v6899_v10  ;;  %v3707_v10 = vld [vmem:[%s8692_s29 + $0x7b0] sm:$0xff] }
 0x394   : > { %v6960_v34 = vcombine.low %v3703_v24, %v3707_v10  ;;  %v7747_v44 = vld [vmem:[%s9672_s5 + $0xc0] sm:$0xff] (!%p6972_p6)  }
 0x395   : > { %5215 = vmatpush1.bf16.msra.mxu0 %v6896_v29  ;;  %v6961_v29 = vcombine.high %v3703_v24, %v3707_v10  ;;  %v7748_v17 = vld [vmem:[%s9672_s5] sm:$0xff] (!%p6972_p6)   ;;  %v7753_v24 = vld [vmem:[%s9672_s5 + $0x88] sm:$0xff] (!%p6972_p6)   ;;  %v7754_v10 = vld [vmem:[%s9672_s5 + $0x50] sm:$0xff] (!%p6972_p6)  }
 0x396   : > { %5297 = vmatpush1.bf16.msra.mxu1 %v6898_v30  ;;  %5216 = vmatprep.subr.bf16.mxu0 %v6905_v8  ;;  %v6963_v30 = vcombine.high %v3704_v26, %v3708_v27  ;;  %v3711_v8 = vld [vmem:[%s8692_s29 + $0x7d0] sm:$0xff]  ;;  %v7755_v26 = vld [vmem:[%s9672_s5 + $0xd0] sm:$0xff] (!%p6972_p6)  }
 0x397   : > { %5298 = vmatprep.subr.bf16.mxu1 %v6907_v31  ;;  %v3715_v31 = vld [vmem:[%s8692_s29 + $0x7f0] sm:$0xff]  ;;  %v7756_v27 = vld [vmem:[%s9672_s5 + $0x10] sm:$0xff] (!%p6972_p6)  }
 0x399   : > { %5217 = vmatpush1.bf16.msra.mxu0 %v6904_v36  ;;  %v6969_v36 = vcombine.high %v3711_v8, %v3715_v31 }
 0x39a   : > { %5299 = vmatpush1.bf16.msra.mxu1 %v6906_v38  ;;  %5218 = vmatprep.subr.bf16.mxu0 %v6913_v43  ;;  %v6971_v38 = vcombine.high %v3712_v32, %v3716_v33  ;;  %v6968_v43 = vcombine.low %v3711_v8, %v3715_v31  ;;  %v7761_v8 = vld [vmem:[%s9672_s5 + $0x98] sm:$0xff] (!%p6972_p6)   ;;  %v7762_v31 = vld [vmem:[%s9672_s5 + $0x60] sm:$0xff] (!%p6972_p6)  }
 0x39b   : > { %5300 = vmatprep.subr.bf16.mxu1 %v6915_v45  ;;  %v6970_v45 = vcombine.low %v3712_v32, %v3716_v33  ;;  %v7763_v32 = vld [vmem:[%s9672_s5 + $0xe0] sm:$0xff] (!%p6972_p6)  }
 0x39c   : > { %v7764_v33 = vld [vmem:[%s9672_s5 + $0x20] sm:$0xff] (!%p6972_p6)  }
 0x39d   : > { %5219 = vmatpush1.bf16.msra.mxu0 %v6912_v49 }
 0x39e   : > { %5301 = vmatpush1.bf16.msra.mxu1 %v6914_v51  ;;  %5220 = vmatprep.subr.bf16.mxu0 %v6921_v52  ;;  %v9379_v51 = vsub.s32 %v5337_v48, %v8745_v37  ;;  %v7773_v48 = vld [vmem:[%s9672_s5 + $0xb0] sm:$0xff] (!%p6972_p6)  }
 0x39f   : > { %5302 = vmatprep.subr.bf16.mxu1 %v6923_v53 }
 0x3a1   : > { %5221 = vmatpush1.bf16.msra.mxu0 %v6920_v58 }
 0x3a2   : > { %5303 = vmatpush1.bf16.msra.mxu1 %v6922_v1  ;;  %5222 = vmatprep.subr.bf16.mxu0 %v6929_v59 }
 0x3a3   : > { %5304 = vmatprep.subr.bf16.mxu1 %v6931_v60  ;;  %v3455_v60 = vld [vmem:[#allocation2] sm:$0xff] }
 0x3a5   : > { %5223 = vmatpush1.bf16.msra.mxu0 %v6928_v2 }
 0x3a6   : > { %5305 = vmatpush1.bf16.msra.mxu1 %v6930_v3  ;;  %5224 = vmatprep.subr.bf16.mxu0 %v6937_v4 }
 0x3a7   : > { %5306 = vmatprep.subr.bf16.mxu1 %v6939_v5 }
 0x3a9   : > { %5225 = vmatpush1.bf16.msra.mxu0 %v6936_v47 }
 0x3aa   : > { %5307 = vmatpush1.bf16.msra.mxu1 %v6938_v12  ;;  %5226 = vmatprep.subr.bf16.mxu0 %v6945_v13  ;;  %v3456_v13 = vld [vmem:[#allocation2 + $0x8] sm:$0xff] }
 0x3ab   : > { %5308 = vmatprep.subr.bf16.mxu1 %v6947_v14 }
 0x3ad   : > { %5227 = vmatpush1.bf16.msra.mxu0 %v6944_v18  ;;  %v7749_v18 = vld [vmem:[%s9672_s5 + $0x80] sm:$0xff] (!%p6972_p6)  }
 0x3ae   : > { %5309 = vmatpush1.bf16.msra.mxu1 %v6946_v19  ;;  %5228 = vmatprep.subr.bf16.mxu0 %v6953_v22  ;;  %v7750_v19 = vld [vmem:[%s9672_s5 + $0x48] sm:$0xff] (!%p6972_p6)  }
 0x3af   : > { %5310 = vmatprep.subr.bf16.mxu1 %v6955_v23  ;;  %v7751_v22 = vld [vmem:[%s9672_s5 + $0xc8] sm:$0xff] (!%p6972_p6)  }
 0x3b0   : > { %v7752_v23 = vld [vmem:[%s9672_s5 + $0x8] sm:$0xff] (!%p6972_p6)  }
 0x3b1   : > { %5229 = vmatpush1.bf16.msra.mxu0 %v6952_v28  ;;  %v7757_v28 = vld [vmem:[%s9672_s5 + $0x90] sm:$0xff] (!%p6972_p6)  }
 0x3b2   : > { %5311 = vmatpush1.bf16.msra.mxu1 %v6954_v20  ;;  %5230 = vmatprep.subr.bf16.mxu0 %v6961_v29  ;;  %v7758_v20 = vld [vmem:[%s9672_s5 + $0x58] sm:$0xff] (!%p6972_p6)  }
 0x3b3   : > { %5312 = vmatprep.subr.bf16.mxu1 %v6963_v30  ;;  %v7759_v29 = vld [vmem:[%s9672_s5 + $0xd8] sm:$0xff] (!%p6972_p6)  }
 0x3b4   : > { %v7760_v30 = vld [vmem:[%s9672_s5 + $0x18] sm:$0xff] (!%p6972_p6)  }
 0x3b5   : > { %5231 = vmatpush1.bf16.msra.mxu0 %v6960_v34  ;;  %v7765_v34 = vld [vmem:[%s9672_s5 + $0xa0] sm:$0xff] (!%p6972_p6)  }
 0x3b6   : > { %5313 = vmatpush1.bf16.msra.mxu1 %v6962_v35  ;;  %5232 = vmatprep.subr.bf16.mxu0 %v6969_v36  ;;  %v7766_v35 = vld [vmem:[%s9672_s5 + $0x68] sm:$0xff] (!%p6972_p6)  }
 0x3b7   : > { %5314 = vmatprep.subr.bf16.mxu1 %v6971_v38  ;;  %v7767_v36 = vld [vmem:[%s9672_s5 + $0xe8] sm:$0xff] (!%p6972_p6)  }
 0x3b8   : > { %v7768_v38 = vld [vmem:[%s9672_s5 + $0x28] sm:$0xff] (!%p6972_p6)  }
 0x3b9   : > { %5233 = vmatpush1.bf16.msra.mxu0 %v6968_v43  ;;  %v7769_v43 = vld [vmem:[%s9672_s5 + $0xa8] sm:$0xff] (!%p6972_p6)  }
 0x3ba   : > { %5315 = vmatpush1.bf16.msra.mxu1 %v6970_v45  ;;  %7054 = vmatprep.subr.bf16.mxu0 (!%p6972_p6), %v7746_v16  ;;  %v7770_v45 = vld [vmem:[%s9672_s5 + $0x70] sm:$0xff] (!%p6972_p6)  }
 0x3bb   : > { %7076 = vmatprep.subr.bf16.mxu1 (!%p6972_p6), %v7747_v44 }
 0x3bc   : > { %5235 = vmatmul.mubr.bf16.vlgmr.msra.gmra.mrb[8].mxu0 %v9246_v25 }
 0x3bd   : > { %5317 = vmatmul.mubr.bf16.vlgmr.msra.gmra.mrb[8].mxu1 %v9246_v25  ;;  %7055 = vmatpush3.bf16.msra.mxu0 (!%p6972_p6), %v7748_v17 }
 0x3be   : > { %7077 = vmatpush3.bf16.msra.mxu1 (!%p6972_p6), %v7749_v18  ;;  %7056 = vmatprep.subr.bf16.mxu0 (!%p6972_p6), %v7750_v19  ;;  %v7783_v19 = vld [vmem:[%s9672_s5 + $0x1c8] sm:$0xff] (!%p6972_p6)  }
 0x3bf   : > { %7078 = vmatprep.subr.bf16.mxu1 (!%p6972_p6), %v7751_v22  ;;  %v7784_v22 = vld [vmem:[%s9672_s5 + $0x108] sm:$0xff] (!%p6972_p6)  }
 0x3c1   : > { %7057 = vmatpush3.bf16.msra.mxu0 (!%p6972_p6), %v7752_v23  ;;  %v7785_v23 = vld [vmem:[%s9672_s5 + $0x188] sm:$0xff] (!%p6972_p6)  }
 0x3c2   : > { %7079 = vmatpush3.bf16.msra.mxu1 (!%p6972_p6), %v7753_v24  ;;  %7058 = vmatprep.subr.bf16.mxu0 (!%p6972_p6), %v7754_v10 }
 0x3c3   : > { %7080 = vmatprep.subr.bf16.mxu1 (!%p6972_p6), %v7755_v26  ;;  %v7786_v26 = vld [vmem:[%s9672_s5 + $0x150] sm:$0xff] (!%p6972_p6)  }
 0x3c5   : > { %7059 = vmatpush3.bf16.msra.mxu0 (!%p6972_p6), %v7756_v27  ;;  %v7787_v27 = vld [vmem:[%s9672_s5 + $0x1d0] sm:$0xff] (!%p6972_p6)  }
 0x3c6   : > { %7081 = vmatpush3.bf16.msra.mxu1 (!%p6972_p6), %v7757_v28  ;;  %7060 = vmatprep.subr.bf16.mxu0 (!%p6972_p6), %v7758_v20  ;;  %v7788_v28 = vld [vmem:[%s9672_s5 + $0x110] sm:$0xff] (!%p6972_p6)  }
 0x3c7   : > { %7082 = vmatprep.subr.bf16.mxu1 (!%p6972_p6), %v7759_v29  ;;  %v7789_v20 = vld [vmem:[%s9672_s5 + $0x190] sm:$0xff] (!%p6972_p6)  }
 0x3c9   : > { %7061 = vmatpush3.bf16.msra.mxu0 (!%p6972_p6), %v7760_v30 }
 0x3ca   : > { %7083 = vmatpush3.bf16.msra.mxu1 (!%p6972_p6), %v7761_v8  ;;  %7062 = vmatprep.subr.bf16.mxu0 (!%p6972_p6), %v7762_v31  ;;  %v7790_v8 = vld [vmem:[%s9672_s5 + $0x158] sm:$0xff] (!%p6972_p6)  }
 0x3cb   : > { %7084 = vmatprep.subr.bf16.mxu1 (!%p6972_p6), %v7763_v32  ;;  %v7791_v31 = vld [vmem:[%s9672_s5 + $0x1d8] sm:$0xff] (!%p6972_p6)  }
 0x3cc   : > { %v7792_v32 = vld [vmem:[%s9672_s5 + $0x118] sm:$0xff] (!%p6972_p6)  }
 0x3cd   : > { %7063 = vmatpush3.bf16.msra.mxu0 (!%p6972_p6), %v7764_v33  ;;  %v7793_v33 = vld [vmem:[%s9672_s5 + $0x198] sm:$0xff] (!%p6972_p6)  }
 0x3ce   : > { %7085 = vmatpush3.bf16.msra.mxu1 (!%p6972_p6), %v7765_v34  ;;  %7064 = vmatprep.subr.bf16.mxu0 (!%p6972_p6), %v7766_v35  ;;  %v7794_v34 = vld [vmem:[%s9672_s5 + $0x160] sm:$0xff] (!%p6972_p6)  }
 0x3cf   : > { %7086 = vmatprep.subr.bf16.mxu1 (!%p6972_p6), %v7767_v36  ;;  %v7795_v36 = vld [vmem:[%s9672_s5 + $0x1e0] sm:$0xff] (!%p6972_p6)  }
 0x3d1   : > { %7065 = vmatpush3.bf16.msra.mxu0 (!%p6972_p6), %v7768_v38  ;;  %v7796_v38 = vld [vmem:[%s9672_s5 + $0x120] sm:$0xff] (!%p6972_p6)  }
 0x3d2   : > { %7087 = vmatpush3.bf16.msra.mxu1 (!%p6972_p6), %v7769_v43  ;;  %7066 = vmatprep.subr.bf16.mxu0 (!%p6972_p6), %v7770_v45  ;;  %v7798_v43 = vld [vmem:[%s9672_s5 + $0x168] sm:$0xff] (!%p6972_p6)  }
 0x3d3   : > { %7088 = vmatprep.subr.bf16.mxu1 (!%p6972_p6), %v7771_v0  ;;  %v7797_v0 = vld [vmem:[%s9672_s5 + $0x1a0] sm:$0xff] (!%p6972_p6)  }
 0x3d5   : > { %7067 = vmatpush3.bf16.msra.mxu0 (!%p6972_p6), %v7772_v46 }
 0x3d6   : > { %7089 = vmatpush3.bf16.msra.mxu1 (!%p6972_p6), %v7773_v48  ;;  %v7799_v48 = vld [vmem:[%s9672_s5 + $0x1e8] sm:$0xff] (!%p6972_p6)  }
 0x40f   : > { %v5072_v21 = vpop.f32.mrb[4].mxu0  ;;  %v5154_v49 = vpop.f32.mrb[4].mxu1 }
 0x410   : > { %v5074_v52 = vpop.f32.mrb[5].mxu0  ;;  %v5156_v53 = vpop.f32.mrb[5].mxu1 }
 0x411   : > { %v5333_v54 = vcombine.low %v5072_v21, %v5074_v52  ;;  %v5334_v55 = vcombine.low %v5154_v49, %v5156_v53  ;;  %v5076_v56 = vpop.f32.mrb[6].mxu0  ;;  %v5158_v57 = vpop.f32.mrb[6].mxu1  ;;  %v7774_v21 = vld [vmem:[%s9672_s5 + $0x78] sm:$0xff] (!%p6972_p6)  }
 0x412   : > { %v5077_v58 = vpop.f32.mrb[7].mxu0  ;;  %v5159_v1 = vpop.f32.mrb[7].mxu1  ;;  %v7775_v49 = vld [vmem:[%s9672_s5 + $0xf8] sm:$0xff] (!%p6972_p6)   ;;  %7068 = vmatprep.subr.bf16.mxu0 (!%p6972_p6), %v7774_v21  ;;  %v7800_v21 = vld [vmem:[%s9672_s5 + $0x128] sm:$0xff] (!%p6972_p6)  }
 0x413   : > { %v5341_v59 = vrot.slane %v5333_v54, %v9379_v51  ;;  %v5348_v25 = vrot.slane %v5334_v55, %v9379_v51  ;;  %v7776_v52 = vld [vmem:[%s9672_s5 + $0x38] sm:$0xff] (!%p6972_p6)   ;;  %7090 = vmatprep.subr.bf16.mxu1 (!%p6972_p6), %v7775_v49  ;;  %v5379_v54 = vld [vmem:[%s9671_s4] sm:$0xff] (!%p6972_p6) }
 0x414   : > { %v7777_v53 = vld [vmem:[%s9672_s5 + $0xb8] sm:$0xff] (!%p6972_p6)   ;;  %7069 = vmatpush3.bf16.msra.mxu0 (!%p6972_p6), %v7776_v52  ;;  %v5384_v55 = vrot.slane (!%p6972_p6), %v5379_v54, %v1354_v39  ;;  %v5388_v56 = vrot.slane (!%p6972_p6), %v5379_v54, %v1358_v41  ;;  %v5392_v57 = vrot.slane (!%p6972_p6), %v5379_v54, %v1362_v50  ;;  %v5396_v58 = vrot.slane (!%p6972_p6), %v5379_v54, %v1366_v42  ;;  %v7778_v1 = vld [vmem:[%s9672_s5 + $0x140] sm:$0xff] (!%p6972_p6)  }
 0x415   : > { %v5349_v61 = vcombine.low %v5341_v59, %v5348_v25  ;;  %7091 = vmatpush3.bf16.msra.mxu1 (!%p6972_p6), %v7777_v53  ;;  %v7779_v59 = vld [vmem:[%s9672_s5 + $0x1c0] sm:$0xff] (!%p6972_p6)   ;;  %7098 = vmatprep.subr.bf16.mxu0 (!%p6972_p6), %v7778_v1  ;;  %v7804_v1 = vld [vmem:[%s9672_s5 + $0x130] sm:$0xff] (!%p6972_p6)  }
 0x416   : > { %v5413_v25 = vcombine.low (!%p6972_p6), %v5384_v55, %v5388_v56  ;;  %7120 = vmatprep.subr.bf16.mxu1 (!%p6972_p6), %v7779_v59  ;;  %v7801_v55 = vld [vmem:[%s9672_s5 + $0x1a8] sm:$0xff] (!%p6972_p6)  }
 0x417   : > { %v5369_v9 = vadd.f32 %v5349_v61, %v3455_v60  ;;  %v5414_v60 = vcombine.low (!%p6972_p6), %v5392_v57, %v5396_v58  ;;  %v7803_v58 = vld [vmem:[%s9672_s5 + $0x1f0] sm:$0xff] (!%p6972_p6)  }
 0x418   : > { %v5421_v39 = vrot.slane (!%p6972_p6), %v5413_v25, %v9379_v51 }
 0x419   : > { %5371 = vst [vmem:[#allocation2] sm:$0xff] %v5369_v9  ;;  %v5428_v41 = vrot.slane (!%p6972_p6), %v5414_v60, %v9379_v51  ;;  %v7806_v60 = vld [vmem:[%s9672_s5 + $0x178] sm:$0xff] (!%p6972_p6)  }
 0x41b   : > { %v5429_v61 = vcombine.low (!%p6972_p6), %v5421_v39, %v5428_v41  ;;  %v7807_v41 = vld [vmem:[%s9672_s5 + $0x1f8] sm:$0xff] (!%p6972_p6)  }
 0x420   : > { %v5377_v50 = vld [vmem:[#allocation2] sm:$0xff] (!%p6972_p6) }
 0x421   : > { %v5449_v9 = vadd.f32 (!%p6972_p6), %v5429_v61, %v5377_v50  ;;  %v7808_v50 = vld [vmem:[%s9672_s5 + $0x138] sm:$0xff] (!%p6972_p6)  }
 0x422   : > { %v7809_v61 = vld [vmem:[%s9672_s5 + $0x1b8] sm:$0xff] (!%p6972_p6)  }
 0x423   : > { %v5451_v42 = vmax.f32 (!%p6972_p6), %v5449_v9, 0.0 }
 0x48f   : > { %v5236_v62 = vpop.f32.mrb[8].mxu0 }
 0x490   : > { %v5318_v63 = vpop.f32.mrb[8].mxu1  ;;  %v5238_v2 = vpop.f32.mrb[9].mxu0 }
 0x491   : > { %v5350_v3 = vcombine.low %v5236_v62, %v5238_v2  ;;  %v5320_v4 = vpop.f32.mrb[9].mxu1  ;;  %v5240_v5 = vpop.f32.mrb[10].mxu0  ;;  %v5399_v62 = vsub.s32 (!%p6972_p6), 4, %v8745_v37  ;;  %v5462_v2 = vrot.slane (!%p6972_p6), %v5451_v42, %v9379_v51 }
 0x492   : > { %v5351_v6 = vcombine.low %v5318_v63, %v5320_v4  ;;  %v5322_v40 = vpop.f32.mrb[10].mxu1  ;;  %v5241_v7 = vpop.f32.mrb[11].mxu0  ;;  %v5403_v63 = vsub.s32 (!%p6972_p6), 5, %v8745_v37  ;;  %v5407_v4 = vsub.s32 (!%p6972_p6), 6, %v8745_v37  ;;  %v5411_v5 = vsub.s32 (!%p6972_p6), 7, %v8745_v37  ;;  %v7782_v37 = vld [vmem:[%s9672_s5 + $0x148] sm:$0xff] (!%p6972_p6)  }
 0x493   : > { %v5358_v11 = vrot.slane %v5350_v3, %v9379_v51  ;;  %v5323_v47 = vpop.f32.mrb[11].mxu1  ;;  %v5455_v3 = vcombine.high (!%p6972_p6), %v5451_v42, %v5451_v42  ;;  %v5497_v7 = vpack.c.bf16 (!%p6972_p6), %v5462_v2, %v5462_v2 }
 0x494   : > { %v5365_v12 = vrot.slane %v5351_v6, %v9379_v51  ;;  %5376 = sbr.rel (%p6972_p6) target bundleno = 1649 (0x671), region = 91  ;;  %v5470_v6 = vcombine.high (!%p6972_p6), %v5462_v2, %v5462_v2  ;;  %v5400_v47 = vrot.slane (!%p6972_p6), %v5379_v54, %v5399_v62  ;;  %v5408_v16 = vrot.slane (!%p6972_p6), %v5379_v54, %v5407_v4  ;;  %v7810_v62 = vld [vmem:[%s9674_s7] sm:$0xff] (!%p6972_p6)   ;;  %v7811_v2 = vld [vmem:[%s9674_s7 + $0x8] sm:$0xff] (!%p6972_p6)   ;;  %v7813_v4 = vld [vmem:[%s9674_s7 + $0x18] sm:$0xff] (!%p6972_p6)  }
 0x495   : > { %v5469_v40 = vrot.slane (!%p6972_p6), %v5455_v3, %v9379_v51  ;;  %v5412_v44 = vrot.slane (!%p6972_p6), %v5379_v54, %v5411_v5  ;;  %v7812_v3 = vld [vmem:[%s9674_s7 + $0x10] sm:$0xff] (!%p6972_p6)   ;;  %v7814_v5 = vld [vmem:[%s9674_s7 + $0x20] sm:$0xff] (!%p6972_p6)  }
 0x496   : > { %v5366_v14 = vcombine.low %v5358_v11, %v5365_v12  ;;  %v7780_v11 = vld [vmem:[%s9672_s5 + $0x100] sm:$0xff] (!%p6972_p6)   ;;  %v5404_v12 = vrot.slane (!%p6972_p6), %v5379_v54, %v5403_v63  ;;  %v7802_v54 = vld [vmem:[%s9672_s5 + $0x170] sm:$0xff] (!%p6972_p6)   ;;  %v7918_v63 = vmov (!%p6972_p6), 0.0  }
 0x497   : > { %v5499_v17 = vpack.c.bf16 (!%p6972_p6), %v5469_v40, %v5469_v40  ;;  %v5431_v10 = vcombine.low (!%p6972_p6), %v5408_v16, %v5412_v44 }
 0x498   : > { %v5370_v15 = vadd.f32 %v5366_v14, %v3456_v13  ;;  %v5498_v13 = vpack.c.bf16 (!%p6972_p6), %v5470_v6, %v5470_v6  ;;  %v5471_v14 = vcombine.high (!%p6972_p6), %v5469_v40, %v5469_v40  ;;  %v5430_v24 = vcombine.low (!%p6972_p6), %v5400_v47, %v5404_v12  ;;  %v7815_v6 = vld [vmem:[%s9674_s7 + $0x28] sm:$0xff] (!%p6972_p6)   ;;  %v7816_v40 = vld [vmem:[%s9674_s7 + $0x30] sm:$0xff] (!%p6972_p6)   ;;  %v6973_v47 = vld [vmem:[%s9673_s6] ss:$0 sm:$0xff] (!%p6972_p6) }
 0x499   : > { %v5445_v30 = vrot.slane (!%p6972_p6), %v5431_v10, %v9379_v51 }
 0x49a   : > { %5372 = vst [vmem:[#allocation2 + $0x8] sm:$0xff] %v5370_v15  ;;  %v7781_v15 = vld [vmem:[%s9672_s5 + $0x180] sm:$0xff] (!%p6972_p6)   ;;  %6056 = vmatprep.mubr.bf16.mxu0 (!%p6972_p6), %v5498_v13  ;;  %v5500_v18 = vpack.c.bf16 (!%p6972_p6), %v5471_v14, %v5471_v14  ;;  %v5438_v29 = vrot.slane (!%p6972_p6), %v5430_v24, %v9379_v51 }
 0x49b   : > { %6057 = vmatmul.mubr.bf16.vlgmr.msra.gmra.mrb[0].mxu0 %v5497_v7  ;;  %v7817_v7 = vld [vmem:[%s9674_s7 + $0x38] sm:$0xff]  }
 0x49c   : > { %6096 = vmatprep.mubr.bf16.mxu1 %v5500_v18  ;;  %7099 = vmatpush3.bf16.msra.mxu0 %v7780_v11  ;;  %v5446_v35 = vcombine.low %v5438_v29, %v5445_v30 }
 0x49d   : > { %6097 = vmatmul.mubr.bf16.vlgmr.msra.gmra.mrb[0].mxu1 %v5499_v17  ;;  %7100 = vmatprep.subr.bf16.mxu0 %v7782_v37 }
 0x49e   : > { %7121 = vmatpush3.bf16.msra.mxu1 %v7781_v15 }
 0x49f   : > { %7122 = vmatprep.subr.bf16.mxu1 %v7783_v19 }
 0x4a0   : > { %7101 = vmatpush3.bf16.msra.mxu0 %v7784_v22 }
 0x4a1   : > { %7102 = vmatprep.subr.bf16.mxu0 %v7786_v26  ;;  %v5378_v45 = vld [vmem:[#allocation2 + $0x8] sm:$0xff] }
 0x4a2   : > { %7123 = vmatpush3.bf16.msra.mxu1 %v7785_v23  ;;  %v5450_v46 = vadd.f32 %v5446_v35, %v5378_v45  ;;  %v7038_v35 = vld [vmem:[%s9675_s8] ss:$0 sm:$0xff] }
 0x4a3   : > { %7124 = vmatprep.subr.bf16.mxu1 %v7787_v27 }
 0x4a4   : > { %7103 = vmatpush3.bf16.msra.mxu0 %v7788_v28  ;;  %v5452_v49 = vmax.f32 %v5450_v46, 0.0 }
 0x4a5   : > { %7104 = vmatprep.subr.bf16.mxu0 %v7790_v8 }
 0x4a6   : > { %7125 = vmatpush3.bf16.msra.mxu1 %v7789_v20  ;;  %v5479_v52 = vrot.slane %v5452_v49, %v9379_v51  ;;  %v5472_v53 = vcombine.high %v5452_v49, %v5452_v49 }
 0x4a7   : > { %7126 = vmatprep.subr.bf16.mxu1 %v7791_v31 }
 0x4a8   : > { %7105 = vmatpush3.bf16.msra.mxu0 %v7792_v32  ;;  %v5487_v56 = vcombine.high %v5479_v52, %v5479_v52  ;;  %v5486_v57 = vrot.slane %v5472_v53, %v9379_v51  ;;  %v7805_v51 = vld [vmem:[%s9672_s5 + $0x1b0] sm:$0xff]   ;;  %v5501_v9 = vpack.c.bf16 %v5479_v52, %v5479_v52 }
 0x4a9   : > { %7106 = vmatprep.subr.bf16.mxu0 %v7794_v34 }
 0x4aa   : > { %7127 = vmatpush3.bf16.msra.mxu1 %v7793_v33  ;;  %v5502_v59 = vpack.c.bf16 %v5487_v56, %v5487_v56  ;;  %v5488_v25 = vcombine.high %v5486_v57, %v5486_v57  ;;  %v5503_v42 = vpack.c.bf16 %v5486_v57, %v5486_v57 }
 0x4ab   : > { %7128 = vmatprep.subr.bf16.mxu1 %v7795_v36 }
 0x4ac   : > { %7107 = vmatpush3.bf16.msra.mxu0 %v7796_v38  ;;  %6136 = vmatprep.mubr.bf16.mxu0 %v5502_v59  ;;  %v5504_v39 = vpack.c.bf16 %v5488_v25, %v5488_v25 }
 0x4ad   : > { %7108 = vmatprep.subr.bf16.mxu0 %v7798_v43 }
 0x4ae   : > { %7129 = vmatpush3.bf16.msra.mxu1 %v7797_v0  ;;  %6176 = vmatprep.mubr.bf16.mxu1 %v5504_v39 }
 0x4af   : > { %7130 = vmatprep.subr.bf16.mxu1 %v7799_v48 }
 0x4b0   : > { %7109 = vmatpush3.bf16.msra.mxu0 %v7800_v21 }
 0x4b1   : > { %7110 = vmatprep.subr.bf16.mxu0 %v7802_v54 }
 0x4b2   : > { %7131 = vmatpush3.bf16.msra.mxu1 %v7801_v55 }
 0x4b3   : > { %7132 = vmatprep.subr.bf16.mxu1 %v7803_v58 }
 0x4b4   : > { %7111 = vmatpush3.bf16.msra.mxu0 %v7804_v1 }
 0x4b5   : > { %7112 = vmatprep.subr.bf16.mxu0 %v7806_v60 }
 0x4b6   : > { %7133 = vmatpush3.bf16.msra.mxu1 %v7805_v51 }
 0x4b7   : > { %7134 = vmatprep.subr.bf16.mxu1 %v7807_v41 }
 0x4b8   : > { %7113 = vmatpush3.bf16.msra.mxu0 %v7808_v50 }
 0x4b9   : > { %7151 = vmatprep.subr.bf16.mxu0 %v7918_v63 }
 0x4ba   : > { %7135 = vmatpush3.bf16.msra.mxu1 %v7809_v61 }
 0x4bb   : > { %6137 = vmatmul.mubr.bf16.vlgmr.msra.gmra.mrb[4].mxu0 %v5501_v9 }
 0x4bc   : > { %7152 = vmatpush3.bf16.msra.mxu0 %v7810_v62  ;;  %7167 = vmatprep.mubr.msk.bf16.mxu0 %vm7919_vm2, %v7918_v63 }
 0x4bd   : > { %6177 = vmatmul.mubr.bf16.vlgmr.msra.gmra.mrb[4].mxu1 %v5503_v42  ;;  %7153 = vmatprep.subr.bf16.mxu0 %v7918_v63 }
 0x4c0   : > { %7154 = vmatpush3.bf16.msra.mxu0 %v7811_v2 }
 0x4c1   : > { %7155 = vmatprep.subr.bf16.mxu0 %v7918_v63 }
 0x4c4   : > { %7156 = vmatpush3.bf16.msra.mxu0 %v7812_v3 }
 0x4c5   : > { %7157 = vmatprep.subr.bf16.mxu0 %v7918_v63 }
 0x4c8   : > { %7158 = vmatpush3.bf16.msra.mxu0 %v7813_v4 }
 0x4c9   : > { %7159 = vmatprep.subr.bf16.mxu0 %v7918_v63 }
 0x4cc   : > { %7160 = vmatpush3.bf16.msra.mxu0 %v7814_v5 }
 0x4cd   : > { %7161 = vmatprep.subr.bf16.mxu0 %v7918_v63 }
 0x4d0   : > { %7162 = vmatpush3.bf16.msra.mxu0 %v7815_v6 }
 0x4d1   : > { %7163 = vmatprep.subr.bf16.mxu0 %v7918_v63 }
 0x4d4   : > { %7164 = vmatpush3.bf16.msra.mxu0 %v7816_v40 }
 0x4d5   : > { %7165 = vmatprep.subr.bf16.mxu0 %v7918_v63 }
 0x4d8   : > { %7166 = vmatpush3.bf16.msra.mxu0 %v7817_v7 }
 0x56e   : > { %v7070_v11 = vpop.f32.mrb[0].mxu0 }
 0x56f   : > { %v7071_v12 = vpop.f32.mrb[1].mxu0 }
 0x570   : > { %v7092_v13 = vpop.f32.mrb[0].mxu1  ;;  %v7072_v14 = vadd.f32 %v7071_v12, %v7070_v11  ;;  %v7073_v15 = vpop.f32.mrb[2].mxu0 }
 0x571   : > { %v7093_v16 = vpop.f32.mrb[1].mxu1  ;;  %v7074_v44 = vpop.f32.mrb[3].mxu0 }
 0x572   : > { %v6059_v17 = vadd.f32 %v7072_v14, %v6973_v47  ;;  %v7094_v37 = vadd.f32 %v7093_v16, %v7092_v13  ;;  %v7095_v18 = vpop.f32.mrb[2].mxu1 }
 0x573   : > { %v7096_v19 = vpop.f32.mrb[3].mxu1 }
 0x574   : > { %v6099_v22 = vadd.f32 %v7094_v37, %v6059_v17 }
 0x58e   : > { %v7114_v23 = vpop.f32.mrb[4].mxu0 }
 0x58f   : > { %v7115_v24 = vpop.f32.mrb[5].mxu0 }
 0x590   : > { %v7136_v10 = vpop.f32.mrb[4].mxu1  ;;  %v7116_v26 = vadd.f32 %v7115_v24, %v7114_v23  ;;  %v7117_v27 = vpop.f32.mrb[6].mxu0 }
 0x591   : > { %v7137_v28 = vpop.f32.mrb[5].mxu1  ;;  %v7118_v20 = vpop.f32.mrb[7].mxu0 }
 0x592   : > { %v6139_v29 = vadd.f32 %v7116_v26, %v6099_v22  ;;  %v7138_v30 = vadd.f32 %v7137_v28, %v7136_v10  ;;  %v7139_v8 = vpop.f32.mrb[6].mxu1 }
 0x593   : > { %v7140_v31 = vpop.f32.mrb[7].mxu1 }
 0x594   : > { %v6179_v32 = vadd.f32 %v7138_v30, %v6139_v29 }
 0x596   : > { %v6184_v33 = vmax.f32 %v6179_v32, 0.0 }
 0x598   : > { %v6185_v34 = vpack.c.bf16 %v6184_v33, %v6184_v33 }
 0x59a   : > { %7168 = vmatmul.mubr.bf16.vlgmr.msra.gmra.mrb[8].mxu0 %v6185_v34 }
 0x66d   : > { %v6291_v36 = vpop.f32.mrb[8].mxu0 }
 0x66e   : > { %v6292_v38 = vadd.f32 %v7038_v35, %v6291_v36  ;;  %v7169_v43 = vpop.f32.mrb[9].mxu0 }
 0x66f   : > { %v6294_v45 = vpop.f32.mrb[10].mxu0 }
 0x670   : > { %6297 = vst [vmem:[#allocation7] sm:$0x3] %v6292_v38  ;;  %v7170_v0 = vpop.f32.mrb[11].mxu0 }
 0x671 PF: > { %p7231_p2 = scmp.eq.s32.totalorder %s7990_s13, 3  ;;  %s7920_s18 = smov [#allocation7]  }
 0x672   : > { %s6305_s12 = sshll.u32 %s7920_s18, 4  ;;  %s6306_s12 = int_to_ptr.vmem [resolvable:$true] %s6305_s12 }
 0x673   : > { %s7846_s16 = scalar_lea.vmem %s6306_s12, 32  ;;  %p7853_p8 = scmp.lt.s32.totalorder %s6306_s12, %s6306_s12 }
 0x674   : > { %p7847_p3 = scmp.ne.s32.totalorder %s6306_s12, %s7846_s16  ;;  %p7854_p9 = scmp.lt.s32.totalorder %s7846_s16, %s7846_s16 }
 0x676   : > { %p7848_p5 = pnand %p7847_p3, %p7231_p2  ;;  %p7855_p11 = por %p7854_p9, %p7853_p8 }
 0x678   : > { %p7849_p7 = pneg %p7848_p5 }
 0x67a   : > { %p7856_p12 = pnand %p7855_p11, %p7849_p7 }
 0x67c   : > { %7859 = shalt.err (!%p7856_p12)
}
 0x67d   : > { %s7860_s22 = scalar_lea.hbm %s9676_s9, 32 }
 0x67e   : > { %p7861_p10 = scmp.ne.s32.totalorder %s9676_s9, %s7860_s22  ;;  %p7866_p4 = scmp.lt.u32.totalorder %s7860_s22, %s9676_s9 }
 0x680   : > { %p7862_p13 = pnand %p7861_p10, %p7231_p2 }
 0x682   : > { %p7863_p0 = pneg %p7862_p13 }
 0x684   : > { %p7868_p1 = pnand %p7866_p4, %p7863_p0 }
 0x686   : > { %7871 = shalt.err (!%p7868_p1)
}
 0x687   : > { %7228 = dma.vmem_to_hbm [thread:$0]  (%p7231_p2), %s6306_s12, 32, %s9676_s9, [#allocation6]  }
 0x688   : > { %7893 = dma.done.wait (%p7231_p2), [#allocation6], 32  }
 0x689   : > { %7895 = vsyncadd (%p7231_p2), [#allocation6], 4294967264 }
 0x68a PF: > { %p20_p6 = scmp.ge.s32.totalorder %s7993_s14, 6   ;;  %s9679_s30 = smov %s7902_s10 }
 0x68b   : > { %s9680_s10 = smov %s7906_s11  ;;  %s9681_s11 = smov %s8003_s17 }
 0x68c   : > { %s9682_s12 = smov %s7993_s14  ;;  %22 = sbr.rel (!%p20_p6) target bundleno = 4 (0x4), region = 135 }
 0x693   :  { %6318 = vsyncpa [#allocation5], 1 }
 0x694   :  { %6320 = vsyncpa [#allocation5 + $0x1], 1 }
 0x695   :  { %6321 = vsyncpa [#allocation6], 1 }
 0x696   :  { %6323 = vsyncpa [#allocation6 + $0x1], 1 }

</bundles_post_ra>
